<compile_context>
chip_gen: v6e
topology: v6e:2x2x1
jax: 0.10.0
libtpu: 0.0.40
codegen_flags: <defaults>
</compile_context>

<pallas_src>
import jax
import jax.numpy as jnp
import numpy as np
from jax.experimental import pallas as pl
from jax.experimental.pallas import tpu as pltpu

N, C, H, W = 2, 4, 16, 16
KS = 7
PAD = (KS - 1) // 2
EPS = 1e-5

NZC = 2                     # ZPool output channels (max, mean)
NIMG = NZC * N              # 4 (zpool-channel, batch) images held side by side
BAND = 32                   # lanes per image: W data + (BAND - W) zero pad/gap
LANES = NIMG * BAND         # 128 == N * C * W : the lane-dense minor dimension
CNT = N * H * W             # elements per BatchNorm channel (train-mode stats)


def attention_gate_kernel(x_ref, dww_ref, dwg_ref, dwb_ref,
                          pww_ref, pwg_ref, pwb_ref, o_ref):
    f32 = jnp.float32
    x = x_ref[...]                                  # (H, 128): x[h, (n*C + c)*W + w]

    # Lane bookkeeping, built once from a 2-D iota.
    lane = jax.lax.broadcasted_iota(jnp.int32, (1, LANES), 1)
    ch0_lanes = lane < N * BAND                     # bands 0..N-1 -> depthwise group 0
    interior = jnp.where((lane & (BAND - 1)) < W, 1.0, 0.0)   # valid columns of a band
    ch0_int = interior * jnp.where(ch0_lanes, 1.0, 0.0)
    ch1_int = interior - ch0_int

    def lane_shift(a, s):
        """b[:, q] = a[:, (q - s) % LANES]  (static s; lowers to XLU lane rotates)."""
        s = s % LANES
        if s == 0:
            return a
        return jnp.concatenate([a[:, LANES - s:], a[:, :LANES - s]], axis=1)

    def pad_rows(a, ky):
        """Vertical tap ky of the zero-padded image: row i -> a[i + ky - PAD] or 0."""
        off = ky - PAD
        if off == 0:
            return a
        if off > 0:
            return jnp.concatenate([a[off:, :], jnp.zeros((off, LANES), f32)], axis=0)
        return jnp.concatenate([jnp.zeros((-off, LANES), f32), a[:H + off, :]], axis=0)

    # ---- ZPool: per batch image, max and mean over the C input channels --------
    def zpool(n):
        base = n * C * W
        chs = [x[:, base + c * W: base + (c + 1) * W] for c in range(C)]   # C x (H, W)

        def tree(op, vals):
            while len(vals) > 1:
                vals = [op(vals[i], vals[i + 1]) if i + 1 < len(vals) else vals[i]
                        for i in range(0, len(vals), 2)]
            return vals[0]

        return tree(jnp.maximum, chs), tree(jnp.add, chs) * (1.0 / C)

    zp = [zpool(n) for n in range(N)]               # zp[n] = (max_n, mean_n), each (H, W)
    gap = jnp.zeros((H, BAND - W), f32)
    # Band m = zc*N + n holds image (zpool-channel zc, batch n) at lanes
    # [m*BAND, m*BAND + W); the remaining zero lanes of every band provide the
    # 7x7 conv's horizontal zero padding (tile-aligned, review item 5).
    img0 = jnp.concatenate(
        [piece for zc in range(NZC) for n in range(N) for piece in (zp[n][zc], gap)],
        axis=1)                                     # (H, 128)

    # ---- shared depthwise 7x7 BasicConv (applied twice with the same params) ---
    def depthwise_conv(img):
        # All 4 images (2 groups x N batches) advance together: one 49-tap loop
        # with a per-lane tap weight (review item 2).  `img` must be zero
        # outside the band interiors so inter-band lanes act as zero padding.
        acc = jnp.zeros((H, LANES), f32)
        for kx in range(KS):
            cols = lane_shift(img, PAD - kx)        # horizontal tap (7 shifts / pass)
            for ky in range(KS):
                t = ky * KS + kx
                w_tap = jnp.where(ch0_lanes, dww_ref[t], dww_ref[KS * KS + t])
                acc = acc + w_tap * pad_rows(cols, ky)
        return acc

    inv_cnt = 1.0 / CNT

    def bn_stats(y, mask):
        # One-pass train-mode BN statistics (biased variance) + rsqrt on the EUP.
        s = jnp.sum(y * mask)
        ss = jnp.sum(y * y * mask)
        m = s * inv_cnt
        v = ss * inv_cnt - m * m
        return m, jax.lax.rsqrt(v + EPS)

    def depthwise_block(img):
        y = depthwise_conv(img)
        m0, r0 = bn_stats(y, ch0_int)
        m1, r1 = bn_stats(y, ch1_int)
        sc0 = dwg_ref[0] * r0
        sc1 = dwg_ref[1] * r1
        sh0 = dwb_ref[0] - m0 * sc0
        sh1 = dwb_ref[1] - m1 * sc1
        scale = jnp.where(ch0_lanes, sc0, sc1)
        shift = jnp.where(ch0_lanes, sh0, sh1)
        return jnp.maximum(y * scale + shift, 0.0)  # BN + ReLU

    h1 = depthwise_block(img0) * interior           # re-zero pad lanes for 2nd conv
    h2 = depthwise_block(h1)

    # ---- pointwise 1x1 conv (2 -> 1, no bias) + BN (no ReLU) + sigmoid ---------
    # Group-1 image of batch n sits exactly N*BAND lanes right of its group-0
    # image, so the 1x1 conv is one lane rotation plus two scalar multiplies.
    p = pww_ref[0] * h2 + pww_ref[1] * lane_shift(h2, N * BAND)
    m, r = bn_stats(p, ch0_int)                     # 1 channel, stats over N*H*W elems
    sc = pwg_ref[0] * r
    sh = pwb_ref[0] - m * sc
    sig = jax.nn.sigmoid(p * sc + sh)               # valid on group-0 band interiors

    # ---- out = x * sigmoid(gate), gate broadcast over the C input channels -----
    gate = jnp.concatenate(
        [sig[:, n * BAND: n * BAND + W] for n in range(N) for _ in range(C)], axis=1)
    o_ref[...] = x * gate                           # single dense, unmasked store


def attention_gate(x, dw_w, dw_gamma, dw_beta, pw_w, pw_gamma, pw_beta):
    # Lane-dense layout plumbing (outside the kernel): (N,C,H,W) -> (H, N*C*W).
    x_t = jnp.transpose(x, (2, 0, 1, 3)).reshape(H, N * C * W).astype(jnp.float32)
    smem = pl.BlockSpec(memory_space=pltpu.MemorySpace.SMEM)
    vmem = pl.BlockSpec(memory_space=pltpu.MemorySpace.VMEM)
    out_t = pl.pallas_call(
        attention_gate_kernel,
        out_shape=jax.ShapeDtypeStruct((H, N * C * W), jnp.float32),
        in_specs=[vmem, smem, smem, smem, smem, smem, smem],
        out_specs=vmem,
    )(
        x_t,
        dw_w.reshape(-1).astype(jnp.float32),       # (2*7*7,) flattened OIHW
        dw_gamma.astype(jnp.float32),
        dw_beta.astype(jnp.float32),
        pw_w.reshape(-1).astype(jnp.float32),       # (2,)
        pw_gamma.astype(jnp.float32),
        pw_beta.astype(jnp.float32),
    )
    return jnp.transpose(out_t.reshape(H, N, C, W), (1, 2, 0, 3))


def ref_attention_gate(x, dw_w, dw_gamma, dw_beta, pw_w, pw_gamma, pw_beta):
    # pure-JAX reference (train-mode BN, same math)
    def bn(y, g, b):
        m = jnp.mean(y, axis=(0, 2, 3), keepdims=True)
        v = jnp.mean((y - m) ** 2, axis=(0, 2, 3), keepdims=True)
        return (y - m) / jnp.sqrt(v + EPS) * g.reshape(1, -1, 1, 1) + b.reshape(1, -1, 1, 1)

    xmax = jnp.max(x, axis=1, keepdims=True)
    xmean = jnp.mean(x, axis=1, keepdims=True)
    h = jnp.concatenate([xmax, xmean], axis=1)

    def dw(h):
        y = jax.lax.conv_general_dilated(
            h, dw_w, (1, 1), [(PAD, PAD), (PAD, PAD)],
            dimension_numbers=('NCHW', 'OIHW', 'NCHW'),
            feature_group_count=2, precision=jax.lax.Precision.HIGHEST)
        return jax.nn.relu(bn(y, dw_gamma, dw_beta))

    h = dw(dw(h))
    p = jax.lax.conv_general_dilated(
        h, pw_w, (1, 1), [(0, 0), (0, 0)],
        dimension_numbers=('NCHW', 'OIHW', 'NCHW'),
        precision=jax.lax.Precision.HIGHEST)
    p = bn(p, pw_gamma, pw_beta)
    return x * jax.nn.sigmoid(p)


if __name__ == "__main__":
    key = jax.random.PRNGKey(0)
    kx, k1, k2, k3, k4, k5, k6 = jax.random.split(key, 7)
    x = jax.random.normal(kx, (N, C, H, W), jnp.float32)

    # deterministic synthetic parameters (shapes from the module __init__)
    dw_w = 0.2 * jax.random.normal(k1, (2, 1, KS, KS), jnp.float32)   # groups=2 depthwise
    dw_gamma = 1.0 + 0.1 * jax.random.normal(k2, (2,), jnp.float32)
    dw_beta = 0.1 * jax.random.normal(k3, (2,), jnp.float32)
    pw_w = 0.5 * jax.random.normal(k4, (1, 2, 1, 1), jnp.float32)     # 1x1 conv 2->1
    pw_gamma = 1.0 + 0.1 * jax.random.normal(k5, (1,), jnp.float32)
    pw_beta = 0.1 * jax.random.normal(k6, (1,), jnp.float32)

    out = attention_gate(x, dw_w, dw_gamma, dw_beta, pw_w, pw_gamma, pw_beta)
    out = jax.block_until_ready(out)

    ref = ref_attention_gate(x, dw_w, dw_gamma, dw_beta, pw_w, pw_gamma, pw_beta)
    np.testing.assert_allclose(np.asarray(out), np.asarray(ref), rtol=1e-4, atol=1e-4)
    print("KERNEL_OK")
</pallas_src>

<mosaic_0001>
module attributes {stable_mosaic.version = 11 : i64} {
  func.func @attention_gate_kernel(%arg0: memref<16x128xf32, #tpu.memory_space<vmem>>, %arg1: memref<98xf32, #tpu.memory_space<smem>>, %arg2: memref<2xf32, #tpu.memory_space<smem>>, %arg3: memref<2xf32, #tpu.memory_space<smem>>, %arg4: memref<2xf32, #tpu.memory_space<smem>>, %arg5: memref<1xf32, #tpu.memory_space<smem>>, %arg6: memref<1xf32, #tpu.memory_space<smem>>, %arg7: memref<16x128xf32, #tpu.memory_space<vmem>>) attributes {dimension_semantics = [], scalar_prefetch = 0 : i64, scratch_operands = 0 : i64, tpu.core_type = #tpu.core_type<tc>} {
    %c0 = arith.constant 0 : index
    %c0_0 = arith.constant 0 : index
    %0 = vector.load %arg0[%c0, %c0_0] : memref<16x128xf32, #tpu.memory_space<vmem>>, vector<16x128xf32>
    %1 = tpu.iota {dimensions = array<i32: 1>} : vector<1x128xi32>
    %c64_i32 = arith.constant 64 : i32
    %2 = vector.broadcast %c64_i32 : i32 to vector<1x128xi32>
    %3 = arith.cmpi slt, %1, %2 : vector<1x128xi32>
    %c31_i32 = arith.constant 31 : i32
    %4 = vector.broadcast %c31_i32 : i32 to vector<1x128xi32>
    %5 = arith.andi %1, %4 : vector<1x128xi32>
    %c16_i32 = arith.constant 16 : i32
    %6 = vector.broadcast %c16_i32 : i32 to vector<1x128xi32>
    %7 = arith.cmpi slt, %5, %6 : vector<1x128xi32>
    %cst = arith.constant 1.000000e+00 : f32
    %cst_1 = arith.constant 0.000000e+00 : f32
    %8 = vector.broadcast %cst : f32 to vector<1x128xf32>
    %9 = vector.broadcast %cst_1 : f32 to vector<1x128xf32>
    %10 = arith.select %7, %8, %9 : vector<1x128xi1>, vector<1x128xf32>
    %cst_2 = arith.constant 1.000000e+00 : f32
    %cst_3 = arith.constant 0.000000e+00 : f32
    %11 = vector.broadcast %cst_2 : f32 to vector<1x128xf32>
    %12 = vector.broadcast %cst_3 : f32 to vector<1x128xf32>
    %13 = arith.select %3, %11, %12 : vector<1x128xi1>, vector<1x128xf32>
    %14 = arith.mulf %10, %13 : vector<1x128xf32>
    %15 = arith.subf %10, %14 : vector<1x128xf32>
    %16 = vector.extract_strided_slice %0 {offsets = [0, 0], sizes = [16, 16], strides = [1, 1]} : vector<16x128xf32> to vector<16x16xf32>
    %17 = vector.extract_strided_slice %0 {offsets = [0, 16], sizes = [16, 16], strides = [1, 1]} : vector<16x128xf32> to vector<16x16xf32>
    %18 = vector.extract_strided_slice %0 {offsets = [0, 32], sizes = [16, 16], strides = [1, 1]} : vector<16x128xf32> to vector<16x16xf32>
    %19 = vector.extract_strided_slice %0 {offsets = [0, 48], sizes = [16, 16], strides = [1, 1]} : vector<16x128xf32> to vector<16x16xf32>
    %20 = arith.maximumf %16, %17 : vector<16x16xf32>
    %21 = arith.maximumf %18, %19 : vector<16x16xf32>
    %22 = arith.maximumf %20, %21 : vector<16x16xf32>
    %23 = arith.addf %16, %17 : vector<16x16xf32>
    %24 = arith.addf %18, %19 : vector<16x16xf32>
    %25 = arith.addf %23, %24 : vector<16x16xf32>
    %cst_4 = arith.constant 2.500000e-01 : f32
    %26 = vector.broadcast %cst_4 : f32 to vector<16x16xf32>
    %27 = arith.mulf %25, %26 : vector<16x16xf32>
    %28 = vector.extract_strided_slice %0 {offsets = [0, 64], sizes = [16, 16], strides = [1, 1]} : vector<16x128xf32> to vector<16x16xf32>
    %29 = vector.extract_strided_slice %0 {offsets = [0, 80], sizes = [16, 16], strides = [1, 1]} : vector<16x128xf32> to vector<16x16xf32>
    %30 = vector.extract_strided_slice %0 {offsets = [0, 96], sizes = [16, 16], strides = [1, 1]} : vector<16x128xf32> to vector<16x16xf32>
    %31 = vector.extract_strided_slice %0 {offsets = [0, 112], sizes = [16, 16], strides = [1, 1]} : vector<16x128xf32> to vector<16x16xf32>
    %32 = arith.maximumf %28, %29 : vector<16x16xf32>
    %33 = arith.maximumf %30, %31 : vector<16x16xf32>
    %34 = arith.maximumf %32, %33 : vector<16x16xf32>
    %35 = arith.addf %28, %29 : vector<16x16xf32>
    %36 = arith.addf %30, %31 : vector<16x16xf32>
    %37 = arith.addf %35, %36 : vector<16x16xf32>
    %cst_5 = arith.constant 2.500000e-01 : f32
    %38 = vector.broadcast %cst_5 : f32 to vector<16x16xf32>
    %39 = arith.mulf %37, %38 : vector<16x16xf32>
    %cst_6 = arith.constant 0.000000e+00 : f32
    %40 = vector.broadcast %cst_6 : f32 to vector<16x16xf32>
    %41 = tpu.concatenate %22, %40, %34, %40, %27, %40, %39, %40 in 1 : vector<16x16xf32>, vector<16x16xf32>, vector<16x16xf32>, vector<16x16xf32>, vector<16x16xf32>, vector<16x16xf32>, vector<16x16xf32>, vector<16x16xf32> -> vector<16x128xf32>
    %cst_7 = arith.constant 0.000000e+00 : f32
    %42 = vector.broadcast %cst_7 : f32 to vector<16x128xf32>
    %43 = vector.extract_strided_slice %41 {offsets = [0, 125], sizes = [16, 3], strides = [1, 1]} : vector<16x128xf32> to vector<16x3xf32>
    %44 = vector.extract_strided_slice %41 {offsets = [0, 0], sizes = [16, 125], strides = [1, 1]} : vector<16x128xf32> to vector<16x125xf32>
    %45 = tpu.concatenate %43, %44 in 1 : vector<16x3xf32>, vector<16x125xf32> -> vector<16x128xf32>
    %c0_8 = arith.constant 0 : index
    %46 = memref.load %arg1[%c0_8] : memref<98xf32, #tpu.memory_space<smem>>
    %c49 = arith.constant 49 : index
    %47 = memref.load %arg1[%c49] : memref<98xf32, #tpu.memory_space<smem>>
    %48 = vector.broadcast %46 : f32 to vector<1x128xf32>
    %49 = vector.broadcast %47 : f32 to vector<1x128xf32>
    %50 = arith.select %3, %48, %49 : vector<1x128xi1>, vector<1x128xf32>
    %cst_9 = arith.constant 0.000000e+00 : f32
    %51 = vector.broadcast %cst_9 : f32 to vector<3x128xf32>
    %52 = vector.extract_strided_slice %45 {offsets = [0, 0], sizes = [13, 128], strides = [1, 1]} : vector<16x128xf32> to vector<13x128xf32>
    %53 = tpu.concatenate %51, %52 in 0 : vector<3x128xf32>, vector<13x128xf32> -> vector<16x128xf32>
    %54 = vector.broadcast %50 : vector<1x128xf32> to vector<16x128xf32>
    %55 = arith.mulf %54, %53 : vector<16x128xf32>
    %56 = arith.addf %42, %55 : vector<16x128xf32>
    %c7 = arith.constant 7 : index
    %57 = memref.load %arg1[%c7] : memref<98xf32, #tpu.memory_space<smem>>
    %c56 = arith.constant 56 : index
    %58 = memref.load %arg1[%c56] : memref<98xf32, #tpu.memory_space<smem>>
    %59 = vector.broadcast %57 : f32 to vector<1x128xf32>
    %60 = vector.broadcast %58 : f32 to vector<1x128xf32>
    %61 = arith.select %3, %59, %60 : vector<1x128xi1>, vector<1x128xf32>
    %cst_10 = arith.constant 0.000000e+00 : f32
    %62 = vector.broadcast %cst_10 : f32 to vector<2x128xf32>
    %63 = vector.extract_strided_slice %45 {offsets = [0, 0], sizes = [14, 128], strides = [1, 1]} : vector<16x128xf32> to vector<14x128xf32>
    %64 = tpu.concatenate %62, %63 in 0 : vector<2x128xf32>, vector<14x128xf32> -> vector<16x128xf32>
    %65 = vector.broadcast %61 : vector<1x128xf32> to vector<16x128xf32>
    %66 = arith.mulf %65, %64 : vector<16x128xf32>
    %67 = arith.addf %56, %66 : vector<16x128xf32>
    %c14 = arith.constant 14 : index
    %68 = memref.load %arg1[%c14] : memref<98xf32, #tpu.memory_space<smem>>
    %c63 = arith.constant 63 : index
    %69 = memref.load %arg1[%c63] : memref<98xf32, #tpu.memory_space<smem>>
    %70 = vector.broadcast %68 : f32 to vector<1x128xf32>
    %71 = vector.broadcast %69 : f32 to vector<1x128xf32>
    %72 = arith.select %3, %70, %71 : vector<1x128xi1>, vector<1x128xf32>
    %cst_11 = arith.constant 0.000000e+00 : f32
    %73 = vector.broadcast %cst_11 : f32 to vector<1x128xf32>
    %74 = vector.extract_strided_slice %45 {offsets = [0, 0], sizes = [15, 128], strides = [1, 1]} : vector<16x128xf32> to vector<15x128xf32>
    %75 = tpu.concatenate %73, %74 in 0 : vector<1x128xf32>, vector<15x128xf32> -> vector<16x128xf32>
    %76 = vector.broadcast %72 : vector<1x128xf32> to vector<16x128xf32>
    %77 = arith.mulf %76, %75 : vector<16x128xf32>
    %78 = arith.addf %67, %77 : vector<16x128xf32>
    %c21 = arith.constant 21 : index
    %79 = memref.load %arg1[%c21] : memref<98xf32, #tpu.memory_space<smem>>
    %c70 = arith.constant 70 : index
    %80 = memref.load %arg1[%c70] : memref<98xf32, #tpu.memory_space<smem>>
    %81 = vector.broadcast %79 : f32 to vector<1x128xf32>
    %82 = vector.broadcast %80 : f32 to vector<1x128xf32>
    %83 = arith.select %3, %81, %82 : vector<1x128xi1>, vector<1x128xf32>
    %84 = vector.broadcast %83 : vector<1x128xf32> to vector<16x128xf32>
    %85 = arith.mulf %84, %45 : vector<16x128xf32>
    %86 = arith.addf %78, %85 : vector<16x128xf32>
    %c28 = arith.constant 28 : index
    %87 = memref.load %arg1[%c28] : memref<98xf32, #tpu.memory_space<smem>>
    %c77 = arith.constant 77 : index
    %88 = memref.load %arg1[%c77] : memref<98xf32, #tpu.memory_space<smem>>
    %89 = vector.broadcast %87 : f32 to vector<1x128xf32>
    %90 = vector.broadcast %88 : f32 to vector<1x128xf32>
    %91 = arith.select %3, %89, %90 : vector<1x128xi1>, vector<1x128xf32>
    %92 = vector.extract_strided_slice %45 {offsets = [1, 0], sizes = [15, 128], strides = [1, 1]} : vector<16x128xf32> to vector<15x128xf32>
    %cst_12 = arith.constant 0.000000e+00 : f32
    %93 = vector.broadcast %cst_12 : f32 to vector<1x128xf32>
    %94 = tpu.concatenate %92, %93 in 0 : vector<15x128xf32>, vector<1x128xf32> -> vector<16x128xf32>
    %95 = vector.broadcast %91 : vector<1x128xf32> to vector<16x128xf32>
    %96 = arith.mulf %95, %94 : vector<16x128xf32>
    %97 = arith.addf %86, %96 : vector<16x128xf32>
    %c35 = arith.constant 35 : index
    %98 = memref.load %arg1[%c35] : memref<98xf32, #tpu.memory_space<smem>>
    %c84 = arith.constant 84 : index
    %99 = memref.load %arg1[%c84] : memref<98xf32, #tpu.memory_space<smem>>
    %100 = vector.broadcast %98 : f32 to vector<1x128xf32>
    %101 = vector.broadcast %99 : f32 to vector<1x128xf32>
    %102 = arith.select %3, %100, %101 : vector<1x128xi1>, vector<1x128xf32>
    %103 = vector.extract_strided_slice %45 {offsets = [2, 0], sizes = [14, 128], strides = [1, 1]} : vector<16x128xf32> to vector<14x128xf32>
    %cst_13 = arith.constant 0.000000e+00 : f32
    %104 = vector.broadcast %cst_13 : f32 to vector<2x128xf32>
    %105 = tpu.concatenate %103, %104 in 0 : vector<14x128xf32>, vector<2x128xf32> -> vector<16x128xf32>
    %106 = vector.broadcast %102 : vector<1x128xf32> to vector<16x128xf32>
    %107 = arith.mulf %106, %105 : vector<16x128xf32>
    %108 = arith.addf %97, %107 : vector<16x128xf32>
    %c42 = arith.constant 42 : index
    %109 = memref.load %arg1[%c42] : memref<98xf32, #tpu.memory_space<smem>>
    %c91 = arith.constant 91 : index
    %110 = memref.load %arg1[%c91] : memref<98xf32, #tpu.memory_space<smem>>
    %111 = vector.broadcast %109 : f32 to vector<1x128xf32>
    %112 = vector.broadcast %110 : f32 to vector<1x128xf32>
    %113 = arith.select %3, %111, %112 : vector<1x128xi1>, vector<1x128xf32>
    %114 = vector.extract_strided_slice %45 {offsets = [3, 0], sizes = [13, 128], strides = [1, 1]} : vector<16x128xf32> to vector<13x128xf32>
    %cst_14 = arith.constant 0.000000e+00 : f32
    %115 = vector.broadcast %cst_14 : f32 to vector<3x128xf32>
    %116 = tpu.concatenate %114, %115 in 0 : vector<13x128xf32>, vector<3x128xf32> -> vector<16x128xf32>
    %117 = vector.broadcast %113 : vector<1x128xf32> to vector<16x128xf32>
    %118 = arith.mulf %117, %116 : vector<16x128xf32>
    %119 = arith.addf %108, %118 : vector<16x128xf32>
    %120 = vector.extract_strided_slice %41 {offsets = [0, 126], sizes = [16, 2], strides = [1, 1]} : vector<16x128xf32> to vector<16x2xf32>
    %121 = vector.extract_strided_slice %41 {offsets = [0, 0], sizes = [16, 126], strides = [1, 1]} : vector<16x128xf32> to vector<16x126xf32>
    %122 = tpu.concatenate %120, %121 in 1 : vector<16x2xf32>, vector<16x126xf32> -> vector<16x128xf32>
    %c1 = arith.constant 1 : index
    %123 = memref.load %arg1[%c1] : memref<98xf32, #tpu.memory_space<smem>>
    %c50 = arith.constant 50 : index
    %124 = memref.load %arg1[%c50] : memref<98xf32, #tpu.memory_space<smem>>
    %125 = vector.broadcast %123 : f32 to vector<1x128xf32>
    %126 = vector.broadcast %124 : f32 to vector<1x128xf32>
    %127 = arith.select %3, %125, %126 : vector<1x128xi1>, vector<1x128xf32>
    %cst_15 = arith.constant 0.000000e+00 : f32
    %128 = vector.broadcast %cst_15 : f32 to vector<3x128xf32>
    %129 = vector.extract_strided_slice %122 {offsets = [0, 0], sizes = [13, 128], strides = [1, 1]} : vector<16x128xf32> to vector<13x128xf32>
    %130 = tpu.concatenate %128, %129 in 0 : vector<3x128xf32>, vector<13x128xf32> -> vector<16x128xf32>
    %131 = vector.broadcast %127 : vector<1x128xf32> to vector<16x128xf32>
    %132 = arith.mulf %131, %130 : vector<16x128xf32>
    %133 = arith.addf %119, %132 : vector<16x128xf32>
    %c8 = arith.constant 8 : index
    %134 = memref.load %arg1[%c8] : memref<98xf32, #tpu.memory_space<smem>>
    %c57 = arith.constant 57 : index
    %135 = memref.load %arg1[%c57] : memref<98xf32, #tpu.memory_space<smem>>
    %136 = vector.broadcast %134 : f32 to vector<1x128xf32>
    %137 = vector.broadcast %135 : f32 to vector<1x128xf32>
    %138 = arith.select %3, %136, %137 : vector<1x128xi1>, vector<1x128xf32>
    %cst_16 = arith.constant 0.000000e+00 : f32
    %139 = vector.broadcast %cst_16 : f32 to vector<2x128xf32>
    %140 = vector.extract_strided_slice %122 {offsets = [0, 0], sizes = [14, 128], strides = [1, 1]} : vector<16x128xf32> to vector<14x128xf32>
    %141 = tpu.concatenate %139, %140 in 0 : vector<2x128xf32>, vector<14x128xf32> -> vector<16x128xf32>
    %142 = vector.broadcast %138 : vector<1x128xf32> to vector<16x128xf32>
    %143 = arith.mulf %142, %141 : vector<16x128xf32>
    %144 = arith.addf %133, %143 : vector<16x128xf32>
    %c15 = arith.constant 15 : index
    %145 = memref.load %arg1[%c15] : memref<98xf32, #tpu.memory_space<smem>>
    %c64 = arith.constant 64 : index
    %146 = memref.load %arg1[%c64] : memref<98xf32, #tpu.memory_space<smem>>
    %147 = vector.broadcast %145 : f32 to vector<1x128xf32>
    %148 = vector.broadcast %146 : f32 to vector<1x128xf32>
    %149 = arith.select %3, %147, %148 : vector<1x128xi1>, vector<1x128xf32>
    %cst_17 = arith.constant 0.000000e+00 : f32
    %150 = vector.broadcast %cst_17 : f32 to vector<1x128xf32>
    %151 = vector.extract_strided_slice %122 {offsets = [0, 0], sizes = [15, 128], strides = [1, 1]} : vector<16x128xf32> to vector<15x128xf32>
    %152 = tpu.concatenate %150, %151 in 0 : vector<1x128xf32>, vector<15x128xf32> -> vector<16x128xf32>
    %153 = vector.broadcast %149 : vector<1x128xf32> to vector<16x128xf32>
    %154 = arith.mulf %153, %152 : vector<16x128xf32>
    %155 = arith.addf %144, %154 : vector<16x128xf32>
    %c22 = arith.constant 22 : index
    %156 = memref.load %arg1[%c22] : memref<98xf32, #tpu.memory_space<smem>>
    %c71 = arith.constant 71 : index
    %157 = memref.load %arg1[%c71] : memref<98xf32, #tpu.memory_space<smem>>
    %158 = vector.broadcast %156 : f32 to vector<1x128xf32>
    %159 = vector.broadcast %157 : f32 to vector<1x128xf32>
    %160 = arith.select %3, %158, %159 : vector<1x128xi1>, vector<1x128xf32>
    %161 = vector.broadcast %160 : vector<1x128xf32> to vector<16x128xf32>
    %162 = arith.mulf %161, %122 : vector<16x128xf32>
    %163 = arith.addf %155, %162 : vector<16x128xf32>
    %c29 = arith.constant 29 : index
    %164 = memref.load %arg1[%c29] : memref<98xf32, #tpu.memory_space<smem>>
    %c78 = arith.constant 78 : index
    %165 = memref.load %arg1[%c78] : memref<98xf32, #tpu.memory_space<smem>>
    %166 = vector.broadcast %164 : f32 to vector<1x128xf32>
    %167 = vector.broadcast %165 : f32 to vector<1x128xf32>
    %168 = arith.select %3, %166, %167 : vector<1x128xi1>, vector<1x128xf32>
    %169 = vector.extract_strided_slice %122 {offsets = [1, 0], sizes = [15, 128], strides = [1, 1]} : vector<16x128xf32> to vector<15x128xf32>
    %cst_18 = arith.constant 0.000000e+00 : f32
    %170 = vector.broadcast %cst_18 : f32 to vector<1x128xf32>
    %171 = tpu.concatenate %169, %170 in 0 : vector<15x128xf32>, vector<1x128xf32> -> vector<16x128xf32>
    %172 = vector.broadcast %168 : vector<1x128xf32> to vector<16x128xf32>
    %173 = arith.mulf %172, %171 : vector<16x128xf32>
    %174 = arith.addf %163, %173 : vector<16x128xf32>
    %c36 = arith.constant 36 : index
    %175 = memref.load %arg1[%c36] : memref<98xf32, #tpu.memory_space<smem>>
    %c85 = arith.constant 85 : index
    %176 = memref.load %arg1[%c85] : memref<98xf32, #tpu.memory_space<smem>>
    %177 = vector.broadcast %175 : f32 to vector<1x128xf32>
    %178 = vector.broadcast %176 : f32 to vector<1x128xf32>
    %179 = arith.select %3, %177, %178 : vector<1x128xi1>, vector<1x128xf32>
    %180 = vector.extract_strided_slice %122 {offsets = [2, 0], sizes = [14, 128], strides = [1, 1]} : vector<16x128xf32> to vector<14x128xf32>
    %cst_19 = arith.constant 0.000000e+00 : f32
    %181 = vector.broadcast %cst_19 : f32 to vector<2x128xf32>
    %182 = tpu.concatenate %180, %181 in 0 : vector<14x128xf32>, vector<2x128xf32> -> vector<16x128xf32>
    %183 = vector.broadcast %179 : vector<1x128xf32> to vector<16x128xf32>
    %184 = arith.mulf %183, %182 : vector<16x128xf32>
    %185 = arith.addf %174, %184 : vector<16x128xf32>
    %c43 = arith.constant 43 : index
    %186 = memref.load %arg1[%c43] : memref<98xf32, #tpu.memory_space<smem>>
    %c92 = arith.constant 92 : index
    %187 = memref.load %arg1[%c92] : memref<98xf32, #tpu.memory_space<smem>>
    %188 = vector.broadcast %186 : f32 to vector<1x128xf32>
    %189 = vector.broadcast %187 : f32 to vector<1x128xf32>
    %190 = arith.select %3, %188, %189 : vector<1x128xi1>, vector<1x128xf32>
    %191 = vector.extract_strided_slice %122 {offsets = [3, 0], sizes = [13, 128], strides = [1, 1]} : vector<16x128xf32> to vector<13x128xf32>
    %cst_20 = arith.constant 0.000000e+00 : f32
    %192 = vector.broadcast %cst_20 : f32 to vector<3x128xf32>
    %193 = tpu.concatenate %191, %192 in 0 : vector<13x128xf32>, vector<3x128xf32> -> vector<16x128xf32>
    %194 = vector.broadcast %190 : vector<1x128xf32> to vector<16x128xf32>
    %195 = arith.mulf %194, %193 : vector<16x128xf32>
    %196 = arith.addf %185, %195 : vector<16x128xf32>
    %197 = vector.extract_strided_slice %41 {offsets = [0, 127], sizes = [16, 1], strides = [1, 1]} : vector<16x128xf32> to vector<16x1xf32>
    %198 = vector.extract_strided_slice %41 {offsets = [0, 0], sizes = [16, 127], strides = [1, 1]} : vector<16x128xf32> to vector<16x127xf32>
    %199 = tpu.concatenate %197, %198 in 1 : vector<16x1xf32>, vector<16x127xf32> -> vector<16x128xf32>
    %c2 = arith.constant 2 : index
    %200 = memref.load %arg1[%c2] : memref<98xf32, #tpu.memory_space<smem>>
    %c51 = arith.constant 51 : index
    %201 = memref.load %arg1[%c51] : memref<98xf32, #tpu.memory_space<smem>>
    %202 = vector.broadcast %200 : f32 to vector<1x128xf32>
    %203 = vector.broadcast %201 : f32 to vector<1x128xf32>
    %204 = arith.select %3, %202, %203 : vector<1x128xi1>, vector<1x128xf32>
    %cst_21 = arith.constant 0.000000e+00 : f32
    %205 = vector.broadcast %cst_21 : f32 to vector<3x128xf32>
    %206 = vector.extract_strided_slice %199 {offsets = [0, 0], sizes = [13, 128], strides = [1, 1]} : vector<16x128xf32> to vector<13x128xf32>
    %207 = tpu.concatenate %205, %206 in 0 : vector<3x128xf32>, vector<13x128xf32> -> vector<16x128xf32>
    %208 = vector.broadcast %204 : vector<1x128xf32> to vector<16x128xf32>
    %209 = arith.mulf %208, %207 : vector<16x128xf32>
    %210 = arith.addf %196, %209 : vector<16x128xf32>
    %c9 = arith.constant 9 : index
    %211 = memref.load %arg1[%c9] : memref<98xf32, #tpu.memory_space<smem>>
    %c58 = arith.constant 58 : index
    %212 = memref.load %arg1[%c58] : memref<98xf32, #tpu.memory_space<smem>>
    %213 = vector.broadcast %211 : f32 to vector<1x128xf32>
    %214 = vector.broadcast %212 : f32 to vector<1x128xf32>
    %215 = arith.select %3, %213, %214 : vector<1x128xi1>, vector<1x128xf32>
    %cst_22 = arith.constant 0.000000e+00 : f32
    %216 = vector.broadcast %cst_22 : f32 to vector<2x128xf32>
    %217 = vector.extract_strided_slice %199 {offsets = [0, 0], sizes = [14, 128], strides = [1, 1]} : vector<16x128xf32> to vector<14x128xf32>
    %218 = tpu.concatenate %216, %217 in 0 : vector<2x128xf32>, vector<14x128xf32> -> vector<16x128xf32>
    %219 = vector.broadcast %215 : vector<1x128xf32> to vector<16x128xf32>
    %220 = arith.mulf %219, %218 : vector<16x128xf32>
    %221 = arith.addf %210, %220 : vector<16x128xf32>
    %c16 = arith.constant 16 : index
    %222 = memref.load %arg1[%c16] : memref<98xf32, #tpu.memory_space<smem>>
    %c65 = arith.constant 65 : index
    %223 = memref.load %arg1[%c65] : memref<98xf32, #tpu.memory_space<smem>>
    %224 = vector.broadcast %222 : f32 to vector<1x128xf32>
    %225 = vector.broadcast %223 : f32 to vector<1x128xf32>
    %226 = arith.select %3, %224, %225 : vector<1x128xi1>, vector<1x128xf32>
    %cst_23 = arith.constant 0.000000e+00 : f32
    %227 = vector.broadcast %cst_23 : f32 to vector<1x128xf32>
    %228 = vector.extract_strided_slice %199 {offsets = [0, 0], sizes = [15, 128], strides = [1, 1]} : vector<16x128xf32> to vector<15x128xf32>
    %229 = tpu.concatenate %227, %228 in 0 : vector<1x128xf32>, vector<15x128xf32> -> vector<16x128xf32>
    %230 = vector.broadcast %226 : vector<1x128xf32> to vector<16x128xf32>
    %231 = arith.mulf %230, %229 : vector<16x128xf32>
    %232 = arith.addf %221, %231 : vector<16x128xf32>
    %c23 = arith.constant 23 : index
    %233 = memref.load %arg1[%c23] : memref<98xf32, #tpu.memory_space<smem>>
    %c72 = arith.constant 72 : index
    %234 = memref.load %arg1[%c72] : memref<98xf32, #tpu.memory_space<smem>>
    %235 = vector.broadcast %233 : f32 to vector<1x128xf32>
    %236 = vector.broadcast %234 : f32 to vector<1x128xf32>
    %237 = arith.select %3, %235, %236 : vector<1x128xi1>, vector<1x128xf32>
    %238 = vector.broadcast %237 : vector<1x128xf32> to vector<16x128xf32>
    %239 = arith.mulf %238, %199 : vector<16x128xf32>
    %240 = arith.addf %232, %239 : vector<16x128xf32>
    %c30 = arith.constant 30 : index
    %241 = memref.load %arg1[%c30] : memref<98xf32, #tpu.memory_space<smem>>
    %c79 = arith.constant 79 : index
    %242 = memref.load %arg1[%c79] : memref<98xf32, #tpu.memory_space<smem>>
    %243 = vector.broadcast %241 : f32 to vector<1x128xf32>
    %244 = vector.broadcast %242 : f32 to vector<1x128xf32>
    %245 = arith.select %3, %243, %244 : vector<1x128xi1>, vector<1x128xf32>
    %246 = vector.extract_strided_slice %199 {offsets = [1, 0], sizes = [15, 128], strides = [1, 1]} : vector<16x128xf32> to vector<15x128xf32>
    %cst_24 = arith.constant 0.000000e+00 : f32
    %247 = vector.broadcast %cst_24 : f32 to vector<1x128xf32>
    %248 = tpu.concatenate %246, %247 in 0 : vector<15x128xf32>, vector<1x128xf32> -> vector<16x128xf32>
    %249 = vector.broadcast %245 : vector<1x128xf32> to vector<16x128xf32>
    %250 = arith.mulf %249, %248 : vector<16x128xf32>
    %251 = arith.addf %240, %250 : vector<16x128xf32>
    %c37 = arith.constant 37 : index
    %252 = memref.load %arg1[%c37] : memref<98xf32, #tpu.memory_space<smem>>
    %c86 = arith.constant 86 : index
    %253 = memref.load %arg1[%c86] : memref<98xf32, #tpu.memory_space<smem>>
    %254 = vector.broadcast %252 : f32 to vector<1x128xf32>
    %255 = vector.broadcast %253 : f32 to vector<1x128xf32>
    %256 = arith.select %3, %254, %255 : vector<1x128xi1>, vector<1x128xf32>
    %257 = vector.extract_strided_slice %199 {offsets = [2, 0], sizes = [14, 128], strides = [1, 1]} : vector<16x128xf32> to vector<14x128xf32>
    %cst_25 = arith.constant 0.000000e+00 : f32
    %258 = vector.broadcast %cst_25 : f32 to vector<2x128xf32>
    %259 = tpu.concatenate %257, %258 in 0 : vector<14x128xf32>, vector<2x128xf32> -> vector<16x128xf32>
    %260 = vector.broadcast %256 : vector<1x128xf32> to vector<16x128xf32>
    %261 = arith.mulf %260, %259 : vector<16x128xf32>
    %262 = arith.addf %251, %261 : vector<16x128xf32>
    %c44 = arith.constant 44 : index
    %263 = memref.load %arg1[%c44] : memref<98xf32, #tpu.memory_space<smem>>
    %c93 = arith.constant 93 : index
    %264 = memref.load %arg1[%c93] : memref<98xf32, #tpu.memory_space<smem>>
    %265 = vector.broadcast %263 : f32 to vector<1x128xf32>
    %266 = vector.broadcast %264 : f32 to vector<1x128xf32>
    %267 = arith.select %3, %265, %266 : vector<1x128xi1>, vector<1x128xf32>
    %268 = vector.extract_strided_slice %199 {offsets = [3, 0], sizes = [13, 128], strides = [1, 1]} : vector<16x128xf32> to vector<13x128xf32>
    %cst_26 = arith.constant 0.000000e+00 : f32
    %269 = vector.broadcast %cst_26 : f32 to vector<3x128xf32>
    %270 = tpu.concatenate %268, %269 in 0 : vector<13x128xf32>, vector<3x128xf32> -> vector<16x128xf32>
    %271 = vector.broadcast %267 : vector<1x128xf32> to vector<16x128xf32>
    %272 = arith.mulf %271, %270 : vector<16x128xf32>
    %273 = arith.addf %262, %272 : vector<16x128xf32>
    %c3 = arith.constant 3 : index
    %274 = memref.load %arg1[%c3] : memref<98xf32, #tpu.memory_space<smem>>
    %c52 = arith.constant 52 : index
    %275 = memref.load %arg1[%c52] : memref<98xf32, #tpu.memory_space<smem>>
    %276 = vector.broadcast %274 : f32 to vector<1x128xf32>
    %277 = vector.broadcast %275 : f32 to vector<1x128xf32>
    %278 = arith.select %3, %276, %277 : vector<1x128xi1>, vector<1x128xf32>
    %cst_27 = arith.constant 0.000000e+00 : f32
    %279 = vector.broadcast %cst_27 : f32 to vector<3x128xf32>
    %280 = vector.extract_strided_slice %41 {offsets = [0, 0], sizes = [13, 128], strides = [1, 1]} : vector<16x128xf32> to vector<13x128xf32>
    %281 = tpu.concatenate %279, %280 in 0 : vector<3x128xf32>, vector<13x128xf32> -> vector<16x128xf32>
    %282 = vector.broadcast %278 : vector<1x128xf32> to vector<16x128xf32>
    %283 = arith.mulf %282, %281 : vector<16x128xf32>
    %284 = arith.addf %273, %283 : vector<16x128xf32>
    %c10 = arith.constant 10 : index
    %285 = memref.load %arg1[%c10] : memref<98xf32, #tpu.memory_space<smem>>
    %c59 = arith.constant 59 : index
    %286 = memref.load %arg1[%c59] : memref<98xf32, #tpu.memory_space<smem>>
    %287 = vector.broadcast %285 : f32 to vector<1x128xf32>
    %288 = vector.broadcast %286 : f32 to vector<1x128xf32>
    %289 = arith.select %3, %287, %288 : vector<1x128xi1>, vector<1x128xf32>
    %cst_28 = arith.constant 0.000000e+00 : f32
    %290 = vector.broadcast %cst_28 : f32 to vector<2x128xf32>
    %291 = vector.extract_strided_slice %41 {offsets = [0, 0], sizes = [14, 128], strides = [1, 1]} : vector<16x128xf32> to vector<14x128xf32>
    %292 = tpu.concatenate %290, %291 in 0 : vector<2x128xf32>, vector<14x128xf32> -> vector<16x128xf32>
    %293 = vector.broadcast %289 : vector<1x128xf32> to vector<16x128xf32>
    %294 = arith.mulf %293, %292 : vector<16x128xf32>
    %295 = arith.addf %284, %294 : vector<16x128xf32>
    %c17 = arith.constant 17 : index
    %296 = memref.load %arg1[%c17] : memref<98xf32, #tpu.memory_space<smem>>
    %c66 = arith.constant 66 : index
    %297 = memref.load %arg1[%c66] : memref<98xf32, #tpu.memory_space<smem>>
    %298 = vector.broadcast %296 : f32 to vector<1x128xf32>
    %299 = vector.broadcast %297 : f32 to vector<1x128xf32>
    %300 = arith.select %3, %298, %299 : vector<1x128xi1>, vector<1x128xf32>
    %cst_29 = arith.constant 0.000000e+00 : f32
    %301 = vector.broadcast %cst_29 : f32 to vector<1x128xf32>
    %302 = vector.extract_strided_slice %41 {offsets = [0, 0], sizes = [15, 128], strides = [1, 1]} : vector<16x128xf32> to vector<15x128xf32>
    %303 = tpu.concatenate %301, %302 in 0 : vector<1x128xf32>, vector<15x128xf32> -> vector<16x128xf32>
    %304 = vector.broadcast %300 : vector<1x128xf32> to vector<16x128xf32>
    %305 = arith.mulf %304, %303 : vector<16x128xf32>
    %306 = arith.addf %295, %305 : vector<16x128xf32>
    %c24 = arith.constant 24 : index
    %307 = memref.load %arg1[%c24] : memref<98xf32, #tpu.memory_space<smem>>
    %c73 = arith.constant 73 : index
    %308 = memref.load %arg1[%c73] : memref<98xf32, #tpu.memory_space<smem>>
    %309 = vector.broadcast %307 : f32 to vector<1x128xf32>
    %310 = vector.broadcast %308 : f32 to vector<1x128xf32>
    %311 = arith.select %3, %309, %310 : vector<1x128xi1>, vector<1x128xf32>
    %312 = vector.broadcast %311 : vector<1x128xf32> to vector<16x128xf32>
    %313 = arith.mulf %312, %41 : vector<16x128xf32>
    %314 = arith.addf %306, %313 : vector<16x128xf32>
    %c31 = arith.constant 31 : index
    %315 = memref.load %arg1[%c31] : memref<98xf32, #tpu.memory_space<smem>>
    %c80 = arith.constant 80 : index
    %316 = memref.load %arg1[%c80] : memref<98xf32, #tpu.memory_space<smem>>
    %317 = vector.broadcast %315 : f32 to vector<1x128xf32>
    %318 = vector.broadcast %316 : f32 to vector<1x128xf32>
    %319 = arith.select %3, %317, %318 : vector<1x128xi1>, vector<1x128xf32>
    %320 = vector.extract_strided_slice %41 {offsets = [1, 0], sizes = [15, 128], strides = [1, 1]} : vector<16x128xf32> to vector<15x128xf32>
    %cst_30 = arith.constant 0.000000e+00 : f32
    %321 = vector.broadcast %cst_30 : f32 to vector<1x128xf32>
    %322 = tpu.concatenate %320, %321 in 0 : vector<15x128xf32>, vector<1x128xf32> -> vector<16x128xf32>
    %323 = vector.broadcast %319 : vector<1x128xf32> to vector<16x128xf32>
    %324 = arith.mulf %323, %322 : vector<16x128xf32>
    %325 = arith.addf %314, %324 : vector<16x128xf32>
    %c38 = arith.constant 38 : index
    %326 = memref.load %arg1[%c38] : memref<98xf32, #tpu.memory_space<smem>>
    %c87 = arith.constant 87 : index
    %327 = memref.load %arg1[%c87] : memref<98xf32, #tpu.memory_space<smem>>
    %328 = vector.broadcast %326 : f32 to vector<1x128xf32>
    %329 = vector.broadcast %327 : f32 to vector<1x128xf32>
    %330 = arith.select %3, %328, %329 : vector<1x128xi1>, vector<1x128xf32>
    %331 = vector.extract_strided_slice %41 {offsets = [2, 0], sizes = [14, 128], strides = [1, 1]} : vector<16x128xf32> to vector<14x128xf32>
    %cst_31 = arith.constant 0.000000e+00 : f32
    %332 = vector.broadcast %cst_31 : f32 to vector<2x128xf32>
    %333 = tpu.concatenate %331, %332 in 0 : vector<14x128xf32>, vector<2x128xf32> -> vector<16x128xf32>
    %334 = vector.broadcast %330 : vector<1x128xf32> to vector<16x128xf32>
    %335 = arith.mulf %334, %333 : vector<16x128xf32>
    %336 = arith.addf %325, %335 : vector<16x128xf32>
    %c45 = arith.constant 45 : index
    %337 = memref.load %arg1[%c45] : memref<98xf32, #tpu.memory_space<smem>>
    %c94 = arith.constant 94 : index
    %338 = memref.load %arg1[%c94] : memref<98xf32, #tpu.memory_space<smem>>
    %339 = vector.broadcast %337 : f32 to vector<1x128xf32>
    %340 = vector.broadcast %338 : f32 to vector<1x128xf32>
    %341 = arith.select %3, %339, %340 : vector<1x128xi1>, vector<1x128xf32>
    %342 = vector.extract_strided_slice %41 {offsets = [3, 0], sizes = [13, 128], strides = [1, 1]} : vector<16x128xf32> to vector<13x128xf32>
    %cst_32 = arith.constant 0.000000e+00 : f32
    %343 = vector.broadcast %cst_32 : f32 to vector<3x128xf32>
    %344 = tpu.concatenate %342, %343 in 0 : vector<13x128xf32>, vector<3x128xf32> -> vector<16x128xf32>
    %345 = vector.broadcast %341 : vector<1x128xf32> to vector<16x128xf32>
    %346 = arith.mulf %345, %344 : vector<16x128xf32>
    %347 = arith.addf %336, %346 : vector<16x128xf32>
    %348 = vector.extract_strided_slice %41 {offsets = [0, 1], sizes = [16, 127], strides = [1, 1]} : vector<16x128xf32> to vector<16x127xf32>
    %349 = vector.extract_strided_slice %41 {offsets = [0, 0], sizes = [16, 1], strides = [1, 1]} : vector<16x128xf32> to vector<16x1xf32>
    %350 = tpu.concatenate %348, %349 in 1 : vector<16x127xf32>, vector<16x1xf32> -> vector<16x128xf32>
    %c4 = arith.constant 4 : index
    %351 = memref.load %arg1[%c4] : memref<98xf32, #tpu.memory_space<smem>>
    %c53 = arith.constant 53 : index
    %352 = memref.load %arg1[%c53] : memref<98xf32, #tpu.memory_space<smem>>
    %353 = vector.broadcast %351 : f32 to vector<1x128xf32>
    %354 = vector.broadcast %352 : f32 to vector<1x128xf32>
    %355 = arith.select %3, %353, %354 : vector<1x128xi1>, vector<1x128xf32>
    %cst_33 = arith.constant 0.000000e+00 : f32
    %356 = vector.broadcast %cst_33 : f32 to vector<3x128xf32>
    %357 = vector.extract_strided_slice %350 {offsets = [0, 0], sizes = [13, 128], strides = [1, 1]} : vector<16x128xf32> to vector<13x128xf32>
    %358 = tpu.concatenate %356, %357 in 0 : vector<3x128xf32>, vector<13x128xf32> -> vector<16x128xf32>
    %359 = vector.broadcast %355 : vector<1x128xf32> to vector<16x128xf32>
    %360 = arith.mulf %359, %358 : vector<16x128xf32>
    %361 = arith.addf %347, %360 : vector<16x128xf32>
    %c11 = arith.constant 11 : index
    %362 = memref.load %arg1[%c11] : memref<98xf32, #tpu.memory_space<smem>>
    %c60 = arith.constant 60 : index
    %363 = memref.load %arg1[%c60] : memref<98xf32, #tpu.memory_space<smem>>
    %364 = vector.broadcast %362 : f32 to vector<1x128xf32>
    %365 = vector.broadcast %363 : f32 to vector<1x128xf32>
    %366 = arith.select %3, %364, %365 : vector<1x128xi1>, vector<1x128xf32>
    %cst_34 = arith.constant 0.000000e+00 : f32
    %367 = vector.broadcast %cst_34 : f32 to vector<2x128xf32>
    %368 = vector.extract_strided_slice %350 {offsets = [0, 0], sizes = [14, 128], strides = [1, 1]} : vector<16x128xf32> to vector<14x128xf32>
    %369 = tpu.concatenate %367, %368 in 0 : vector<2x128xf32>, vector<14x128xf32> -> vector<16x128xf32>
    %370 = vector.broadcast %366 : vector<1x128xf32> to vector<16x128xf32>
    %371 = arith.mulf %370, %369 : vector<16x128xf32>
    %372 = arith.addf %361, %371 : vector<16x128xf32>
    %c18 = arith.constant 18 : index
    %373 = memref.load %arg1[%c18] : memref<98xf32, #tpu.memory_space<smem>>
    %c67 = arith.constant 67 : index
    %374 = memref.load %arg1[%c67] : memref<98xf32, #tpu.memory_space<smem>>
    %375 = vector.broadcast %373 : f32 to vector<1x128xf32>
    %376 = vector.broadcast %374 : f32 to vector<1x128xf32>
    %377 = arith.select %3, %375, %376 : vector<1x128xi1>, vector<1x128xf32>
    %cst_35 = arith.constant 0.000000e+00 : f32
    %378 = vector.broadcast %cst_35 : f32 to vector<1x128xf32>
    %379 = vector.extract_strided_slice %350 {offsets = [0, 0], sizes = [15, 128], strides = [1, 1]} : vector<16x128xf32> to vector<15x128xf32>
    %380 = tpu.concatenate %378, %379 in 0 : vector<1x128xf32>, vector<15x128xf32> -> vector<16x128xf32>
    %381 = vector.broadcast %377 : vector<1x128xf32> to vector<16x128xf32>
    %382 = arith.mulf %381, %380 : vector<16x128xf32>
    %383 = arith.addf %372, %382 : vector<16x128xf32>
    %c25 = arith.constant 25 : index
    %384 = memref.load %arg1[%c25] : memref<98xf32, #tpu.memory_space<smem>>
    %c74 = arith.constant 74 : index
    %385 = memref.load %arg1[%c74] : memref<98xf32, #tpu.memory_space<smem>>
    %386 = vector.broadcast %384 : f32 to vector<1x128xf32>
    %387 = vector.broadcast %385 : f32 to vector<1x128xf32>
    %388 = arith.select %3, %386, %387 : vector<1x128xi1>, vector<1x128xf32>
    %389 = vector.broadcast %388 : vector<1x128xf32> to vector<16x128xf32>
    %390 = arith.mulf %389, %350 : vector<16x128xf32>
    %391 = arith.addf %383, %390 : vector<16x128xf32>
    %c32 = arith.constant 32 : index
    %392 = memref.load %arg1[%c32] : memref<98xf32, #tpu.memory_space<smem>>
    %c81 = arith.constant 81 : index
    %393 = memref.load %arg1[%c81] : memref<98xf32, #tpu.memory_space<smem>>
    %394 = vector.broadcast %392 : f32 to vector<1x128xf32>
    %395 = vector.broadcast %393 : f32 to vector<1x128xf32>
    %396 = arith.select %3, %394, %395 : vector<1x128xi1>, vector<1x128xf32>
    %397 = vector.extract_strided_slice %350 {offsets = [1, 0], sizes = [15, 128], strides = [1, 1]} : vector<16x128xf32> to vector<15x128xf32>
    %cst_36 = arith.constant 0.000000e+00 : f32
    %398 = vector.broadcast %cst_36 : f32 to vector<1x128xf32>
    %399 = tpu.concatenate %397, %398 in 0 : vector<15x128xf32>, vector<1x128xf32> -> vector<16x128xf32>
    %400 = vector.broadcast %396 : vector<1x128xf32> to vector<16x128xf32>
    %401 = arith.mulf %400, %399 : vector<16x128xf32>
    %402 = arith.addf %391, %401 : vector<16x128xf32>
    %c39 = arith.constant 39 : index
    %403 = memref.load %arg1[%c39] : memref<98xf32, #tpu.memory_space<smem>>
    %c88 = arith.constant 88 : index
    %404 = memref.load %arg1[%c88] : memref<98xf32, #tpu.memory_space<smem>>
    %405 = vector.broadcast %403 : f32 to vector<1x128xf32>
    %406 = vector.broadcast %404 : f32 to vector<1x128xf32>
    %407 = arith.select %3, %405, %406 : vector<1x128xi1>, vector<1x128xf32>
    %408 = vector.extract_strided_slice %350 {offsets = [2, 0], sizes = [14, 128], strides = [1, 1]} : vector<16x128xf32> to vector<14x128xf32>
    %cst_37 = arith.constant 0.000000e+00 : f32
    %409 = vector.broadcast %cst_37 : f32 to vector<2x128xf32>
    %410 = tpu.concatenate %408, %409 in 0 : vector<14x128xf32>, vector<2x128xf32> -> vector<16x128xf32>
    %411 = vector.broadcast %407 : vector<1x128xf32> to vector<16x128xf32>
    %412 = arith.mulf %411, %410 : vector<16x128xf32>
    %413 = arith.addf %402, %412 : vector<16x128xf32>
    %c46 = arith.constant 46 : index
    %414 = memref.load %arg1[%c46] : memref<98xf32, #tpu.memory_space<smem>>
    %c95 = arith.constant 95 : index
    %415 = memref.load %arg1[%c95] : memref<98xf32, #tpu.memory_space<smem>>
    %416 = vector.broadcast %414 : f32 to vector<1x128xf32>
    %417 = vector.broadcast %415 : f32 to vector<1x128xf32>
    %418 = arith.select %3, %416, %417 : vector<1x128xi1>, vector<1x128xf32>
    %419 = vector.extract_strided_slice %350 {offsets = [3, 0], sizes = [13, 128], strides = [1, 1]} : vector<16x128xf32> to vector<13x128xf32>
    %cst_38 = arith.constant 0.000000e+00 : f32
    %420 = vector.broadcast %cst_38 : f32 to vector<3x128xf32>
    %421 = tpu.concatenate %419, %420 in 0 : vector<13x128xf32>, vector<3x128xf32> -> vector<16x128xf32>
    %422 = vector.broadcast %418 : vector<1x128xf32> to vector<16x128xf32>
    %423 = arith.mulf %422, %421 : vector<16x128xf32>
    %424 = arith.addf %413, %423 : vector<16x128xf32>
    %425 = vector.extract_strided_slice %41 {offsets = [0, 2], sizes = [16, 126], strides = [1, 1]} : vector<16x128xf32> to vector<16x126xf32>
    %426 = vector.extract_strided_slice %41 {offsets = [0, 0], sizes = [16, 2], strides = [1, 1]} : vector<16x128xf32> to vector<16x2xf32>
    %427 = tpu.concatenate %425, %426 in 1 : vector<16x126xf32>, vector<16x2xf32> -> vector<16x128xf32>
    %c5 = arith.constant 5 : index
    %428 = memref.load %arg1[%c5] : memref<98xf32, #tpu.memory_space<smem>>
    %c54 = arith.constant 54 : index
    %429 = memref.load %arg1[%c54] : memref<98xf32, #tpu.memory_space<smem>>
    %430 = vector.broadcast %428 : f32 to vector<1x128xf32>
    %431 = vector.broadcast %429 : f32 to vector<1x128xf32>
    %432 = arith.select %3, %430, %431 : vector<1x128xi1>, vector<1x128xf32>
    %cst_39 = arith.constant 0.000000e+00 : f32
    %433 = vector.broadcast %cst_39 : f32 to vector<3x128xf32>
    %434 = vector.extract_strided_slice %427 {offsets = [0, 0], sizes = [13, 128], strides = [1, 1]} : vector<16x128xf32> to vector<13x128xf32>
    %435 = tpu.concatenate %433, %434 in 0 : vector<3x128xf32>, vector<13x128xf32> -> vector<16x128xf32>
    %436 = vector.broadcast %432 : vector<1x128xf32> to vector<16x128xf32>
    %437 = arith.mulf %436, %435 : vector<16x128xf32>
    %438 = arith.addf %424, %437 : vector<16x128xf32>
    %c12 = arith.constant 12 : index
    %439 = memref.load %arg1[%c12] : memref<98xf32, #tpu.memory_space<smem>>
    %c61 = arith.constant 61 : index
    %440 = memref.load %arg1[%c61] : memref<98xf32, #tpu.memory_space<smem>>
    %441 = vector.broadcast %439 : f32 to vector<1x128xf32>
    %442 = vector.broadcast %440 : f32 to vector<1x128xf32>
    %443 = arith.select %3, %441, %442 : vector<1x128xi1>, vector<1x128xf32>
    %cst_40 = arith.constant 0.000000e+00 : f32
    %444 = vector.broadcast %cst_40 : f32 to vector<2x128xf32>
    %445 = vector.extract_strided_slice %427 {offsets = [0, 0], sizes = [14, 128], strides = [1, 1]} : vector<16x128xf32> to vector<14x128xf32>
    %446 = tpu.concatenate %444, %445 in 0 : vector<2x128xf32>, vector<14x128xf32> -> vector<16x128xf32>
    %447 = vector.broadcast %443 : vector<1x128xf32> to vector<16x128xf32>
    %448 = arith.mulf %447, %446 : vector<16x128xf32>
    %449 = arith.addf %438, %448 : vector<16x128xf32>
    %c19 = arith.constant 19 : index
    %450 = memref.load %arg1[%c19] : memref<98xf32, #tpu.memory_space<smem>>
    %c68 = arith.constant 68 : index
    %451 = memref.load %arg1[%c68] : memref<98xf32, #tpu.memory_space<smem>>
    %452 = vector.broadcast %450 : f32 to vector<1x128xf32>
    %453 = vector.broadcast %451 : f32 to vector<1x128xf32>
    %454 = arith.select %3, %452, %453 : vector<1x128xi1>, vector<1x128xf32>
    %cst_41 = arith.constant 0.000000e+00 : f32
    %455 = vector.broadcast %cst_41 : f32 to vector<1x128xf32>
    %456 = vector.extract_strided_slice %427 {offsets = [0, 0], sizes = [15, 128], strides = [1, 1]} : vector<16x128xf32> to vector<15x128xf32>
    %457 = tpu.concatenate %455, %456 in 0 : vector<1x128xf32>, vector<15x128xf32> -> vector<16x128xf32>
    %458 = vector.broadcast %454 : vector<1x128xf32> to vector<16x128xf32>
    %459 = arith.mulf %458, %457 : vector<16x128xf32>
    %460 = arith.addf %449, %459 : vector<16x128xf32>
    %c26 = arith.constant 26 : index
    %461 = memref.load %arg1[%c26] : memref<98xf32, #tpu.memory_space<smem>>
    %c75 = arith.constant 75 : index
    %462 = memref.load %arg1[%c75] : memref<98xf32, #tpu.memory_space<smem>>
    %463 = vector.broadcast %461 : f32 to vector<1x128xf32>
    %464 = vector.broadcast %462 : f32 to vector<1x128xf32>
    %465 = arith.select %3, %463, %464 : vector<1x128xi1>, vector<1x128xf32>
    %466 = vector.broadcast %465 : vector<1x128xf32> to vector<16x128xf32>
    %467 = arith.mulf %466, %427 : vector<16x128xf32>
    %468 = arith.addf %460, %467 : vector<16x128xf32>
    %c33 = arith.constant 33 : index
    %469 = memref.load %arg1[%c33] : memref<98xf32, #tpu.memory_space<smem>>
    %c82 = arith.constant 82 : index
    %470 = memref.load %arg1[%c82] : memref<98xf32, #tpu.memory_space<smem>>
    %471 = vector.broadcast %469 : f32 to vector<1x128xf32>
    %472 = vector.broadcast %470 : f32 to vector<1x128xf32>
    %473 = arith.select %3, %471, %472 : vector<1x128xi1>, vector<1x128xf32>
    %474 = vector.extract_strided_slice %427 {offsets = [1, 0], sizes = [15, 128], strides = [1, 1]} : vector<16x128xf32> to vector<15x128xf32>
    %cst_42 = arith.constant 0.000000e+00 : f32
    %475 = vector.broadcast %cst_42 : f32 to vector<1x128xf32>
    %476 = tpu.concatenate %474, %475 in 0 : vector<15x128xf32>, vector<1x128xf32> -> vector<16x128xf32>
    %477 = vector.broadcast %473 : vector<1x128xf32> to vector<16x128xf32>
    %478 = arith.mulf %477, %476 : vector<16x128xf32>
    %479 = arith.addf %468, %478 : vector<16x128xf32>
    %c40 = arith.constant 40 : index
    %480 = memref.load %arg1[%c40] : memref<98xf32, #tpu.memory_space<smem>>
    %c89 = arith.constant 89 : index
    %481 = memref.load %arg1[%c89] : memref<98xf32, #tpu.memory_space<smem>>
    %482 = vector.broadcast %480 : f32 to vector<1x128xf32>
    %483 = vector.broadcast %481 : f32 to vector<1x128xf32>
    %484 = arith.select %3, %482, %483 : vector<1x128xi1>, vector<1x128xf32>
    %485 = vector.extract_strided_slice %427 {offsets = [2, 0], sizes = [14, 128], strides = [1, 1]} : vector<16x128xf32> to vector<14x128xf32>
    %cst_43 = arith.constant 0.000000e+00 : f32
    %486 = vector.broadcast %cst_43 : f32 to vector<2x128xf32>
    %487 = tpu.concatenate %485, %486 in 0 : vector<14x128xf32>, vector<2x128xf32> -> vector<16x128xf32>
    %488 = vector.broadcast %484 : vector<1x128xf32> to vector<16x128xf32>
    %489 = arith.mulf %488, %487 : vector<16x128xf32>
    %490 = arith.addf %479, %489 : vector<16x128xf32>
    %c47 = arith.constant 47 : index
    %491 = memref.load %arg1[%c47] : memref<98xf32, #tpu.memory_space<smem>>
    %c96 = arith.constant 96 : index
    %492 = memref.load %arg1[%c96] : memref<98xf32, #tpu.memory_space<smem>>
    %493 = vector.broadcast %491 : f32 to vector<1x128xf32>
    %494 = vector.broadcast %492 : f32 to vector<1x128xf32>
    %495 = arith.select %3, %493, %494 : vector<1x128xi1>, vector<1x128xf32>
    %496 = vector.extract_strided_slice %427 {offsets = [3, 0], sizes = [13, 128], strides = [1, 1]} : vector<16x128xf32> to vector<13x128xf32>
    %cst_44 = arith.constant 0.000000e+00 : f32
    %497 = vector.broadcast %cst_44 : f32 to vector<3x128xf32>
    %498 = tpu.concatenate %496, %497 in 0 : vector<13x128xf32>, vector<3x128xf32> -> vector<16x128xf32>
    %499 = vector.broadcast %495 : vector<1x128xf32> to vector<16x128xf32>
    %500 = arith.mulf %499, %498 : vector<16x128xf32>
    %501 = arith.addf %490, %500 : vector<16x128xf32>
    %502 = vector.extract_strided_slice %41 {offsets = [0, 3], sizes = [16, 125], strides = [1, 1]} : vector<16x128xf32> to vector<16x125xf32>
    %503 = vector.extract_strided_slice %41 {offsets = [0, 0], sizes = [16, 3], strides = [1, 1]} : vector<16x128xf32> to vector<16x3xf32>
    %504 = tpu.concatenate %502, %503 in 1 : vector<16x125xf32>, vector<16x3xf32> -> vector<16x128xf32>
    %c6 = arith.constant 6 : index
    %505 = memref.load %arg1[%c6] : memref<98xf32, #tpu.memory_space<smem>>
    %c55 = arith.constant 55 : index
    %506 = memref.load %arg1[%c55] : memref<98xf32, #tpu.memory_space<smem>>
    %507 = vector.broadcast %505 : f32 to vector<1x128xf32>
    %508 = vector.broadcast %506 : f32 to vector<1x128xf32>
    %509 = arith.select %3, %507, %508 : vector<1x128xi1>, vector<1x128xf32>
    %cst_45 = arith.constant 0.000000e+00 : f32
    %510 = vector.broadcast %cst_45 : f32 to vector<3x128xf32>
    %511 = vector.extract_strided_slice %504 {offsets = [0, 0], sizes = [13, 128], strides = [1, 1]} : vector<16x128xf32> to vector<13x128xf32>
    %512 = tpu.concatenate %510, %511 in 0 : vector<3x128xf32>, vector<13x128xf32> -> vector<16x128xf32>
    %513 = vector.broadcast %509 : vector<1x128xf32> to vector<16x128xf32>
    %514 = arith.mulf %513, %512 : vector<16x128xf32>
    %515 = arith.addf %501, %514 : vector<16x128xf32>
    %c13 = arith.constant 13 : index
    %516 = memref.load %arg1[%c13] : memref<98xf32, #tpu.memory_space<smem>>
    %c62 = arith.constant 62 : index
    %517 = memref.load %arg1[%c62] : memref<98xf32, #tpu.memory_space<smem>>
    %518 = vector.broadcast %516 : f32 to vector<1x128xf32>
    %519 = vector.broadcast %517 : f32 to vector<1x128xf32>
    %520 = arith.select %3, %518, %519 : vector<1x128xi1>, vector<1x128xf32>
    %cst_46 = arith.constant 0.000000e+00 : f32
    %521 = vector.broadcast %cst_46 : f32 to vector<2x128xf32>
    %522 = vector.extract_strided_slice %504 {offsets = [0, 0], sizes = [14, 128], strides = [1, 1]} : vector<16x128xf32> to vector<14x128xf32>
    %523 = tpu.concatenate %521, %522 in 0 : vector<2x128xf32>, vector<14x128xf32> -> vector<16x128xf32>
    %524 = vector.broadcast %520 : vector<1x128xf32> to vector<16x128xf32>
    %525 = arith.mulf %524, %523 : vector<16x128xf32>
    %526 = arith.addf %515, %525 : vector<16x128xf32>
    %c20 = arith.constant 20 : index
    %527 = memref.load %arg1[%c20] : memref<98xf32, #tpu.memory_space<smem>>
    %c69 = arith.constant 69 : index
    %528 = memref.load %arg1[%c69] : memref<98xf32, #tpu.memory_space<smem>>
    %529 = vector.broadcast %527 : f32 to vector<1x128xf32>
    %530 = vector.broadcast %528 : f32 to vector<1x128xf32>
    %531 = arith.select %3, %529, %530 : vector<1x128xi1>, vector<1x128xf32>
    %cst_47 = arith.constant 0.000000e+00 : f32
    %532 = vector.broadcast %cst_47 : f32 to vector<1x128xf32>
    %533 = vector.extract_strided_slice %504 {offsets = [0, 0], sizes = [15, 128], strides = [1, 1]} : vector<16x128xf32> to vector<15x128xf32>
    %534 = tpu.concatenate %532, %533 in 0 : vector<1x128xf32>, vector<15x128xf32> -> vector<16x128xf32>
    %535 = vector.broadcast %531 : vector<1x128xf32> to vector<16x128xf32>
    %536 = arith.mulf %535, %534 : vector<16x128xf32>
    %537 = arith.addf %526, %536 : vector<16x128xf32>
    %c27 = arith.constant 27 : index
    %538 = memref.load %arg1[%c27] : memref<98xf32, #tpu.memory_space<smem>>
    %c76 = arith.constant 76 : index
    %539 = memref.load %arg1[%c76] : memref<98xf32, #tpu.memory_space<smem>>
    %540 = vector.broadcast %538 : f32 to vector<1x128xf32>
    %541 = vector.broadcast %539 : f32 to vector<1x128xf32>
    %542 = arith.select %3, %540, %541 : vector<1x128xi1>, vector<1x128xf32>
    %543 = vector.broadcast %542 : vector<1x128xf32> to vector<16x128xf32>
    %544 = arith.mulf %543, %504 : vector<16x128xf32>
    %545 = arith.addf %537, %544 : vector<16x128xf32>
    %c34 = arith.constant 34 : index
    %546 = memref.load %arg1[%c34] : memref<98xf32, #tpu.memory_space<smem>>
    %c83 = arith.constant 83 : index
    %547 = memref.load %arg1[%c83] : memref<98xf32, #tpu.memory_space<smem>>
    %548 = vector.broadcast %546 : f32 to vector<1x128xf32>
    %549 = vector.broadcast %547 : f32 to vector<1x128xf32>
    %550 = arith.select %3, %548, %549 : vector<1x128xi1>, vector<1x128xf32>
    %551 = vector.extract_strided_slice %504 {offsets = [1, 0], sizes = [15, 128], strides = [1, 1]} : vector<16x128xf32> to vector<15x128xf32>
    %cst_48 = arith.constant 0.000000e+00 : f32
    %552 = vector.broadcast %cst_48 : f32 to vector<1x128xf32>
    %553 = tpu.concatenate %551, %552 in 0 : vector<15x128xf32>, vector<1x128xf32> -> vector<16x128xf32>
    %554 = vector.broadcast %550 : vector<1x128xf32> to vector<16x128xf32>
    %555 = arith.mulf %554, %553 : vector<16x128xf32>
    %556 = arith.addf %545, %555 : vector<16x128xf32>
    %c41 = arith.constant 41 : index
    %557 = memref.load %arg1[%c41] : memref<98xf32, #tpu.memory_space<smem>>
    %c90 = arith.constant 90 : index
    %558 = memref.load %arg1[%c90] : memref<98xf32, #tpu.memory_space<smem>>
    %559 = vector.broadcast %557 : f32 to vector<1x128xf32>
    %560 = vector.broadcast %558 : f32 to vector<1x128xf32>
    %561 = arith.select %3, %559, %560 : vector<1x128xi1>, vector<1x128xf32>
    %562 = vector.extract_strided_slice %504 {offsets = [2, 0], sizes = [14, 128], strides = [1, 1]} : vector<16x128xf32> to vector<14x128xf32>
    %cst_49 = arith.constant 0.000000e+00 : f32
    %563 = vector.broadcast %cst_49 : f32 to vector<2x128xf32>
    %564 = tpu.concatenate %562, %563 in 0 : vector<14x128xf32>, vector<2x128xf32> -> vector<16x128xf32>
    %565 = vector.broadcast %561 : vector<1x128xf32> to vector<16x128xf32>
    %566 = arith.mulf %565, %564 : vector<16x128xf32>
    %567 = arith.addf %556, %566 : vector<16x128xf32>
    %c48 = arith.constant 48 : index
    %568 = memref.load %arg1[%c48] : memref<98xf32, #tpu.memory_space<smem>>
    %c97 = arith.constant 97 : index
    %569 = memref.load %arg1[%c97] : memref<98xf32, #tpu.memory_space<smem>>
    %570 = vector.broadcast %568 : f32 to vector<1x128xf32>
    %571 = vector.broadcast %569 : f32 to vector<1x128xf32>
    %572 = arith.select %3, %570, %571 : vector<1x128xi1>, vector<1x128xf32>
    %573 = vector.extract_strided_slice %504 {offsets = [3, 0], sizes = [13, 128], strides = [1, 1]} : vector<16x128xf32> to vector<13x128xf32>
    %cst_50 = arith.constant 0.000000e+00 : f32
    %574 = vector.broadcast %cst_50 : f32 to vector<3x128xf32>
    %575 = tpu.concatenate %573, %574 in 0 : vector<13x128xf32>, vector<3x128xf32> -> vector<16x128xf32>
    %576 = vector.broadcast %572 : vector<1x128xf32> to vector<16x128xf32>
    %577 = arith.mulf %576, %575 : vector<16x128xf32>
    %578 = arith.addf %567, %577 : vector<16x128xf32>
    %579 = vector.broadcast %14 : vector<1x128xf32> to vector<16x128xf32>
    %580 = arith.mulf %578, %579 : vector<16x128xf32>
    %581 = vector.shape_cast %580 : vector<16x128xf32> to vector<1x16x128xf32>
    %cst_51 = arith.constant dense<0.000000e+00> : vector<1xf32>
    %582 = vector.multi_reduction <add>, %581, %cst_51 [1, 2] : vector<1x16x128xf32> to vector<1xf32>
    %583 = vector.shape_cast %582 : vector<1xf32> to vector<1x1x1xf32>
    %584 = vector.extract %583[0, 0, 0] : f32 from vector<1x1x1xf32>
    %585 = arith.mulf %578, %578 : vector<16x128xf32>
    %586 = vector.broadcast %14 : vector<1x128xf32> to vector<16x128xf32>
    %587 = arith.mulf %585, %586 : vector<16x128xf32>
    %588 = vector.shape_cast %587 : vector<16x128xf32> to vector<1x16x128xf32>
    %cst_52 = arith.constant dense<0.000000e+00> : vector<1xf32>
    %589 = vector.multi_reduction <add>, %588, %cst_52 [1, 2] : vector<1x16x128xf32> to vector<1xf32>
    %590 = vector.shape_cast %589 : vector<1xf32> to vector<1x1x1xf32>
    %591 = vector.extract %590[0, 0, 0] : f32 from vector<1x1x1xf32>
    %cst_53 = arith.constant 0.001953125 : f32
    %592 = arith.mulf %584, %cst_53 : f32
    %cst_54 = arith.constant 0.001953125 : f32
    %593 = arith.mulf %591, %cst_54 : f32
    %594 = arith.mulf %592, %592 : f32
    %595 = arith.subf %593, %594 : f32
    %cst_55 = arith.constant 9.99999974E-6 : f32
    %596 = arith.addf %595, %cst_55 : f32
    %597 = math.rsqrt %596 : f32
    %598 = vector.broadcast %15 : vector<1x128xf32> to vector<16x128xf32>
    %599 = arith.mulf %578, %598 : vector<16x128xf32>
    %600 = vector.shape_cast %599 : vector<16x128xf32> to vector<1x16x128xf32>
    %cst_56 = arith.constant dense<0.000000e+00> : vector<1xf32>
    %601 = vector.multi_reduction <add>, %600, %cst_56 [1, 2] : vector<1x16x128xf32> to vector<1xf32>
    %602 = vector.shape_cast %601 : vector<1xf32> to vector<1x1x1xf32>
    %603 = vector.extract %602[0, 0, 0] : f32 from vector<1x1x1xf32>
    %604 = arith.mulf %578, %578 : vector<16x128xf32>
    %605 = vector.broadcast %15 : vector<1x128xf32> to vector<16x128xf32>
    %606 = arith.mulf %604, %605 : vector<16x128xf32>
    %607 = vector.shape_cast %606 : vector<16x128xf32> to vector<1x16x128xf32>
    %cst_57 = arith.constant dense<0.000000e+00> : vector<1xf32>
    %608 = vector.multi_reduction <add>, %607, %cst_57 [1, 2] : vector<1x16x128xf32> to vector<1xf32>
    %609 = vector.shape_cast %608 : vector<1xf32> to vector<1x1x1xf32>
    %610 = vector.extract %609[0, 0, 0] : f32 from vector<1x1x1xf32>
    %cst_58 = arith.constant 0.001953125 : f32
    %611 = arith.mulf %603, %cst_58 : f32
    %cst_59 = arith.constant 0.001953125 : f32
    %612 = arith.mulf %610, %cst_59 : f32
    %613 = arith.mulf %611, %611 : f32
    %614 = arith.subf %612, %613 : f32
    %cst_60 = arith.constant 9.99999974E-6 : f32
    %615 = arith.addf %614, %cst_60 : f32
    %616 = math.rsqrt %615 : f32
    %c0_61 = arith.constant 0 : index
    %617 = memref.load %arg2[%c0_61] : memref<2xf32, #tpu.memory_space<smem>>
    %618 = arith.mulf %617, %597 : f32
    %c1_62 = arith.constant 1 : index
    %619 = memref.load %arg2[%c1_62] : memref<2xf32, #tpu.memory_space<smem>>
    %620 = arith.mulf %619, %616 : f32
    %c0_63 = arith.constant 0 : index
    %621 = memref.load %arg3[%c0_63] : memref<2xf32, #tpu.memory_space<smem>>
    %622 = arith.mulf %592, %618 : f32
    %623 = arith.subf %621, %622 : f32
    %c1_64 = arith.constant 1 : index
    %624 = memref.load %arg3[%c1_64] : memref<2xf32, #tpu.memory_space<smem>>
    %625 = arith.mulf %611, %620 : f32
    %626 = arith.subf %624, %625 : f32
    %627 = vector.broadcast %618 : f32 to vector<1x128xf32>
    %628 = vector.broadcast %620 : f32 to vector<1x128xf32>
    %629 = arith.select %3, %627, %628 : vector<1x128xi1>, vector<1x128xf32>
    %630 = vector.broadcast %623 : f32 to vector<1x128xf32>
    %631 = vector.broadcast %626 : f32 to vector<1x128xf32>
    %632 = arith.select %3, %630, %631 : vector<1x128xi1>, vector<1x128xf32>
    %633 = vector.broadcast %629 : vector<1x128xf32> to vector<16x128xf32>
    %634 = arith.mulf %578, %633 : vector<16x128xf32>
    %635 = vector.broadcast %632 : vector<1x128xf32> to vector<16x128xf32>
    %636 = arith.addf %634, %635 : vector<16x128xf32>
    %cst_65 = arith.constant 0.000000e+00 : f32
    %637 = vector.broadcast %cst_65 : f32 to vector<16x128xf32>
    %638 = arith.maximumf %636, %637 : vector<16x128xf32>
    %639 = vector.broadcast %10 : vector<1x128xf32> to vector<16x128xf32>
    %640 = arith.mulf %638, %639 : vector<16x128xf32>
    %cst_66 = arith.constant 0.000000e+00 : f32
    %641 = vector.broadcast %cst_66 : f32 to vector<16x128xf32>
    %642 = vector.extract_strided_slice %640 {offsets = [0, 125], sizes = [16, 3], strides = [1, 1]} : vector<16x128xf32> to vector<16x3xf32>
    %643 = vector.extract_strided_slice %640 {offsets = [0, 0], sizes = [16, 125], strides = [1, 1]} : vector<16x128xf32> to vector<16x125xf32>
    %644 = tpu.concatenate %642, %643 in 1 : vector<16x3xf32>, vector<16x125xf32> -> vector<16x128xf32>
    %c0_67 = arith.constant 0 : index
    %645 = memref.load %arg1[%c0_67] : memref<98xf32, #tpu.memory_space<smem>>
    %c49_68 = arith.constant 49 : index
    %646 = memref.load %arg1[%c49_68] : memref<98xf32, #tpu.memory_space<smem>>
    %647 = vector.broadcast %645 : f32 to vector<1x128xf32>
    %648 = vector.broadcast %646 : f32 to vector<1x128xf32>
    %649 = arith.select %3, %647, %648 : vector<1x128xi1>, vector<1x128xf32>
    %cst_69 = arith.constant 0.000000e+00 : f32
    %650 = vector.broadcast %cst_69 : f32 to vector<3x128xf32>
    %651 = vector.extract_strided_slice %644 {offsets = [0, 0], sizes = [13, 128], strides = [1, 1]} : vector<16x128xf32> to vector<13x128xf32>
    %652 = tpu.concatenate %650, %651 in 0 : vector<3x128xf32>, vector<13x128xf32> -> vector<16x128xf32>
    %653 = vector.broadcast %649 : vector<1x128xf32> to vector<16x128xf32>
    %654 = arith.mulf %653, %652 : vector<16x128xf32>
    %655 = arith.addf %641, %654 : vector<16x128xf32>
    %c7_70 = arith.constant 7 : index
    %656 = memref.load %arg1[%c7_70] : memref<98xf32, #tpu.memory_space<smem>>
    %c56_71 = arith.constant 56 : index
    %657 = memref.load %arg1[%c56_71] : memref<98xf32, #tpu.memory_space<smem>>
    %658 = vector.broadcast %656 : f32 to vector<1x128xf32>
    %659 = vector.broadcast %657 : f32 to vector<1x128xf32>
    %660 = arith.select %3, %658, %659 : vector<1x128xi1>, vector<1x128xf32>
    %cst_72 = arith.constant 0.000000e+00 : f32
    %661 = vector.broadcast %cst_72 : f32 to vector<2x128xf32>
    %662 = vector.extract_strided_slice %644 {offsets = [0, 0], sizes = [14, 128], strides = [1, 1]} : vector<16x128xf32> to vector<14x128xf32>
    %663 = tpu.concatenate %661, %662 in 0 : vector<2x128xf32>, vector<14x128xf32> -> vector<16x128xf32>
    %664 = vector.broadcast %660 : vector<1x128xf32> to vector<16x128xf32>
    %665 = arith.mulf %664, %663 : vector<16x128xf32>
    %666 = arith.addf %655, %665 : vector<16x128xf32>
    %c14_73 = arith.constant 14 : index
    %667 = memref.load %arg1[%c14_73] : memref<98xf32, #tpu.memory_space<smem>>
    %c63_74 = arith.constant 63 : index
    %668 = memref.load %arg1[%c63_74] : memref<98xf32, #tpu.memory_space<smem>>
    %669 = vector.broadcast %667 : f32 to vector<1x128xf32>
    %670 = vector.broadcast %668 : f32 to vector<1x128xf32>
    %671 = arith.select %3, %669, %670 : vector<1x128xi1>, vector<1x128xf32>
    %cst_75 = arith.constant 0.000000e+00 : f32
    %672 = vector.broadcast %cst_75 : f32 to vector<1x128xf32>
    %673 = vector.extract_strided_slice %644 {offsets = [0, 0], sizes = [15, 128], strides = [1, 1]} : vector<16x128xf32> to vector<15x128xf32>
    %674 = tpu.concatenate %672, %673 in 0 : vector<1x128xf32>, vector<15x128xf32> -> vector<16x128xf32>
    %675 = vector.broadcast %671 : vector<1x128xf32> to vector<16x128xf32>
    %676 = arith.mulf %675, %674 : vector<16x128xf32>
    %677 = arith.addf %666, %676 : vector<16x128xf32>
    %c21_76 = arith.constant 21 : index
    %678 = memref.load %arg1[%c21_76] : memref<98xf32, #tpu.memory_space<smem>>
    %c70_77 = arith.constant 70 : index
    %679 = memref.load %arg1[%c70_77] : memref<98xf32, #tpu.memory_space<smem>>
    %680 = vector.broadcast %678 : f32 to vector<1x128xf32>
    %681 = vector.broadcast %679 : f32 to vector<1x128xf32>
    %682 = arith.select %3, %680, %681 : vector<1x128xi1>, vector<1x128xf32>
    %683 = vector.broadcast %682 : vector<1x128xf32> to vector<16x128xf32>
    %684 = arith.mulf %683, %644 : vector<16x128xf32>
    %685 = arith.addf %677, %684 : vector<16x128xf32>
    %c28_78 = arith.constant 28 : index
    %686 = memref.load %arg1[%c28_78] : memref<98xf32, #tpu.memory_space<smem>>
    %c77_79 = arith.constant 77 : index
    %687 = memref.load %arg1[%c77_79] : memref<98xf32, #tpu.memory_space<smem>>
    %688 = vector.broadcast %686 : f32 to vector<1x128xf32>
    %689 = vector.broadcast %687 : f32 to vector<1x128xf32>
    %690 = arith.select %3, %688, %689 : vector<1x128xi1>, vector<1x128xf32>
    %691 = vector.extract_strided_slice %644 {offsets = [1, 0], sizes = [15, 128], strides = [1, 1]} : vector<16x128xf32> to vector<15x128xf32>
    %cst_80 = arith.constant 0.000000e+00 : f32
    %692 = vector.broadcast %cst_80 : f32 to vector<1x128xf32>
    %693 = tpu.concatenate %691, %692 in 0 : vector<15x128xf32>, vector<1x128xf32> -> vector<16x128xf32>
    %694 = vector.broadcast %690 : vector<1x128xf32> to vector<16x128xf32>
    %695 = arith.mulf %694, %693 : vector<16x128xf32>
    %696 = arith.addf %685, %695 : vector<16x128xf32>
    %c35_81 = arith.constant 35 : index
    %697 = memref.load %arg1[%c35_81] : memref<98xf32, #tpu.memory_space<smem>>
    %c84_82 = arith.constant 84 : index
    %698 = memref.load %arg1[%c84_82] : memref<98xf32, #tpu.memory_space<smem>>
    %699 = vector.broadcast %697 : f32 to vector<1x128xf32>
    %700 = vector.broadcast %698 : f32 to vector<1x128xf32>
    %701 = arith.select %3, %699, %700 : vector<1x128xi1>, vector<1x128xf32>
    %702 = vector.extract_strided_slice %644 {offsets = [2, 0], sizes = [14, 128], strides = [1, 1]} : vector<16x128xf32> to vector<14x128xf32>
    %cst_83 = arith.constant 0.000000e+00 : f32
    %703 = vector.broadcast %cst_83 : f32 to vector<2x128xf32>
    %704 = tpu.concatenate %702, %703 in 0 : vector<14x128xf32>, vector<2x128xf32> -> vector<16x128xf32>
    %705 = vector.broadcast %701 : vector<1x128xf32> to vector<16x128xf32>
    %706 = arith.mulf %705, %704 : vector<16x128xf32>
    %707 = arith.addf %696, %706 : vector<16x128xf32>
    %c42_84 = arith.constant 42 : index
    %708 = memref.load %arg1[%c42_84] : memref<98xf32, #tpu.memory_space<smem>>
    %c91_85 = arith.constant 91 : index
    %709 = memref.load %arg1[%c91_85] : memref<98xf32, #tpu.memory_space<smem>>
    %710 = vector.broadcast %708 : f32 to vector<1x128xf32>
    %711 = vector.broadcast %709 : f32 to vector<1x128xf32>
    %712 = arith.select %3, %710, %711 : vector<1x128xi1>, vector<1x128xf32>
    %713 = vector.extract_strided_slice %644 {offsets = [3, 0], sizes = [13, 128], strides = [1, 1]} : vector<16x128xf32> to vector<13x128xf32>
    %cst_86 = arith.constant 0.000000e+00 : f32
    %714 = vector.broadcast %cst_86 : f32 to vector<3x128xf32>
    %715 = tpu.concatenate %713, %714 in 0 : vector<13x128xf32>, vector<3x128xf32> -> vector<16x128xf32>
    %716 = vector.broadcast %712 : vector<1x128xf32> to vector<16x128xf32>
    %717 = arith.mulf %716, %715 : vector<16x128xf32>
    %718 = arith.addf %707, %717 : vector<16x128xf32>
    %719 = vector.extract_strided_slice %640 {offsets = [0, 126], sizes = [16, 2], strides = [1, 1]} : vector<16x128xf32> to vector<16x2xf32>
    %720 = vector.extract_strided_slice %640 {offsets = [0, 0], sizes = [16, 126], strides = [1, 1]} : vector<16x128xf32> to vector<16x126xf32>
    %721 = tpu.concatenate %719, %720 in 1 : vector<16x2xf32>, vector<16x126xf32> -> vector<16x128xf32>
    %c1_87 = arith.constant 1 : index
    %722 = memref.load %arg1[%c1_87] : memref<98xf32, #tpu.memory_space<smem>>
    %c50_88 = arith.constant 50 : index
    %723 = memref.load %arg1[%c50_88] : memref<98xf32, #tpu.memory_space<smem>>
    %724 = vector.broadcast %722 : f32 to vector<1x128xf32>
    %725 = vector.broadcast %723 : f32 to vector<1x128xf32>
    %726 = arith.select %3, %724, %725 : vector<1x128xi1>, vector<1x128xf32>
    %cst_89 = arith.constant 0.000000e+00 : f32
    %727 = vector.broadcast %cst_89 : f32 to vector<3x128xf32>
    %728 = vector.extract_strided_slice %721 {offsets = [0, 0], sizes = [13, 128], strides = [1, 1]} : vector<16x128xf32> to vector<13x128xf32>
    %729 = tpu.concatenate %727, %728 in 0 : vector<3x128xf32>, vector<13x128xf32> -> vector<16x128xf32>
    %730 = vector.broadcast %726 : vector<1x128xf32> to vector<16x128xf32>
    %731 = arith.mulf %730, %729 : vector<16x128xf32>
    %732 = arith.addf %718, %731 : vector<16x128xf32>
    %c8_90 = arith.constant 8 : index
    %733 = memref.load %arg1[%c8_90] : memref<98xf32, #tpu.memory_space<smem>>
    %c57_91 = arith.constant 57 : index
    %734 = memref.load %arg1[%c57_91] : memref<98xf32, #tpu.memory_space<smem>>
    %735 = vector.broadcast %733 : f32 to vector<1x128xf32>
    %736 = vector.broadcast %734 : f32 to vector<1x128xf32>
    %737 = arith.select %3, %735, %736 : vector<1x128xi1>, vector<1x128xf32>
    %cst_92 = arith.constant 0.000000e+00 : f32
    %738 = vector.broadcast %cst_92 : f32 to vector<2x128xf32>
    %739 = vector.extract_strided_slice %721 {offsets = [0, 0], sizes = [14, 128], strides = [1, 1]} : vector<16x128xf32> to vector<14x128xf32>
    %740 = tpu.concatenate %738, %739 in 0 : vector<2x128xf32>, vector<14x128xf32> -> vector<16x128xf32>
    %741 = vector.broadcast %737 : vector<1x128xf32> to vector<16x128xf32>
    %742 = arith.mulf %741, %740 : vector<16x128xf32>
    %743 = arith.addf %732, %742 : vector<16x128xf32>
    %c15_93 = arith.constant 15 : index
    %744 = memref.load %arg1[%c15_93] : memref<98xf32, #tpu.memory_space<smem>>
    %c64_94 = arith.constant 64 : index
    %745 = memref.load %arg1[%c64_94] : memref<98xf32, #tpu.memory_space<smem>>
    %746 = vector.broadcast %744 : f32 to vector<1x128xf32>
    %747 = vector.broadcast %745 : f32 to vector<1x128xf32>
    %748 = arith.select %3, %746, %747 : vector<1x128xi1>, vector<1x128xf32>
    %cst_95 = arith.constant 0.000000e+00 : f32
    %749 = vector.broadcast %cst_95 : f32 to vector<1x128xf32>
    %750 = vector.extract_strided_slice %721 {offsets = [0, 0], sizes = [15, 128], strides = [1, 1]} : vector<16x128xf32> to vector<15x128xf32>
    %751 = tpu.concatenate %749, %750 in 0 : vector<1x128xf32>, vector<15x128xf32> -> vector<16x128xf32>
    %752 = vector.broadcast %748 : vector<1x128xf32> to vector<16x128xf32>
    %753 = arith.mulf %752, %751 : vector<16x128xf32>
    %754 = arith.addf %743, %753 : vector<16x128xf32>
    %c22_96 = arith.constant 22 : index
    %755 = memref.load %arg1[%c22_96] : memref<98xf32, #tpu.memory_space<smem>>
    %c71_97 = arith.constant 71 : index
    %756 = memref.load %arg1[%c71_97] : memref<98xf32, #tpu.memory_space<smem>>
    %757 = vector.broadcast %755 : f32 to vector<1x128xf32>
    %758 = vector.broadcast %756 : f32 to vector<1x128xf32>
    %759 = arith.select %3, %757, %758 : vector<1x128xi1>, vector<1x128xf32>
    %760 = vector.broadcast %759 : vector<1x128xf32> to vector<16x128xf32>
    %761 = arith.mulf %760, %721 : vector<16x128xf32>
    %762 = arith.addf %754, %761 : vector<16x128xf32>
    %c29_98 = arith.constant 29 : index
    %763 = memref.load %arg1[%c29_98] : memref<98xf32, #tpu.memory_space<smem>>
    %c78_99 = arith.constant 78 : index
    %764 = memref.load %arg1[%c78_99] : memref<98xf32, #tpu.memory_space<smem>>
    %765 = vector.broadcast %763 : f32 to vector<1x128xf32>
    %766 = vector.broadcast %764 : f32 to vector<1x128xf32>
    %767 = arith.select %3, %765, %766 : vector<1x128xi1>, vector<1x128xf32>
    %768 = vector.extract_strided_slice %721 {offsets = [1, 0], sizes = [15, 128], strides = [1, 1]} : vector<16x128xf32> to vector<15x128xf32>
    %cst_100 = arith.constant 0.000000e+00 : f32
    %769 = vector.broadcast %cst_100 : f32 to vector<1x128xf32>
    %770 = tpu.concatenate %768, %769 in 0 : vector<15x128xf32>, vector<1x128xf32> -> vector<16x128xf32>
    %771 = vector.broadcast %767 : vector<1x128xf32> to vector<16x128xf32>
    %772 = arith.mulf %771, %770 : vector<16x128xf32>
    %773 = arith.addf %762, %772 : vector<16x128xf32>
    %c36_101 = arith.constant 36 : index
    %774 = memref.load %arg1[%c36_101] : memref<98xf32, #tpu.memory_space<smem>>
    %c85_102 = arith.constant 85 : index
    %775 = memref.load %arg1[%c85_102] : memref<98xf32, #tpu.memory_space<smem>>
    %776 = vector.broadcast %774 : f32 to vector<1x128xf32>
    %777 = vector.broadcast %775 : f32 to vector<1x128xf32>
    %778 = arith.select %3, %776, %777 : vector<1x128xi1>, vector<1x128xf32>
    %779 = vector.extract_strided_slice %721 {offsets = [2, 0], sizes = [14, 128], strides = [1, 1]} : vector<16x128xf32> to vector<14x128xf32>
    %cst_103 = arith.constant 0.000000e+00 : f32
    %780 = vector.broadcast %cst_103 : f32 to vector<2x128xf32>
    %781 = tpu.concatenate %779, %780 in 0 : vector<14x128xf32>, vector<2x128xf32> -> vector<16x128xf32>
    %782 = vector.broadcast %778 : vector<1x128xf32> to vector<16x128xf32>
    %783 = arith.mulf %782, %781 : vector<16x128xf32>
    %784 = arith.addf %773, %783 : vector<16x128xf32>
    %c43_104 = arith.constant 43 : index
    %785 = memref.load %arg1[%c43_104] : memref<98xf32, #tpu.memory_space<smem>>
    %c92_105 = arith.constant 92 : index
    %786 = memref.load %arg1[%c92_105] : memref<98xf32, #tpu.memory_space<smem>>
    %787 = vector.broadcast %785 : f32 to vector<1x128xf32>
    %788 = vector.broadcast %786 : f32 to vector<1x128xf32>
    %789 = arith.select %3, %787, %788 : vector<1x128xi1>, vector<1x128xf32>
    %790 = vector.extract_strided_slice %721 {offsets = [3, 0], sizes = [13, 128], strides = [1, 1]} : vector<16x128xf32> to vector<13x128xf32>
    %cst_106 = arith.constant 0.000000e+00 : f32
    %791 = vector.broadcast %cst_106 : f32 to vector<3x128xf32>
    %792 = tpu.concatenate %790, %791 in 0 : vector<13x128xf32>, vector<3x128xf32> -> vector<16x128xf32>
    %793 = vector.broadcast %789 : vector<1x128xf32> to vector<16x128xf32>
    %794 = arith.mulf %793, %792 : vector<16x128xf32>
    %795 = arith.addf %784, %794 : vector<16x128xf32>
    %796 = vector.extract_strided_slice %640 {offsets = [0, 127], sizes = [16, 1], strides = [1, 1]} : vector<16x128xf32> to vector<16x1xf32>
    %797 = vector.extract_strided_slice %640 {offsets = [0, 0], sizes = [16, 127], strides = [1, 1]} : vector<16x128xf32> to vector<16x127xf32>
    %798 = tpu.concatenate %796, %797 in 1 : vector<16x1xf32>, vector<16x127xf32> -> vector<16x128xf32>
    %c2_107 = arith.constant 2 : index
    %799 = memref.load %arg1[%c2_107] : memref<98xf32, #tpu.memory_space<smem>>
    %c51_108 = arith.constant 51 : index
    %800 = memref.load %arg1[%c51_108] : memref<98xf32, #tpu.memory_space<smem>>
    %801 = vector.broadcast %799 : f32 to vector<1x128xf32>
    %802 = vector.broadcast %800 : f32 to vector<1x128xf32>
    %803 = arith.select %3, %801, %802 : vector<1x128xi1>, vector<1x128xf32>
    %cst_109 = arith.constant 0.000000e+00 : f32
    %804 = vector.broadcast %cst_109 : f32 to vector<3x128xf32>
    %805 = vector.extract_strided_slice %798 {offsets = [0, 0], sizes = [13, 128], strides = [1, 1]} : vector<16x128xf32> to vector<13x128xf32>
    %806 = tpu.concatenate %804, %805 in 0 : vector<3x128xf32>, vector<13x128xf32> -> vector<16x128xf32>
    %807 = vector.broadcast %803 : vector<1x128xf32> to vector<16x128xf32>
    %808 = arith.mulf %807, %806 : vector<16x128xf32>
    %809 = arith.addf %795, %808 : vector<16x128xf32>
    %c9_110 = arith.constant 9 : index
    %810 = memref.load %arg1[%c9_110] : memref<98xf32, #tpu.memory_space<smem>>
    %c58_111 = arith.constant 58 : index
    %811 = memref.load %arg1[%c58_111] : memref<98xf32, #tpu.memory_space<smem>>
    %812 = vector.broadcast %810 : f32 to vector<1x128xf32>
    %813 = vector.broadcast %811 : f32 to vector<1x128xf32>
    %814 = arith.select %3, %812, %813 : vector<1x128xi1>, vector<1x128xf32>
    %cst_112 = arith.constant 0.000000e+00 : f32
    %815 = vector.broadcast %cst_112 : f32 to vector<2x128xf32>
    %816 = vector.extract_strided_slice %798 {offsets = [0, 0], sizes = [14, 128], strides = [1, 1]} : vector<16x128xf32> to vector<14x128xf32>
    %817 = tpu.concatenate %815, %816 in 0 : vector<2x128xf32>, vector<14x128xf32> -> vector<16x128xf32>
    %818 = vector.broadcast %814 : vector<1x128xf32> to vector<16x128xf32>
    %819 = arith.mulf %818, %817 : vector<16x128xf32>
    %820 = arith.addf %809, %819 : vector<16x128xf32>
    %c16_113 = arith.constant 16 : index
    %821 = memref.load %arg1[%c16_113] : memref<98xf32, #tpu.memory_space<smem>>
    %c65_114 = arith.constant 65 : index
    %822 = memref.load %arg1[%c65_114] : memref<98xf32, #tpu.memory_space<smem>>
    %823 = vector.broadcast %821 : f32 to vector<1x128xf32>
    %824 = vector.broadcast %822 : f32 to vector<1x128xf32>
    %825 = arith.select %3, %823, %824 : vector<1x128xi1>, vector<1x128xf32>
    %cst_115 = arith.constant 0.000000e+00 : f32
    %826 = vector.broadcast %cst_115 : f32 to vector<1x128xf32>
    %827 = vector.extract_strided_slice %798 {offsets = [0, 0], sizes = [15, 128], strides = [1, 1]} : vector<16x128xf32> to vector<15x128xf32>
    %828 = tpu.concatenate %826, %827 in 0 : vector<1x128xf32>, vector<15x128xf32> -> vector<16x128xf32>
    %829 = vector.broadcast %825 : vector<1x128xf32> to vector<16x128xf32>
    %830 = arith.mulf %829, %828 : vector<16x128xf32>
    %831 = arith.addf %820, %830 : vector<16x128xf32>
    %c23_116 = arith.constant 23 : index
    %832 = memref.load %arg1[%c23_116] : memref<98xf32, #tpu.memory_space<smem>>
    %c72_117 = arith.constant 72 : index
    %833 = memref.load %arg1[%c72_117] : memref<98xf32, #tpu.memory_space<smem>>
    %834 = vector.broadcast %832 : f32 to vector<1x128xf32>
    %835 = vector.broadcast %833 : f32 to vector<1x128xf32>
    %836 = arith.select %3, %834, %835 : vector<1x128xi1>, vector<1x128xf32>
    %837 = vector.broadcast %836 : vector<1x128xf32> to vector<16x128xf32>
    %838 = arith.mulf %837, %798 : vector<16x128xf32>
    %839 = arith.addf %831, %838 : vector<16x128xf32>
    %c30_118 = arith.constant 30 : index
    %840 = memref.load %arg1[%c30_118] : memref<98xf32, #tpu.memory_space<smem>>
    %c79_119 = arith.constant 79 : index
    %841 = memref.load %arg1[%c79_119] : memref<98xf32, #tpu.memory_space<smem>>
    %842 = vector.broadcast %840 : f32 to vector<1x128xf32>
    %843 = vector.broadcast %841 : f32 to vector<1x128xf32>
    %844 = arith.select %3, %842, %843 : vector<1x128xi1>, vector<1x128xf32>
    %845 = vector.extract_strided_slice %798 {offsets = [1, 0], sizes = [15, 128], strides = [1, 1]} : vector<16x128xf32> to vector<15x128xf32>
    %cst_120 = arith.constant 0.000000e+00 : f32
    %846 = vector.broadcast %cst_120 : f32 to vector<1x128xf32>
    %847 = tpu.concatenate %845, %846 in 0 : vector<15x128xf32>, vector<1x128xf32> -> vector<16x128xf32>
    %848 = vector.broadcast %844 : vector<1x128xf32> to vector<16x128xf32>
    %849 = arith.mulf %848, %847 : vector<16x128xf32>
    %850 = arith.addf %839, %849 : vector<16x128xf32>
    %c37_121 = arith.constant 37 : index
    %851 = memref.load %arg1[%c37_121] : memref<98xf32, #tpu.memory_space<smem>>
    %c86_122 = arith.constant 86 : index
    %852 = memref.load %arg1[%c86_122] : memref<98xf32, #tpu.memory_space<smem>>
    %853 = vector.broadcast %851 : f32 to vector<1x128xf32>
    %854 = vector.broadcast %852 : f32 to vector<1x128xf32>
    %855 = arith.select %3, %853, %854 : vector<1x128xi1>, vector<1x128xf32>
    %856 = vector.extract_strided_slice %798 {offsets = [2, 0], sizes = [14, 128], strides = [1, 1]} : vector<16x128xf32> to vector<14x128xf32>
    %cst_123 = arith.constant 0.000000e+00 : f32
    %857 = vector.broadcast %cst_123 : f32 to vector<2x128xf32>
    %858 = tpu.concatenate %856, %857 in 0 : vector<14x128xf32>, vector<2x128xf32> -> vector<16x128xf32>
    %859 = vector.broadcast %855 : vector<1x128xf32> to vector<16x128xf32>
    %860 = arith.mulf %859, %858 : vector<16x128xf32>
    %861 = arith.addf %850, %860 : vector<16x128xf32>
    %c44_124 = arith.constant 44 : index
    %862 = memref.load %arg1[%c44_124] : memref<98xf32, #tpu.memory_space<smem>>
    %c93_125 = arith.constant 93 : index
    %863 = memref.load %arg1[%c93_125] : memref<98xf32, #tpu.memory_space<smem>>
    %864 = vector.broadcast %862 : f32 to vector<1x128xf32>
    %865 = vector.broadcast %863 : f32 to vector<1x128xf32>
    %866 = arith.select %3, %864, %865 : vector<1x128xi1>, vector<1x128xf32>
    %867 = vector.extract_strided_slice %798 {offsets = [3, 0], sizes = [13, 128], strides = [1, 1]} : vector<16x128xf32> to vector<13x128xf32>
    %cst_126 = arith.constant 0.000000e+00 : f32
    %868 = vector.broadcast %cst_126 : f32 to vector<3x128xf32>
    %869 = tpu.concatenate %867, %868 in 0 : vector<13x128xf32>, vector<3x128xf32> -> vector<16x128xf32>
    %870 = vector.broadcast %866 : vector<1x128xf32> to vector<16x128xf32>
    %871 = arith.mulf %870, %869 : vector<16x128xf32>
    %872 = arith.addf %861, %871 : vector<16x128xf32>
    %c3_127 = arith.constant 3 : index
    %873 = memref.load %arg1[%c3_127] : memref<98xf32, #tpu.memory_space<smem>>
    %c52_128 = arith.constant 52 : index
    %874 = memref.load %arg1[%c52_128] : memref<98xf32, #tpu.memory_space<smem>>
    %875 = vector.broadcast %873 : f32 to vector<1x128xf32>
    %876 = vector.broadcast %874 : f32 to vector<1x128xf32>
    %877 = arith.select %3, %875, %876 : vector<1x128xi1>, vector<1x128xf32>
    %cst_129 = arith.constant 0.000000e+00 : f32
    %878 = vector.broadcast %cst_129 : f32 to vector<3x128xf32>
    %879 = vector.extract_strided_slice %640 {offsets = [0, 0], sizes = [13, 128], strides = [1, 1]} : vector<16x128xf32> to vector<13x128xf32>
    %880 = tpu.concatenate %878, %879 in 0 : vector<3x128xf32>, vector<13x128xf32> -> vector<16x128xf32>
    %881 = vector.broadcast %877 : vector<1x128xf32> to vector<16x128xf32>
    %882 = arith.mulf %881, %880 : vector<16x128xf32>
    %883 = arith.addf %872, %882 : vector<16x128xf32>
    %c10_130 = arith.constant 10 : index
    %884 = memref.load %arg1[%c10_130] : memref<98xf32, #tpu.memory_space<smem>>
    %c59_131 = arith.constant 59 : index
    %885 = memref.load %arg1[%c59_131] : memref<98xf32, #tpu.memory_space<smem>>
    %886 = vector.broadcast %884 : f32 to vector<1x128xf32>
    %887 = vector.broadcast %885 : f32 to vector<1x128xf32>
    %888 = arith.select %3, %886, %887 : vector<1x128xi1>, vector<1x128xf32>
    %cst_132 = arith.constant 0.000000e+00 : f32
    %889 = vector.broadcast %cst_132 : f32 to vector<2x128xf32>
    %890 = vector.extract_strided_slice %640 {offsets = [0, 0], sizes = [14, 128], strides = [1, 1]} : vector<16x128xf32> to vector<14x128xf32>
    %891 = tpu.concatenate %889, %890 in 0 : vector<2x128xf32>, vector<14x128xf32> -> vector<16x128xf32>
    %892 = vector.broadcast %888 : vector<1x128xf32> to vector<16x128xf32>
    %893 = arith.mulf %892, %891 : vector<16x128xf32>
    %894 = arith.addf %883, %893 : vector<16x128xf32>
    %c17_133 = arith.constant 17 : index
    %895 = memref.load %arg1[%c17_133] : memref<98xf32, #tpu.memory_space<smem>>
    %c66_134 = arith.constant 66 : index
    %896 = memref.load %arg1[%c66_134] : memref<98xf32, #tpu.memory_space<smem>>
    %897 = vector.broadcast %895 : f32 to vector<1x128xf32>
    %898 = vector.broadcast %896 : f32 to vector<1x128xf32>
    %899 = arith.select %3, %897, %898 : vector<1x128xi1>, vector<1x128xf32>
    %cst_135 = arith.constant 0.000000e+00 : f32
    %900 = vector.broadcast %cst_135 : f32 to vector<1x128xf32>
    %901 = vector.extract_strided_slice %640 {offsets = [0, 0], sizes = [15, 128], strides = [1, 1]} : vector<16x128xf32> to vector<15x128xf32>
    %902 = tpu.concatenate %900, %901 in 0 : vector<1x128xf32>, vector<15x128xf32> -> vector<16x128xf32>
    %903 = vector.broadcast %899 : vector<1x128xf32> to vector<16x128xf32>
    %904 = arith.mulf %903, %902 : vector<16x128xf32>
    %905 = arith.addf %894, %904 : vector<16x128xf32>
    %c24_136 = arith.constant 24 : index
    %906 = memref.load %arg1[%c24_136] : memref<98xf32, #tpu.memory_space<smem>>
    %c73_137 = arith.constant 73 : index
    %907 = memref.load %arg1[%c73_137] : memref<98xf32, #tpu.memory_space<smem>>
    %908 = vector.broadcast %906 : f32 to vector<1x128xf32>
    %909 = vector.broadcast %907 : f32 to vector<1x128xf32>
    %910 = arith.select %3, %908, %909 : vector<1x128xi1>, vector<1x128xf32>
    %911 = vector.broadcast %910 : vector<1x128xf32> to vector<16x128xf32>
    %912 = arith.mulf %911, %640 : vector<16x128xf32>
    %913 = arith.addf %905, %912 : vector<16x128xf32>
    %c31_138 = arith.constant 31 : index
    %914 = memref.load %arg1[%c31_138] : memref<98xf32, #tpu.memory_space<smem>>
    %c80_139 = arith.constant 80 : index
    %915 = memref.load %arg1[%c80_139] : memref<98xf32, #tpu.memory_space<smem>>
    %916 = vector.broadcast %914 : f32 to vector<1x128xf32>
    %917 = vector.broadcast %915 : f32 to vector<1x128xf32>
    %918 = arith.select %3, %916, %917 : vector<1x128xi1>, vector<1x128xf32>
    %919 = vector.extract_strided_slice %640 {offsets = [1, 0], sizes = [15, 128], strides = [1, 1]} : vector<16x128xf32> to vector<15x128xf32>
    %cst_140 = arith.constant 0.000000e+00 : f32
    %920 = vector.broadcast %cst_140 : f32 to vector<1x128xf32>
    %921 = tpu.concatenate %919, %920 in 0 : vector<15x128xf32>, vector<1x128xf32> -> vector<16x128xf32>
    %922 = vector.broadcast %918 : vector<1x128xf32> to vector<16x128xf32>
    %923 = arith.mulf %922, %921 : vector<16x128xf32>
    %924 = arith.addf %913, %923 : vector<16x128xf32>
    %c38_141 = arith.constant 38 : index
    %925 = memref.load %arg1[%c38_141] : memref<98xf32, #tpu.memory_space<smem>>
    %c87_142 = arith.constant 87 : index
    %926 = memref.load %arg1[%c87_142] : memref<98xf32, #tpu.memory_space<smem>>
    %927 = vector.broadcast %925 : f32 to vector<1x128xf32>
    %928 = vector.broadcast %926 : f32 to vector<1x128xf32>
    %929 = arith.select %3, %927, %928 : vector<1x128xi1>, vector<1x128xf32>
    %930 = vector.extract_strided_slice %640 {offsets = [2, 0], sizes = [14, 128], strides = [1, 1]} : vector<16x128xf32> to vector<14x128xf32>
    %cst_143 = arith.constant 0.000000e+00 : f32
    %931 = vector.broadcast %cst_143 : f32 to vector<2x128xf32>
    %932 = tpu.concatenate %930, %931 in 0 : vector<14x128xf32>, vector<2x128xf32> -> vector<16x128xf32>
    %933 = vector.broadcast %929 : vector<1x128xf32> to vector<16x128xf32>
    %934 = arith.mulf %933, %932 : vector<16x128xf32>
    %935 = arith.addf %924, %934 : vector<16x128xf32>
    %c45_144 = arith.constant 45 : index
    %936 = memref.load %arg1[%c45_144] : memref<98xf32, #tpu.memory_space<smem>>
    %c94_145 = arith.constant 94 : index
    %937 = memref.load %arg1[%c94_145] : memref<98xf32, #tpu.memory_space<smem>>
    %938 = vector.broadcast %936 : f32 to vector<1x128xf32>
    %939 = vector.broadcast %937 : f32 to vector<1x128xf32>
    %940 = arith.select %3, %938, %939 : vector<1x128xi1>, vector<1x128xf32>
    %941 = vector.extract_strided_slice %640 {offsets = [3, 0], sizes = [13, 128], strides = [1, 1]} : vector<16x128xf32> to vector<13x128xf32>
    %cst_146 = arith.constant 0.000000e+00 : f32
    %942 = vector.broadcast %cst_146 : f32 to vector<3x128xf32>
    %943 = tpu.concatenate %941, %942 in 0 : vector<13x128xf32>, vector<3x128xf32> -> vector<16x128xf32>
    %944 = vector.broadcast %940 : vector<1x128xf32> to vector<16x128xf32>
    %945 = arith.mulf %944, %943 : vector<16x128xf32>
    %946 = arith.addf %935, %945 : vector<16x128xf32>
    %947 = vector.extract_strided_slice %640 {offsets = [0, 1], sizes = [16, 127], strides = [1, 1]} : vector<16x128xf32> to vector<16x127xf32>
    %948 = vector.extract_strided_slice %640 {offsets = [0, 0], sizes = [16, 1], strides = [1, 1]} : vector<16x128xf32> to vector<16x1xf32>
    %949 = tpu.concatenate %947, %948 in 1 : vector<16x127xf32>, vector<16x1xf32> -> vector<16x128xf32>
    %c4_147 = arith.constant 4 : index
    %950 = memref.load %arg1[%c4_147] : memref<98xf32, #tpu.memory_space<smem>>
    %c53_148 = arith.constant 53 : index
    %951 = memref.load %arg1[%c53_148] : memref<98xf32, #tpu.memory_space<smem>>
    %952 = vector.broadcast %950 : f32 to vector<1x128xf32>
    %953 = vector.broadcast %951 : f32 to vector<1x128xf32>
    %954 = arith.select %3, %952, %953 : vector<1x128xi1>, vector<1x128xf32>
    %cst_149 = arith.constant 0.000000e+00 : f32
    %955 = vector.broadcast %cst_149 : f32 to vector<3x128xf32>
    %956 = vector.extract_strided_slice %949 {offsets = [0, 0], sizes = [13, 128], strides = [1, 1]} : vector<16x128xf32> to vector<13x128xf32>
    %957 = tpu.concatenate %955, %956 in 0 : vector<3x128xf32>, vector<13x128xf32> -> vector<16x128xf32>
    %958 = vector.broadcast %954 : vector<1x128xf32> to vector<16x128xf32>
    %959 = arith.mulf %958, %957 : vector<16x128xf32>
    %960 = arith.addf %946, %959 : vector<16x128xf32>
    %c11_150 = arith.constant 11 : index
    %961 = memref.load %arg1[%c11_150] : memref<98xf32, #tpu.memory_space<smem>>
    %c60_151 = arith.constant 60 : index
    %962 = memref.load %arg1[%c60_151] : memref<98xf32, #tpu.memory_space<smem>>
    %963 = vector.broadcast %961 : f32 to vector<1x128xf32>
    %964 = vector.broadcast %962 : f32 to vector<1x128xf32>
    %965 = arith.select %3, %963, %964 : vector<1x128xi1>, vector<1x128xf32>
    %cst_152 = arith.constant 0.000000e+00 : f32
    %966 = vector.broadcast %cst_152 : f32 to vector<2x128xf32>
    %967 = vector.extract_strided_slice %949 {offsets = [0, 0], sizes = [14, 128], strides = [1, 1]} : vector<16x128xf32> to vector<14x128xf32>
    %968 = tpu.concatenate %966, %967 in 0 : vector<2x128xf32>, vector<14x128xf32> -> vector<16x128xf32>
    %969 = vector.broadcast %965 : vector<1x128xf32> to vector<16x128xf32>
    %970 = arith.mulf %969, %968 : vector<16x128xf32>
    %971 = arith.addf %960, %970 : vector<16x128xf32>
    %c18_153 = arith.constant 18 : index
    %972 = memref.load %arg1[%c18_153] : memref<98xf32, #tpu.memory_space<smem>>
    %c67_154 = arith.constant 67 : index
    %973 = memref.load %arg1[%c67_154] : memref<98xf32, #tpu.memory_space<smem>>
    %974 = vector.broadcast %972 : f32 to vector<1x128xf32>
    %975 = vector.broadcast %973 : f32 to vector<1x128xf32>
    %976 = arith.select %3, %974, %975 : vector<1x128xi1>, vector<1x128xf32>
    %cst_155 = arith.constant 0.000000e+00 : f32
    %977 = vector.broadcast %cst_155 : f32 to vector<1x128xf32>
    %978 = vector.extract_strided_slice %949 {offsets = [0, 0], sizes = [15, 128], strides = [1, 1]} : vector<16x128xf32> to vector<15x128xf32>
    %979 = tpu.concatenate %977, %978 in 0 : vector<1x128xf32>, vector<15x128xf32> -> vector<16x128xf32>
    %980 = vector.broadcast %976 : vector<1x128xf32> to vector<16x128xf32>
    %981 = arith.mulf %980, %979 : vector<16x128xf32>
    %982 = arith.addf %971, %981 : vector<16x128xf32>
    %c25_156 = arith.constant 25 : index
    %983 = memref.load %arg1[%c25_156] : memref<98xf32, #tpu.memory_space<smem>>
    %c74_157 = arith.constant 74 : index
    %984 = memref.load %arg1[%c74_157] : memref<98xf32, #tpu.memory_space<smem>>
    %985 = vector.broadcast %983 : f32 to vector<1x128xf32>
    %986 = vector.broadcast %984 : f32 to vector<1x128xf32>
    %987 = arith.select %3, %985, %986 : vector<1x128xi1>, vector<1x128xf32>
    %988 = vector.broadcast %987 : vector<1x128xf32> to vector<16x128xf32>
    %989 = arith.mulf %988, %949 : vector<16x128xf32>
    %990 = arith.addf %982, %989 : vector<16x128xf32>
    %c32_158 = arith.constant 32 : index
    %991 = memref.load %arg1[%c32_158] : memref<98xf32, #tpu.memory_space<smem>>
    %c81_159 = arith.constant 81 : index
    %992 = memref.load %arg1[%c81_159] : memref<98xf32, #tpu.memory_space<smem>>
    %993 = vector.broadcast %991 : f32 to vector<1x128xf32>
    %994 = vector.broadcast %992 : f32 to vector<1x128xf32>
    %995 = arith.select %3, %993, %994 : vector<1x128xi1>, vector<1x128xf32>
    %996 = vector.extract_strided_slice %949 {offsets = [1, 0], sizes = [15, 128], strides = [1, 1]} : vector<16x128xf32> to vector<15x128xf32>
    %cst_160 = arith.constant 0.000000e+00 : f32
    %997 = vector.broadcast %cst_160 : f32 to vector<1x128xf32>
    %998 = tpu.concatenate %996, %997 in 0 : vector<15x128xf32>, vector<1x128xf32> -> vector<16x128xf32>
    %999 = vector.broadcast %995 : vector<1x128xf32> to vector<16x128xf32>
    %1000 = arith.mulf %999, %998 : vector<16x128xf32>
    %1001 = arith.addf %990, %1000 : vector<16x128xf32>
    %c39_161 = arith.constant 39 : index
    %1002 = memref.load %arg1[%c39_161] : memref<98xf32, #tpu.memory_space<smem>>
    %c88_162 = arith.constant 88 : index
    %1003 = memref.load %arg1[%c88_162] : memref<98xf32, #tpu.memory_space<smem>>
    %1004 = vector.broadcast %1002 : f32 to vector<1x128xf32>
    %1005 = vector.broadcast %1003 : f32 to vector<1x128xf32>
    %1006 = arith.select %3, %1004, %1005 : vector<1x128xi1>, vector<1x128xf32>
    %1007 = vector.extract_strided_slice %949 {offsets = [2, 0], sizes = [14, 128], strides = [1, 1]} : vector<16x128xf32> to vector<14x128xf32>
    %cst_163 = arith.constant 0.000000e+00 : f32
    %1008 = vector.broadcast %cst_163 : f32 to vector<2x128xf32>
    %1009 = tpu.concatenate %1007, %1008 in 0 : vector<14x128xf32>, vector<2x128xf32> -> vector<16x128xf32>
    %1010 = vector.broadcast %1006 : vector<1x128xf32> to vector<16x128xf32>
    %1011 = arith.mulf %1010, %1009 : vector<16x128xf32>
    %1012 = arith.addf %1001, %1011 : vector<16x128xf32>
    %c46_164 = arith.constant 46 : index
    %1013 = memref.load %arg1[%c46_164] : memref<98xf32, #tpu.memory_space<smem>>
    %c95_165 = arith.constant 95 : index
    %1014 = memref.load %arg1[%c95_165] : memref<98xf32, #tpu.memory_space<smem>>
    %1015 = vector.broadcast %1013 : f32 to vector<1x128xf32>
    %1016 = vector.broadcast %1014 : f32 to vector<1x128xf32>
    %1017 = arith.select %3, %1015, %1016 : vector<1x128xi1>, vector<1x128xf32>
    %1018 = vector.extract_strided_slice %949 {offsets = [3, 0], sizes = [13, 128], strides = [1, 1]} : vector<16x128xf32> to vector<13x128xf32>
    %cst_166 = arith.constant 0.000000e+00 : f32
    %1019 = vector.broadcast %cst_166 : f32 to vector<3x128xf32>
    %1020 = tpu.concatenate %1018, %1019 in 0 : vector<13x128xf32>, vector<3x128xf32> -> vector<16x128xf32>
    %1021 = vector.broadcast %1017 : vector<1x128xf32> to vector<16x128xf32>
    %1022 = arith.mulf %1021, %1020 : vector<16x128xf32>
    %1023 = arith.addf %1012, %1022 : vector<16x128xf32>
    %1024 = vector.extract_strided_slice %640 {offsets = [0, 2], sizes = [16, 126], strides = [1, 1]} : vector<16x128xf32> to vector<16x126xf32>
    %1025 = vector.extract_strided_slice %640 {offsets = [0, 0], sizes = [16, 2], strides = [1, 1]} : vector<16x128xf32> to vector<16x2xf32>
    %1026 = tpu.concatenate %1024, %1025 in 1 : vector<16x126xf32>, vector<16x2xf32> -> vector<16x128xf32>
    %c5_167 = arith.constant 5 : index
    %1027 = memref.load %arg1[%c5_167] : memref<98xf32, #tpu.memory_space<smem>>
    %c54_168 = arith.constant 54 : index
    %1028 = memref.load %arg1[%c54_168] : memref<98xf32, #tpu.memory_space<smem>>
    %1029 = vector.broadcast %1027 : f32 to vector<1x128xf32>
    %1030 = vector.broadcast %1028 : f32 to vector<1x128xf32>
    %1031 = arith.select %3, %1029, %1030 : vector<1x128xi1>, vector<1x128xf32>
    %cst_169 = arith.constant 0.000000e+00 : f32
    %1032 = vector.broadcast %cst_169 : f32 to vector<3x128xf32>
    %1033 = vector.extract_strided_slice %1026 {offsets = [0, 0], sizes = [13, 128], strides = [1, 1]} : vector<16x128xf32> to vector<13x128xf32>
    %1034 = tpu.concatenate %1032, %1033 in 0 : vector<3x128xf32>, vector<13x128xf32> -> vector<16x128xf32>
    %1035 = vector.broadcast %1031 : vector<1x128xf32> to vector<16x128xf32>
    %1036 = arith.mulf %1035, %1034 : vector<16x128xf32>
    %1037 = arith.addf %1023, %1036 : vector<16x128xf32>
    %c12_170 = arith.constant 12 : index
    %1038 = memref.load %arg1[%c12_170] : memref<98xf32, #tpu.memory_space<smem>>
    %c61_171 = arith.constant 61 : index
    %1039 = memref.load %arg1[%c61_171] : memref<98xf32, #tpu.memory_space<smem>>
    %1040 = vector.broadcast %1038 : f32 to vector<1x128xf32>
    %1041 = vector.broadcast %1039 : f32 to vector<1x128xf32>
    %1042 = arith.select %3, %1040, %1041 : vector<1x128xi1>, vector<1x128xf32>
    %cst_172 = arith.constant 0.000000e+00 : f32
    %1043 = vector.broadcast %cst_172 : f32 to vector<2x128xf32>
    %1044 = vector.extract_strided_slice %1026 {offsets = [0, 0], sizes = [14, 128], strides = [1, 1]} : vector<16x128xf32> to vector<14x128xf32>
    %1045 = tpu.concatenate %1043, %1044 in 0 : vector<2x128xf32>, vector<14x128xf32> -> vector<16x128xf32>
    %1046 = vector.broadcast %1042 : vector<1x128xf32> to vector<16x128xf32>
    %1047 = arith.mulf %1046, %1045 : vector<16x128xf32>
    %1048 = arith.addf %1037, %1047 : vector<16x128xf32>
    %c19_173 = arith.constant 19 : index
    %1049 = memref.load %arg1[%c19_173] : memref<98xf32, #tpu.memory_space<smem>>
    %c68_174 = arith.constant 68 : index
    %1050 = memref.load %arg1[%c68_174] : memref<98xf32, #tpu.memory_space<smem>>
    %1051 = vector.broadcast %1049 : f32 to vector<1x128xf32>
    %1052 = vector.broadcast %1050 : f32 to vector<1x128xf32>
    %1053 = arith.select %3, %1051, %1052 : vector<1x128xi1>, vector<1x128xf32>
    %cst_175 = arith.constant 0.000000e+00 : f32
    %1054 = vector.broadcast %cst_175 : f32 to vector<1x128xf32>
    %1055 = vector.extract_strided_slice %1026 {offsets = [0, 0], sizes = [15, 128], strides = [1, 1]} : vector<16x128xf32> to vector<15x128xf32>
    %1056 = tpu.concatenate %1054, %1055 in 0 : vector<1x128xf32>, vector<15x128xf32> -> vector<16x128xf32>
    %1057 = vector.broadcast %1053 : vector<1x128xf32> to vector<16x128xf32>
    %1058 = arith.mulf %1057, %1056 : vector<16x128xf32>
    %1059 = arith.addf %1048, %1058 : vector<16x128xf32>
    %c26_176 = arith.constant 26 : index
    %1060 = memref.load %arg1[%c26_176] : memref<98xf32, #tpu.memory_space<smem>>
    %c75_177 = arith.constant 75 : index
    %1061 = memref.load %arg1[%c75_177] : memref<98xf32, #tpu.memory_space<smem>>
    %1062 = vector.broadcast %1060 : f32 to vector<1x128xf32>
    %1063 = vector.broadcast %1061 : f32 to vector<1x128xf32>
    %1064 = arith.select %3, %1062, %1063 : vector<1x128xi1>, vector<1x128xf32>
    %1065 = vector.broadcast %1064 : vector<1x128xf32> to vector<16x128xf32>
    %1066 = arith.mulf %1065, %1026 : vector<16x128xf32>
    %1067 = arith.addf %1059, %1066 : vector<16x128xf32>
    %c33_178 = arith.constant 33 : index
    %1068 = memref.load %arg1[%c33_178] : memref<98xf32, #tpu.memory_space<smem>>
    %c82_179 = arith.constant 82 : index
    %1069 = memref.load %arg1[%c82_179] : memref<98xf32, #tpu.memory_space<smem>>
    %1070 = vector.broadcast %1068 : f32 to vector<1x128xf32>
    %1071 = vector.broadcast %1069 : f32 to vector<1x128xf32>
    %1072 = arith.select %3, %1070, %1071 : vector<1x128xi1>, vector<1x128xf32>
    %1073 = vector.extract_strided_slice %1026 {offsets = [1, 0], sizes = [15, 128], strides = [1, 1]} : vector<16x128xf32> to vector<15x128xf32>
    %cst_180 = arith.constant 0.000000e+00 : f32
    %1074 = vector.broadcast %cst_180 : f32 to vector<1x128xf32>
    %1075 = tpu.concatenate %1073, %1074 in 0 : vector<15x128xf32>, vector<1x128xf32> -> vector<16x128xf32>
    %1076 = vector.broadcast %1072 : vector<1x128xf32> to vector<16x128xf32>
    %1077 = arith.mulf %1076, %1075 : vector<16x128xf32>
    %1078 = arith.addf %1067, %1077 : vector<16x128xf32>
    %c40_181 = arith.constant 40 : index
    %1079 = memref.load %arg1[%c40_181] : memref<98xf32, #tpu.memory_space<smem>>
    %c89_182 = arith.constant 89 : index
    %1080 = memref.load %arg1[%c89_182] : memref<98xf32, #tpu.memory_space<smem>>
    %1081 = vector.broadcast %1079 : f32 to vector<1x128xf32>
    %1082 = vector.broadcast %1080 : f32 to vector<1x128xf32>
    %1083 = arith.select %3, %1081, %1082 : vector<1x128xi1>, vector<1x128xf32>
    %1084 = vector.extract_strided_slice %1026 {offsets = [2, 0], sizes = [14, 128], strides = [1, 1]} : vector<16x128xf32> to vector<14x128xf32>
    %cst_183 = arith.constant 0.000000e+00 : f32
    %1085 = vector.broadcast %cst_183 : f32 to vector<2x128xf32>
    %1086 = tpu.concatenate %1084, %1085 in 0 : vector<14x128xf32>, vector<2x128xf32> -> vector<16x128xf32>
    %1087 = vector.broadcast %1083 : vector<1x128xf32> to vector<16x128xf32>
    %1088 = arith.mulf %1087, %1086 : vector<16x128xf32>
    %1089 = arith.addf %1078, %1088 : vector<16x128xf32>
    %c47_184 = arith.constant 47 : index
    %1090 = memref.load %arg1[%c47_184] : memref<98xf32, #tpu.memory_space<smem>>
    %c96_185 = arith.constant 96 : index
    %1091 = memref.load %arg1[%c96_185] : memref<98xf32, #tpu.memory_space<smem>>
    %1092 = vector.broadcast %1090 : f32 to vector<1x128xf32>
    %1093 = vector.broadcast %1091 : f32 to vector<1x128xf32>
    %1094 = arith.select %3, %1092, %1093 : vector<1x128xi1>, vector<1x128xf32>
    %1095 = vector.extract_strided_slice %1026 {offsets = [3, 0], sizes = [13, 128], strides = [1, 1]} : vector<16x128xf32> to vector<13x128xf32>
    %cst_186 = arith.constant 0.000000e+00 : f32
    %1096 = vector.broadcast %cst_186 : f32 to vector<3x128xf32>
    %1097 = tpu.concatenate %1095, %1096 in 0 : vector<13x128xf32>, vector<3x128xf32> -> vector<16x128xf32>
    %1098 = vector.broadcast %1094 : vector<1x128xf32> to vector<16x128xf32>
    %1099 = arith.mulf %1098, %1097 : vector<16x128xf32>
    %1100 = arith.addf %1089, %1099 : vector<16x128xf32>
    %1101 = vector.extract_strided_slice %640 {offsets = [0, 3], sizes = [16, 125], strides = [1, 1]} : vector<16x128xf32> to vector<16x125xf32>
    %1102 = vector.extract_strided_slice %640 {offsets = [0, 0], sizes = [16, 3], strides = [1, 1]} : vector<16x128xf32> to vector<16x3xf32>
    %1103 = tpu.concatenate %1101, %1102 in 1 : vector<16x125xf32>, vector<16x3xf32> -> vector<16x128xf32>
    %c6_187 = arith.constant 6 : index
    %1104 = memref.load %arg1[%c6_187] : memref<98xf32, #tpu.memory_space<smem>>
    %c55_188 = arith.constant 55 : index
    %1105 = memref.load %arg1[%c55_188] : memref<98xf32, #tpu.memory_space<smem>>
    %1106 = vector.broadcast %1104 : f32 to vector<1x128xf32>
    %1107 = vector.broadcast %1105 : f32 to vector<1x128xf32>
    %1108 = arith.select %3, %1106, %1107 : vector<1x128xi1>, vector<1x128xf32>
    %cst_189 = arith.constant 0.000000e+00 : f32
    %1109 = vector.broadcast %cst_189 : f32 to vector<3x128xf32>
    %1110 = vector.extract_strided_slice %1103 {offsets = [0, 0], sizes = [13, 128], strides = [1, 1]} : vector<16x128xf32> to vector<13x128xf32>
    %1111 = tpu.concatenate %1109, %1110 in 0 : vector<3x128xf32>, vector<13x128xf32> -> vector<16x128xf32>
    %1112 = vector.broadcast %1108 : vector<1x128xf32> to vector<16x128xf32>
    %1113 = arith.mulf %1112, %1111 : vector<16x128xf32>
    %1114 = arith.addf %1100, %1113 : vector<16x128xf32>
    %c13_190 = arith.constant 13 : index
    %1115 = memref.load %arg1[%c13_190] : memref<98xf32, #tpu.memory_space<smem>>
    %c62_191 = arith.constant 62 : index
    %1116 = memref.load %arg1[%c62_191] : memref<98xf32, #tpu.memory_space<smem>>
    %1117 = vector.broadcast %1115 : f32 to vector<1x128xf32>
    %1118 = vector.broadcast %1116 : f32 to vector<1x128xf32>
    %1119 = arith.select %3, %1117, %1118 : vector<1x128xi1>, vector<1x128xf32>
    %cst_192 = arith.constant 0.000000e+00 : f32
    %1120 = vector.broadcast %cst_192 : f32 to vector<2x128xf32>
    %1121 = vector.extract_strided_slice %1103 {offsets = [0, 0], sizes = [14, 128], strides = [1, 1]} : vector<16x128xf32> to vector<14x128xf32>
    %1122 = tpu.concatenate %1120, %1121 in 0 : vector<2x128xf32>, vector<14x128xf32> -> vector<16x128xf32>
    %1123 = vector.broadcast %1119 : vector<1x128xf32> to vector<16x128xf32>
    %1124 = arith.mulf %1123, %1122 : vector<16x128xf32>
    %1125 = arith.addf %1114, %1124 : vector<16x128xf32>
    %c20_193 = arith.constant 20 : index
    %1126 = memref.load %arg1[%c20_193] : memref<98xf32, #tpu.memory_space<smem>>
    %c69_194 = arith.constant 69 : index
    %1127 = memref.load %arg1[%c69_194] : memref<98xf32, #tpu.memory_space<smem>>
    %1128 = vector.broadcast %1126 : f32 to vector<1x128xf32>
    %1129 = vector.broadcast %1127 : f32 to vector<1x128xf32>
    %1130 = arith.select %3, %1128, %1129 : vector<1x128xi1>, vector<1x128xf32>
    %cst_195 = arith.constant 0.000000e+00 : f32
    %1131 = vector.broadcast %cst_195 : f32 to vector<1x128xf32>
    %1132 = vector.extract_strided_slice %1103 {offsets = [0, 0], sizes = [15, 128], strides = [1, 1]} : vector<16x128xf32> to vector<15x128xf32>
    %1133 = tpu.concatenate %1131, %1132 in 0 : vector<1x128xf32>, vector<15x128xf32> -> vector<16x128xf32>
    %1134 = vector.broadcast %1130 : vector<1x128xf32> to vector<16x128xf32>
    %1135 = arith.mulf %1134, %1133 : vector<16x128xf32>
    %1136 = arith.addf %1125, %1135 : vector<16x128xf32>
    %c27_196 = arith.constant 27 : index
    %1137 = memref.load %arg1[%c27_196] : memref<98xf32, #tpu.memory_space<smem>>
    %c76_197 = arith.constant 76 : index
    %1138 = memref.load %arg1[%c76_197] : memref<98xf32, #tpu.memory_space<smem>>
    %1139 = vector.broadcast %1137 : f32 to vector<1x128xf32>
    %1140 = vector.broadcast %1138 : f32 to vector<1x128xf32>
    %1141 = arith.select %3, %1139, %1140 : vector<1x128xi1>, vector<1x128xf32>
    %1142 = vector.broadcast %1141 : vector<1x128xf32> to vector<16x128xf32>
    %1143 = arith.mulf %1142, %1103 : vector<16x128xf32>
    %1144 = arith.addf %1136, %1143 : vector<16x128xf32>
    %c34_198 = arith.constant 34 : index
    %1145 = memref.load %arg1[%c34_198] : memref<98xf32, #tpu.memory_space<smem>>
    %c83_199 = arith.constant 83 : index
    %1146 = memref.load %arg1[%c83_199] : memref<98xf32, #tpu.memory_space<smem>>
    %1147 = vector.broadcast %1145 : f32 to vector<1x128xf32>
    %1148 = vector.broadcast %1146 : f32 to vector<1x128xf32>
    %1149 = arith.select %3, %1147, %1148 : vector<1x128xi1>, vector<1x128xf32>
    %1150 = vector.extract_strided_slice %1103 {offsets = [1, 0], sizes = [15, 128], strides = [1, 1]} : vector<16x128xf32> to vector<15x128xf32>
    %cst_200 = arith.constant 0.000000e+00 : f32
    %1151 = vector.broadcast %cst_200 : f32 to vector<1x128xf32>
    %1152 = tpu.concatenate %1150, %1151 in 0 : vector<15x128xf32>, vector<1x128xf32> -> vector<16x128xf32>
    %1153 = vector.broadcast %1149 : vector<1x128xf32> to vector<16x128xf32>
    %1154 = arith.mulf %1153, %1152 : vector<16x128xf32>
    %1155 = arith.addf %1144, %1154 : vector<16x128xf32>
    %c41_201 = arith.constant 41 : index
    %1156 = memref.load %arg1[%c41_201] : memref<98xf32, #tpu.memory_space<smem>>
    %c90_202 = arith.constant 90 : index
    %1157 = memref.load %arg1[%c90_202] : memref<98xf32, #tpu.memory_space<smem>>
    %1158 = vector.broadcast %1156 : f32 to vector<1x128xf32>
    %1159 = vector.broadcast %1157 : f32 to vector<1x128xf32>
    %1160 = arith.select %3, %1158, %1159 : vector<1x128xi1>, vector<1x128xf32>
    %1161 = vector.extract_strided_slice %1103 {offsets = [2, 0], sizes = [14, 128], strides = [1, 1]} : vector<16x128xf32> to vector<14x128xf32>
    %cst_203 = arith.constant 0.000000e+00 : f32
    %1162 = vector.broadcast %cst_203 : f32 to vector<2x128xf32>
    %1163 = tpu.concatenate %1161, %1162 in 0 : vector<14x128xf32>, vector<2x128xf32> -> vector<16x128xf32>
    %1164 = vector.broadcast %1160 : vector<1x128xf32> to vector<16x128xf32>
    %1165 = arith.mulf %1164, %1163 : vector<16x128xf32>
    %1166 = arith.addf %1155, %1165 : vector<16x128xf32>
    %c48_204 = arith.constant 48 : index
    %1167 = memref.load %arg1[%c48_204] : memref<98xf32, #tpu.memory_space<smem>>
    %c97_205 = arith.constant 97 : index
    %1168 = memref.load %arg1[%c97_205] : memref<98xf32, #tpu.memory_space<smem>>
    %1169 = vector.broadcast %1167 : f32 to vector<1x128xf32>
    %1170 = vector.broadcast %1168 : f32 to vector<1x128xf32>
    %1171 = arith.select %3, %1169, %1170 : vector<1x128xi1>, vector<1x128xf32>
    %1172 = vector.extract_strided_slice %1103 {offsets = [3, 0], sizes = [13, 128], strides = [1, 1]} : vector<16x128xf32> to vector<13x128xf32>
    %cst_206 = arith.constant 0.000000e+00 : f32
    %1173 = vector.broadcast %cst_206 : f32 to vector<3x128xf32>
    %1174 = tpu.concatenate %1172, %1173 in 0 : vector<13x128xf32>, vector<3x128xf32> -> vector<16x128xf32>
    %1175 = vector.broadcast %1171 : vector<1x128xf32> to vector<16x128xf32>
    %1176 = arith.mulf %1175, %1174 : vector<16x128xf32>
    %1177 = arith.addf %1166, %1176 : vector<16x128xf32>
    %1178 = vector.broadcast %14 : vector<1x128xf32> to vector<16x128xf32>
    %1179 = arith.mulf %1177, %1178 : vector<16x128xf32>
    %1180 = vector.shape_cast %1179 : vector<16x128xf32> to vector<1x16x128xf32>
    %cst_207 = arith.constant dense<0.000000e+00> : vector<1xf32>
    %1181 = vector.multi_reduction <add>, %1180, %cst_207 [1, 2] : vector<1x16x128xf32> to vector<1xf32>
    %1182 = vector.shape_cast %1181 : vector<1xf32> to vector<1x1x1xf32>
    %1183 = vector.extract %1182[0, 0, 0] : f32 from vector<1x1x1xf32>
    %1184 = arith.mulf %1177, %1177 : vector<16x128xf32>
    %1185 = vector.broadcast %14 : vector<1x128xf32> to vector<16x128xf32>
    %1186 = arith.mulf %1184, %1185 : vector<16x128xf32>
    %1187 = vector.shape_cast %1186 : vector<16x128xf32> to vector<1x16x128xf32>
    %cst_208 = arith.constant dense<0.000000e+00> : vector<1xf32>
    %1188 = vector.multi_reduction <add>, %1187, %cst_208 [1, 2] : vector<1x16x128xf32> to vector<1xf32>
    %1189 = vector.shape_cast %1188 : vector<1xf32> to vector<1x1x1xf32>
    %1190 = vector.extract %1189[0, 0, 0] : f32 from vector<1x1x1xf32>
    %cst_209 = arith.constant 0.001953125 : f32
    %1191 = arith.mulf %1183, %cst_209 : f32
    %cst_210 = arith.constant 0.001953125 : f32
    %1192 = arith.mulf %1190, %cst_210 : f32
    %1193 = arith.mulf %1191, %1191 : f32
    %1194 = arith.subf %1192, %1193 : f32
    %cst_211 = arith.constant 9.99999974E-6 : f32
    %1195 = arith.addf %1194, %cst_211 : f32
    %1196 = math.rsqrt %1195 : f32
    %1197 = vector.broadcast %15 : vector<1x128xf32> to vector<16x128xf32>
    %1198 = arith.mulf %1177, %1197 : vector<16x128xf32>
    %1199 = vector.shape_cast %1198 : vector<16x128xf32> to vector<1x16x128xf32>
    %cst_212 = arith.constant dense<0.000000e+00> : vector<1xf32>
    %1200 = vector.multi_reduction <add>, %1199, %cst_212 [1, 2] : vector<1x16x128xf32> to vector<1xf32>
    %1201 = vector.shape_cast %1200 : vector<1xf32> to vector<1x1x1xf32>
    %1202 = vector.extract %1201[0, 0, 0] : f32 from vector<1x1x1xf32>
    %1203 = arith.mulf %1177, %1177 : vector<16x128xf32>
    %1204 = vector.broadcast %15 : vector<1x128xf32> to vector<16x128xf32>
    %1205 = arith.mulf %1203, %1204 : vector<16x128xf32>
    %1206 = vector.shape_cast %1205 : vector<16x128xf32> to vector<1x16x128xf32>
    %cst_213 = arith.constant dense<0.000000e+00> : vector<1xf32>
    %1207 = vector.multi_reduction <add>, %1206, %cst_213 [1, 2] : vector<1x16x128xf32> to vector<1xf32>
    %1208 = vector.shape_cast %1207 : vector<1xf32> to vector<1x1x1xf32>
    %1209 = vector.extract %1208[0, 0, 0] : f32 from vector<1x1x1xf32>
    %cst_214 = arith.constant 0.001953125 : f32
    %1210 = arith.mulf %1202, %cst_214 : f32
    %cst_215 = arith.constant 0.001953125 : f32
    %1211 = arith.mulf %1209, %cst_215 : f32
    %1212 = arith.mulf %1210, %1210 : f32
    %1213 = arith.subf %1211, %1212 : f32
    %cst_216 = arith.constant 9.99999974E-6 : f32
    %1214 = arith.addf %1213, %cst_216 : f32
    %1215 = math.rsqrt %1214 : f32
    %c0_217 = arith.constant 0 : index
    %1216 = memref.load %arg2[%c0_217] : memref<2xf32, #tpu.memory_space<smem>>
    %1217 = arith.mulf %1216, %1196 : f32
    %c1_218 = arith.constant 1 : index
    %1218 = memref.load %arg2[%c1_218] : memref<2xf32, #tpu.memory_space<smem>>
    %1219 = arith.mulf %1218, %1215 : f32
    %c0_219 = arith.constant 0 : index
    %1220 = memref.load %arg3[%c0_219] : memref<2xf32, #tpu.memory_space<smem>>
    %1221 = arith.mulf %1191, %1217 : f32
    %1222 = arith.subf %1220, %1221 : f32
    %c1_220 = arith.constant 1 : index
    %1223 = memref.load %arg3[%c1_220] : memref<2xf32, #tpu.memory_space<smem>>
    %1224 = arith.mulf %1210, %1219 : f32
    %1225 = arith.subf %1223, %1224 : f32
    %1226 = vector.broadcast %1217 : f32 to vector<1x128xf32>
    %1227 = vector.broadcast %1219 : f32 to vector<1x128xf32>
    %1228 = arith.select %3, %1226, %1227 : vector<1x128xi1>, vector<1x128xf32>
    %1229 = vector.broadcast %1222 : f32 to vector<1x128xf32>
    %1230 = vector.broadcast %1225 : f32 to vector<1x128xf32>
    %1231 = arith.select %3, %1229, %1230 : vector<1x128xi1>, vector<1x128xf32>
    %1232 = vector.broadcast %1228 : vector<1x128xf32> to vector<16x128xf32>
    %1233 = arith.mulf %1177, %1232 : vector<16x128xf32>
    %1234 = vector.broadcast %1231 : vector<1x128xf32> to vector<16x128xf32>
    %1235 = arith.addf %1233, %1234 : vector<16x128xf32>
    %cst_221 = arith.constant 0.000000e+00 : f32
    %1236 = vector.broadcast %cst_221 : f32 to vector<16x128xf32>
    %1237 = arith.maximumf %1235, %1236 : vector<16x128xf32>
    %c0_222 = arith.constant 0 : index
    %1238 = memref.load %arg4[%c0_222] : memref<2xf32, #tpu.memory_space<smem>>
    %1239 = vector.broadcast %1238 : f32 to vector<16x128xf32>
    %1240 = arith.mulf %1239, %1237 : vector<16x128xf32>
    %c1_223 = arith.constant 1 : index
    %1241 = memref.load %arg4[%c1_223] : memref<2xf32, #tpu.memory_space<smem>>
    %1242 = vector.extract_strided_slice %1237 {offsets = [0, 64], sizes = [16, 64], strides = [1, 1]} : vector<16x128xf32> to vector<16x64xf32>
    %1243 = vector.extract_strided_slice %1237 {offsets = [0, 0], sizes = [16, 64], strides = [1, 1]} : vector<16x128xf32> to vector<16x64xf32>
    %1244 = tpu.concatenate %1242, %1243 in 1 : vector<16x64xf32>, vector<16x64xf32> -> vector<16x128xf32>
    %1245 = vector.broadcast %1241 : f32 to vector<16x128xf32>
    %1246 = arith.mulf %1245, %1244 : vector<16x128xf32>
    %1247 = arith.addf %1240, %1246 : vector<16x128xf32>
    %1248 = vector.broadcast %14 : vector<1x128xf32> to vector<16x128xf32>
    %1249 = arith.mulf %1247, %1248 : vector<16x128xf32>
    %1250 = vector.shape_cast %1249 : vector<16x128xf32> to vector<1x16x128xf32>
    %cst_224 = arith.constant dense<0.000000e+00> : vector<1xf32>
    %1251 = vector.multi_reduction <add>, %1250, %cst_224 [1, 2] : vector<1x16x128xf32> to vector<1xf32>
    %1252 = vector.shape_cast %1251 : vector<1xf32> to vector<1x1x1xf32>
    %1253 = vector.extract %1252[0, 0, 0] : f32 from vector<1x1x1xf32>
    %1254 = arith.mulf %1247, %1247 : vector<16x128xf32>
    %1255 = vector.broadcast %14 : vector<1x128xf32> to vector<16x128xf32>
    %1256 = arith.mulf %1254, %1255 : vector<16x128xf32>
    %1257 = vector.shape_cast %1256 : vector<16x128xf32> to vector<1x16x128xf32>
    %cst_225 = arith.constant dense<0.000000e+00> : vector<1xf32>
    %1258 = vector.multi_reduction <add>, %1257, %cst_225 [1, 2] : vector<1x16x128xf32> to vector<1xf32>
    %1259 = vector.shape_cast %1258 : vector<1xf32> to vector<1x1x1xf32>
    %1260 = vector.extract %1259[0, 0, 0] : f32 from vector<1x1x1xf32>
    %cst_226 = arith.constant 0.001953125 : f32
    %1261 = arith.mulf %1253, %cst_226 : f32
    %cst_227 = arith.constant 0.001953125 : f32
    %1262 = arith.mulf %1260, %cst_227 : f32
    %1263 = arith.mulf %1261, %1261 : f32
    %1264 = arith.subf %1262, %1263 : f32
    %cst_228 = arith.constant 9.99999974E-6 : f32
    %1265 = arith.addf %1264, %cst_228 : f32
    %1266 = math.rsqrt %1265 : f32
    %c0_229 = arith.constant 0 : index
    %1267 = memref.load %arg5[%c0_229] : memref<1xf32, #tpu.memory_space<smem>>
    %1268 = arith.mulf %1267, %1266 : f32
    %c0_230 = arith.constant 0 : index
    %1269 = memref.load %arg6[%c0_230] : memref<1xf32, #tpu.memory_space<smem>>
    %1270 = arith.mulf %1261, %1268 : f32
    %1271 = arith.subf %1269, %1270 : f32
    %1272 = vector.broadcast %1268 : f32 to vector<16x128xf32>
    %1273 = arith.mulf %1247, %1272 : vector<16x128xf32>
    %1274 = vector.broadcast %1271 : f32 to vector<16x128xf32>
    %1275 = arith.addf %1273, %1274 : vector<16x128xf32>
    %1276 = arith.negf %1275 : vector<16x128xf32>
    %1277 = math.exp %1276 : vector<16x128xf32>
    %cst_231 = arith.constant 1.000000e+00 : f32
    %1278 = vector.broadcast %cst_231 : f32 to vector<16x128xf32>
    %1279 = arith.addf %1278, %1277 : vector<16x128xf32>
    %1280 = arith.divf %1278, %1279 : vector<16x128xf32>
    %1281 = vector.extract_strided_slice %1280 {offsets = [0, 0], sizes = [16, 16], strides = [1, 1]} : vector<16x128xf32> to vector<16x16xf32>
    %1282 = vector.extract_strided_slice %1280 {offsets = [0, 0], sizes = [16, 16], strides = [1, 1]} : vector<16x128xf32> to vector<16x16xf32>
    %1283 = vector.extract_strided_slice %1280 {offsets = [0, 0], sizes = [16, 16], strides = [1, 1]} : vector<16x128xf32> to vector<16x16xf32>
    %1284 = vector.extract_strided_slice %1280 {offsets = [0, 0], sizes = [16, 16], strides = [1, 1]} : vector<16x128xf32> to vector<16x16xf32>
    %1285 = vector.extract_strided_slice %1280 {offsets = [0, 32], sizes = [16, 16], strides = [1, 1]} : vector<16x128xf32> to vector<16x16xf32>
    %1286 = vector.extract_strided_slice %1280 {offsets = [0, 32], sizes = [16, 16], strides = [1, 1]} : vector<16x128xf32> to vector<16x16xf32>
    %1287 = vector.extract_strided_slice %1280 {offsets = [0, 32], sizes = [16, 16], strides = [1, 1]} : vector<16x128xf32> to vector<16x16xf32>
    %1288 = vector.extract_strided_slice %1280 {offsets = [0, 32], sizes = [16, 16], strides = [1, 1]} : vector<16x128xf32> to vector<16x16xf32>
    %1289 = tpu.concatenate %1281, %1282, %1283, %1284, %1285, %1286, %1287, %1288 in 1 : vector<16x16xf32>, vector<16x16xf32>, vector<16x16xf32>, vector<16x16xf32>, vector<16x16xf32>, vector<16x16xf32>, vector<16x16xf32>, vector<16x16xf32> -> vector<16x128xf32>
    %1290 = arith.mulf %0, %1289 : vector<16x128xf32>
    %c0_232 = arith.constant 0 : index
    %c0_233 = arith.constant 0 : index
    %1291 = vector.load %arg7[%c0_232, %c0_233] : memref<16x128xf32, #tpu.memory_space<vmem>>, vector<16x128xf32>
    tpu.vector_store %arg7[%c0_232, %c0_233], %1290 {strides = array<i32>} : memref<16x128xf32, #tpu.memory_space<vmem>>, vector<16x128xf32>,
    return
  }
}

</mosaic_0001>

<bundles_post_ra>
// kernel: tpu_custom_call.1
= control target key start
LH: loop header
LB: loop body
LE: loop exit
PB: predicated region body
PF: predicated region fallthrough
CT: control target
= control target key end

     0   :  { %s3490_s0 = inlined_call_operand.hbm [shape: f32[16,128], index: 0, kind: input, shape index: {}]   ;;  %s3491_s1 = inlined_call_operand.vmem [shape: f32[98], index: 1, kind: input, shape index: {}]   ;;  %s3492_s2 = inlined_call_operand.vmem [shape: f32[2], index: 2, kind: input, shape index: {}]   ;;  %s3493_s3 = inlined_call_operand.vmem [shape: f32[2], index: 3, kind: input, shape index: {}]   ;;  %s3494_s4 = inlined_call_operand.vmem [shape: f32[2], index: 4, kind: input, shape index: {}]   ;;  %s3495_s5 = inlined_call_operand.<no memory space> [shape: f32[1], index: 5, kind: input, shape index: {}]   ;;  %s3496_s6 = inlined_call_operand.<no memory space> [shape: f32[1], index: 6, kind: input, shape index: {}]   ;;  %s3497_s7 = inlined_call_operand.hbm [shape: f32[16,128], index: 7, kind: output, shape index: {}]  }
   0x1   :  { %3560 = sst [smem:[#allocation46_spill]] %s3495_s5 }
   0x2   :  { %3561 = sst [smem:[#allocation47_spill]] %s3496_s6 }
   0x3   :  { %3562 = sst [smem:[#allocation48_spill]] %s3497_s7 }
   0x4   :  { %14 = vsyncpa [#allocation5], 0 }
   0x5   :  { %15 = vsyncpa [#allocation7], 0 }
   0x6   :  { %16 = vsyncpa [#allocation10], 0 }
   0x7   :  { %17 = vsyncpa [#allocation13], 0  ;;  %s47_s26 = sshll.u32 %s3492_s2, 4  ;;  %s48_s26 = int_to_ptr.vmem [resolvable:$true] %s47_s26 }
   0x8   :  { %18 = vsyncpa [#allocation6], 0  ;;  %s1919_s27 = scalar_lea.vmem %s48_s26, 16  ;;  %p1924_p1 = scmp.lt.s32.totalorder %s48_s26, %s48_s26 }
   0x9   :  { %p1920_p0 = scmp.ne.s32.totalorder %s48_s26, %s1919_s27  ;;  %p1925_p2 = scmp.lt.s32.totalorder %s1919_s27, %s1919_s27 }
   0xb   :  { %p1926_p3 = por %p1925_p2, %p1924_p1 }
   0xd   :  { %p1927_p4 = pnand %p1926_p3, %p1920_p0 }
   0xf   :  { %1930 = shalt.err (!%p1927_p4)
}
  0x10   :  { %s2017_s28 = smov [#allocation9]   ;;  %s2018_s29 = smov [#allocation4]  }
  0x11   :  { %50 = dma.vmem_to_smem %s48_s26, 16, %s2017_s28, [#allocation10]  }
  0x12   :  { %s24_s30 = sshll.u32 %s2018_s29, 4  ;;  %s25_s30 = int_to_ptr.vmem [resolvable:$true] %s24_s30 }
  0x13   :  { %s1939_s8 = scalar_lea.vmem %s25_s30, 256  ;;  %p1944_p6 = scmp.lt.s32.totalorder %s25_s30, %s25_s30 }
  0x14   :  { %p1940_p5 = scmp.ne.s32.totalorder %s25_s30, %s1939_s8  ;;  %p1945_p7 = scmp.lt.s32.totalorder %s1939_s8, %s1939_s8 }
  0x16   :  { %p1946_p8 = por %p1945_p7, %p1944_p6 }
  0x18   :  { %p1947_p9 = pnand %p1946_p8, %p1940_p5 }
  0x1a   :  { %1950 = shalt.err (!%p1947_p9)
}
  0x1b   :  { %s3498_s2 = smov 128   ;;  %s3499_s9 = smov 8  }
  0x1c   :  { %30 = dma.hbm_to_vmem [thread:$0]  %s3490_s0, 256, %s25_s30, [#allocation5], %s3498_s2, %s3498_s2, %s3499_s9  }
  0x1d   :  { %s37_s14 = sshll.u32 %s3491_s1, 4  ;;  %s57_s17 = sshll.u32 %s3493_s3, 4  ;;  %s38_s14 = int_to_ptr.vmem [resolvable:$true] %s37_s14  ;;  %s58_s17 = int_to_ptr.vmem [resolvable:$true] %s57_s17 }
  0x1e   :  { %s1951_s18 = scalar_lea.vmem %s38_s14, 16  ;;  %p1956_p11 = scmp.lt.s32.totalorder %s38_s14, %s38_s14 }
  0x1f   :  { %p1952_p10 = scmp.ne.s32.totalorder %s38_s14, %s1951_s18  ;;  %p1957_p12 = scmp.lt.s32.totalorder %s1951_s18, %s1951_s18 }
  0x21   :  { %p1958_p13 = por %p1957_p12, %p1956_p11 }
  0x23   :  { %p1959_p0 = pnand %p1958_p13, %p1952_p10 }
  0x25   :  { %1962 = shalt.err (!%p1959_p0)
}
  0x26   :  { %s2021_s19 = smov [#allocation8]   ;;  %s1963_s0 = scalar_lea.vmem %s58_s17, 16 }
  0x27   :  { %40 = dma.vmem_to_smem %s38_s14, 16, %s2021_s19, [#allocation7]  }
  0x28   :  { %p1964_p1 = scmp.ne.s32.totalorder %s58_s17, %s1963_s0  ;;  %p1968_p2 = scmp.lt.s32.totalorder %s58_s17, %s58_s17 }
  0x29   :  { %p1969_p3 = scmp.lt.s32.totalorder %s1963_s0, %s1963_s0 }
  0x2b   :  { %p1970_p4 = por %p1969_p3, %p1968_p2 }
  0x2d   :  { %p1971_p5 = pnand %p1970_p4, %p1964_p1 }
  0x2f   :  { %1974 = shalt.err (!%p1971_p5)
}
  0x30   :  { %s2022_s1 = smov [#allocation11]   ;;  %s67_s21 = sshll.u32 %s3494_s4, 4  ;;  %s68_s21 = int_to_ptr.vmem [resolvable:$true] %s67_s21 }
  0x31   :  { %60 = dma.vmem_to_smem %s58_s17, 16, %s2022_s1, [#allocation10]  }
  0x32   :  { %s1975_s22 = scalar_lea.vmem %s68_s21, 16  ;;  %p1980_p7 = scmp.lt.s32.totalorder %s68_s21, %s68_s21 }
  0x33   :  { %p1976_p6 = scmp.ne.s32.totalorder %s68_s21, %s1975_s22  ;;  %p1981_p8 = scmp.lt.s32.totalorder %s1975_s22, %s1975_s22 }
  0x35   :  { %p1982_p9 = por %p1981_p8, %p1980_p7 }
  0x37   :  { %p1983_p10 = pnand %p1982_p9, %p1976_p6 }
  0x39   :  { %1986 = shalt.err (!%p1983_p10)
}
  0x3a   :  { %s2023_s23 = smov [#allocation12]  }
  0x3b   :  { %70 = dma.vmem_to_smem %s68_s21, 16, %s2023_s23, [#allocation13]  }
  0x3c   :  { %2007 = dma.done.wait [#allocation5], 256  }
  0x3d   :  { %2008 = vsyncadd [#allocation5], 4294967040 }
  0x3e   :  { %2009 = dma.done.wait [#allocation7], 16  }
  0x3f   :  { %2010 = vsyncadd [#allocation7], 4294967280 }
  0x40   :  { %2011 = dma.done.wait [#allocation10], 32  }
  0x41   :  { %2012 = vsyncadd [#allocation10], 4294967264 }
  0x42   :  { %2013 = dma.done.wait [#allocation13], 16  }
  0x43   :  { %2014 = vsyncadd [#allocation13], 4294967280 }
  0x44   :  { %90 = sfence }
  0x45   :  { %v91_v0 = vld [vmem:[#allocation4] sm:$0xff]  ;;  %s2024_s4 = smov 112   ;;  %v92_v1 = vld [vmem:[#allocation4 + $0x8] sm:$0xff]  ;;  %s2025_s24 = smov 96   ;;  %vm158_vm0 = vcmask 130048   ;;  %vm161_vm1 = vcmask 261120   ;;  %v93_v56 = vlaneseq }
  0x46   :  { %104 = vrot.lane.b32.xlu0 %v91_v0, %s2024_s4  ;;  %s3502_s25 = smov 64   ;;  %s3500_s26 = smov 32   ;;  %vm164_vm2 = vcmask 392192   ;;  %vm167_vm3 = vcmask 523264   ;;  %vm170_vm4 = vcmask 654336   ;;  %vm173_vm5 = vcmask 785408  }
  0x47   :  { %vm176_vm6 = vcmask 916480   ;;  %s3514_s27 = smov 3   ;;  %s3510_s28 = smov 2   ;;  %vm194_vm7 = vcmask 1042432   ;;  %vm210_vm8 = vcmask 1041408   ;;  %vm226_vm9 = vcmask 1040384  }
  0x48   :  { %vm251_vm10 = vcmask 1046528   ;;  %s3512_s29 = smov 1   ;;  %vm267_vm11 = vcmask 1045504   ;;  %s3508_s30 = smov 127   ;;  %vm283_vm12 = vcmask 1044480   ;;  %v2245_v57 = vand.u32 127, %v93_v56 }
  0x49   :  { %s3506_s8 = smov 126   ;;  %s3504_s10 = smov 125  }
  0x4a   :  { %106 = vrot.lane.b32.xlu0 %v92_v1, %s2024_s4  ;;  %s2185_s11 = sld [smem:[#allocation8 + $0x18]]  ;;  %3568 = vst [vmem:[#allocation25_spill] sm:$0xff] %v2245_v57  ;;  %vm95_vm13 = vcmp.lt.s32.totalorder %v2245_v57, 64 }
  0x4b   :  { %s2187_s12 = sld [smem:[#allocation8 + $0x49]] }
  0x4c   :  { %s2189_s13 = sld [smem:[#allocation8 + $0x3]] }
  0x4d   :  { %s2191_s14 = sld [smem:[#allocation8 + $0x34]] }
  0x4e   :  { %s2193_s15 = sld [smem:[#allocation8 + $0xa]] }
  0x4f   :  { %s2195_s16 = sld [smem:[#allocation8 + $0x3b]] }
  0x50   :  { %s2197_s17 = sld [smem:[#allocation8 + $0x11]]  ;;  %v555_v60 = vstv %s2185_s11 }
  0x51   :  { %s2199_s18 = sld [smem:[#allocation8 + $0x42]]  ;;  %v556_v61 = vstv %s2187_s12 }
  0x52   :  { %s2201_s19 = sld [smem:[#allocation8 + $0x1f]]  ;;  %v510_v58 = vstv %s2189_s13 }
  0x53   :  { %s2203_s0 = sld [smem:[#allocation8 + $0x50]]  ;;  %v511_v59 = vstv %s2191_s14 }
  0x54   :  { %s2205_s1 = sld [smem:[#allocation8]]  ;;  %v525_v62 = vstv %s2193_s15 }
  0x55   :  { %s2207_s3 = sld [smem:[#allocation8 + $0x31]]  ;;  %v526_v63 = vstv %s2195_s16 }
  0x56   :  { %s2209_s20 = sld [smem:[#allocation8 + $0x7]] }
  0x57   :  { %s2211_s21 = sld [smem:[#allocation8 + $0x38]] }
  0x58   :  { %s2213_s22 = sld [smem:[#allocation8 + $0xe]] }
  0x59   :  { %s2215_s23 = sld [smem:[#allocation8 + $0x3f]] }
  0x5a   :  { %s2217_s4 = sld [smem:[#allocation8 + $0x15]] }
  0x5b   :  { %s2221_s2 = sld [smem:[#allocation8 + $0x26]] }
  0x5c   :  { %s2223_s9 = sld [smem:[#allocation8 + $0x57]] }
  0x5d   :  { %s2241_s7 = sld [smem:[#allocation8 + $0xf]] }
  0x5e   :  { %s2243_s6 = sld [smem:[#allocation8 + $0x40]] }
  0x5f   :  { %s2247_s5 = sld [smem:[#allocation8 + $0x1c]] }
  0x60   :  { %s2280_s11 = sld [smem:[#allocation8 + $0x9]] }
  0x61   :  { %s2282_s12 = sld [smem:[#allocation8 + $0x3a]] }
  0x62   :  { %s2284_s13 = sld [smem:[#allocation8 + $0x10]] }
  0x63   :  { %3566 = sst [smem:[#allocation23_spill]] %s2241_s7 }
  0x64   :  { %3567 = sst [smem:[#allocation24_spill]] %s2243_s6 }
  0x65   :  { %s2256_s7 = sld [smem:[#allocation8 + $0x2a]] }
  0x66   :  { %s2258_s6 = sld [smem:[#allocation8 + $0x5b]] }
  0xb8   :  { %v105_v2 = vpop.permute.xlu0 %104 }
  0xb9   :  { %v122_v3 = vadd.f32 %v105_v2, %v91_v0  ;;  %v110_v4 = vmax.f32 %v91_v0, %v105_v2  ;;  %v540_v0 = vstv %s2197_s17  ;;  %v189_v2 = vstv %s2205_s1  ;;  %s2314_s17 = sld [smem:[#allocation8 + $0x41]] }
  0xbb   :  { %126 = vrot.lane.b32.xlu0 %v122_v3, %s2025_s24  ;;  %114 = vrot.lane.b32.xlu1 %v110_v4, %s2025_s24 }
  0xbc   :  { %v107_v5 = vpop.permute.xlu0 %106 }
  0xbd   :  { %v111_v6 = vmax.f32 %v92_v1, %v107_v5  ;;  %v123_v7 = vadd.f32 %v107_v5, %v92_v1  ;;  %v541_v1 = vstv %s2199_s18  ;;  %v565_v5 = vstv %s2203_s0  ;;  %s3579_s18 = sld [smem:[#allocation23_spill]] }
  0xbe   :  { %s2322_s0 = sld [smem:[#allocation8 + $0x17]] }
  0xbf   :  { %116 = vrot.lane.b32.xlu1 %v111_v6, %s2025_s24 }
  0xc3   :  { %128 = vrot.lane.b32.xlu1 %v123_v7, %s2025_s24 }
 0x12d   :  { %v115_v8 = vpop.permute.xlu1 %114  ;;  %v127_v9 = vpop.permute.xlu0 %126 }
 0x12e   :  { %v120_v10 = vmax.f32 %v110_v4, %v115_v8  ;;  %v132_v11 = vadd.f32 %v127_v9, %v122_v3  ;;  %v190_v3 = vstv %s2207_s3  ;;  %v564_v4 = vstv %s2201_s19  ;;  %s3580_s19 = sld [smem:[#allocation24_spill]] }
 0x12f   :  { %v223_v8 = vstv %s2213_s22  ;;  %v224_v9 = vstv %s2215_s23  ;;  %s2542_s22 = sld [smem:[#allocation8 + $0x4f]] }
 0x130   :  { %138 = vrot.lane.b32.xlu0 %v120_v10, %s2025_s24  ;;  %v134_v13 = vmul.f32 0.25, %v132_v11  ;;  %v159_v18 = vsel %vm158_vm0, %v120_v10, 0.0  ;;  %v2288_v10 = vsel %vm95_vm13, %v510_v58, %v511_v59  ;;  %v2292_v11 = vsel %vm95_vm13, %v525_v62, %v526_v63  ;;  %s2548_s23 = sld [smem:[#allocation8 + $0x25]] }
 0x131   :  { %v117_v12 = vpop.permute.xlu1 %116  ;;  %3571 = vst [vmem:[#allocation28_spill] sm:$0xff] %v2288_v10  ;;  %3572 = vst [vmem:[#allocation29_spill] sm:$0xff] %v2292_v11 }
 0x132   :  { %v121_v14 = vmax.f32 %v111_v6, %v117_v12  ;;  %v207_v6 = vstv %s2209_s20  ;;  %v2296_v12 = vsel %vm95_vm13, %v540_v0, %v541_v1  ;;  %s2328_s20 = sld [smem:[#allocation8 + $0x48]]  ;;  %v281_v0 = vstv %s2258_s6 }
 0x133   :  { %3573 = vst [vmem:[#allocation30_spill] sm:$0xff] %v2296_v12  ;;  %s2423_s6 = sld [smem:[#allocation8 + $0xb]] }
 0x134   :  { %140 = vrot.lane.b32.xlu1 %v121_v14, %s2025_s24  ;;  %146 = vrot.lane.b32.xlu0 %v134_v13, %s3502_s25  ;;  %v160_v25 = vsel %vm158_vm0, %v121_v14, 0.0  ;;  %s2219_s24 = sld [smem:[#allocation8 + $0x46]]  ;;  %v2304_v14 = vsel %vm95_vm13, %v189_v2, %v190_v3  ;;  %v426_v3 = vstv %s2280_s11 }
 0x135   :  { %v129_v15 = vpop.permute.xlu1 %128  ;;  %s2605_s11 = sld [smem:[#allocation8 + $0x2c]] }
 0x136   :  { %v133_v16 = vadd.f32 %v129_v15, %v123_v7  ;;  %v208_v7 = vstv %s2211_s21  ;;  %s2336_s21 = sld [smem:[#allocation8 + $0x1d]] }
 0x137   :  { %v2308_v15 = vsel %vm95_vm13, %v207_v6, %v208_v7  ;;  %v442_v7 = vstv %s2314_s17  ;;  %s2645_s17 = sld [smem:[#allocation8 + $0x13]] }
 0x138   :  { %v135_v17 = vmul.f32 0.25, %v133_v16  ;;  %152 = vrot.lane.b32.xlu0 %v134_v13, %s3500_s26  ;;  %v2300_v13 = vsel %vm95_vm13, %v555_v60, %v556_v61  ;;  %v2312_v16 = vsel %vm95_vm13, %v223_v8, %v224_v9  ;;  %v280_v61 = vstv %s2256_s7  ;;  %s2415_s7 = sld [smem:[#allocation8 + $0x35]] }
 0x139   :  { %3574 = vst [vmem:[#allocation31_spill] sm:$0xff] %v2300_v13  ;;  %v456_v8 = vstv %s2322_s0  ;;  %v457_v9 = vstv %s2328_s20  ;;  %s2661_s0 = sld [smem:[#allocation8 + $0x4b]] }
 0x13a   :  { %148 = vrot.lane.b32.xlu1 %v135_v17, %s3502_s25  ;;  %s2227_s25 = sld [smem:[#allocation8 + $0x5e]] }
 0x13b   :  { %s2676_s20 = sld [smem:[#allocation8 + $0x27]] }
 0x13e   :  { %154 = vrot.lane.b32.xlu1 %v135_v17, %s3500_s26  ;;  %s2225_s26 = sld [smem:[#allocation8 + $0x2d]]  ;;  %v2318_v17 = vsel %vm95_vm13, %v564_v4, %v565_v5  ;;  %v427_v4 = vstv %s2282_s12  ;;  %v441_v5 = vstv %s2284_s13 }
 0x13f   :  { %3578 = vst [vmem:[#allocation32_spill] sm:$0xff] %v2318_v17  ;;  %s2610_s12 = sld [smem:[#allocation8 + $0x5d]] }
 0x140   :  { %s2615_s13 = sld [smem:[#allocation8 + $0x5]] }
 0x1a2   :  { %v139_v19 = vpop.permute.xlu0 %138 }
 0x1a3   :  { %v162_v20 = vsel %vm161_vm1, %v159_v18, %v139_v19  ;;  %v239_v18 = vstv %s2217_s4  ;;  %v240_v19 = vstv %s2219_s24  ;;  %s2556_s4 = sld [smem:[#allocation8 + $0x56]] }
 0x1a4   :  { %v165_v21 = vsel %vm164_vm2, %v162_v20, 0.0  ;;  %v579_v20 = vstv %s2221_s2  ;;  %s2342_s2 = sld [smem:[#allocation8 + $0x4e]] }
 0x1a5   :  { %s2588_s24 = sld [smem:[#allocation8 + $0x4a]] }
 0x1a6   :  { %v141_v22 = vpop.permute.xlu1 %140  ;;  %v147_v23 = vpop.permute.xlu0 %146 }
 0x1a7   :  { %v168_v24 = vsel %vm167_vm3, %v165_v21, %v147_v23  ;;  %v163_v26 = vsel %vm161_vm1, %v160_v25, %v141_v22  ;;  %v580_v21 = vstv %s2223_s9  ;;  %v595_v25 = vstv %s2227_s25  ;;  %s2350_s9 = sld [smem:[#allocation8 + $0x24]] }
 0x1a8   :  { %v171_v27 = vsel %vm170_vm4, %v168_v24, 0.0  ;;  %v166_v30 = vsel %vm164_vm2, %v163_v26, 0.0  ;;  %v594_v24 = vstv %s2225_s26  ;;  %s2385_s25 = sld [smem:[#allocation8 + $0x2b]] }
 0x1a9   :  { %s2395_s26 = sld [smem:[#allocation8 + $0x5c]] }
 0x1aa   :  { %v153_v28 = vpop.permute.xlu0 %152 }
 0x1ab   :  { %v174_v29 = vsel %vm173_vm5, %v171_v27, %v153_v28 }
 0x1ac   :  { %v2111_v31 = vsel %vm176_vm6, %v174_v29, 0.0  ;;  %v149_v32 = vpop.permute.xlu1 %148 }
 0x1ad   :  { %v169_v33 = vsel %vm167_vm3, %v166_v30, %v149_v32  ;;  %181 = vrot.lane.b32.xlu0 %v2111_v31, %s3514_s27  ;;  %v513_v38 = vrot.slane %v2111_v31, 5  ;;  %v528_v39 = vrot.slane %v2111_v31, 6  ;;  %v543_v42 = vrot.slane %v2111_v31, 7 }
 0x1ae   :  { %v172_v34 = vsel %vm170_vm4, %v169_v33, 0.0  ;;  %v567_v48 = vrot.slane %v2111_v31, 1  ;;  %v582_v50 = vrot.slane %v2111_v31, 2  ;;  %v597_v54 = vrot.slane %v2111_v31, 3 }
 0x1af   :  { %v334_v30 = vstv %s3579_s18  ;;  %v335_v32 = vstv %s3580_s19  ;;  %v248_v33 = vstv %s2247_s5  ;;  %s2363_s5 = sld [smem:[#allocation8 + $0x55]]  ;;  %v533_v59 = vsel %vm210_vm8, 0.0, %v528_v39 }
 0x1b0   :  { %v155_v35 = vpop.permute.xlu1 %154  ;;  %v2379_v56 = vsel %vm95_vm13, %v334_v30, %v335_v32  ;;  %v2402_v63 = vmul.f32 %v2300_v13, %v2111_v31  ;;  %v548_v2 = vsel %vm226_vm9, 0.0, %v543_v42  ;;  %v2418_v6 = vmul.f32 %v533_v59, %v2292_v11  ;;  %s2651_s18 = sld [smem:[#allocation8 + $0x44]] }
 0x1b1   :  { %v175_v36 = vsel %vm173_vm5, %v172_v34, %v155_v35  ;;  %294 = vrot.lane.b32.xlu0 %v2111_v31, %s3510_s28  ;;  %v2346_v35 = vsel %vm95_vm13, %v239_v18, %v240_v19  ;;  %v2439_v19 = vmul.f32 %v548_v2, %v2296_v12  ;;  %s2656_s19 = sld [smem:[#allocation8 + $0x1a]] }
 0x1b2   :  { %v2121_v37 = vsel %vm176_vm6, %v175_v36, 0.0 }
 0x1b3   :  { %183 = vrot.lane.b32.xlu1 %v2121_v37, %s3514_s27  ;;  %v514_v40 = vrot.slane %v2121_v37, 5  ;;  %v529_v41 = vrot.slane %v2121_v37, 6  ;;  %v544_v43 = vrot.slane %v2121_v37, 7  ;;  %v568_v44 = vrot.slane %v2121_v37, 1  ;;  %s2239_s27 = sld [smem:[#allocation8 + $0x39]] }
 0x1b4   :  { %v583_v51 = vrot.slane %v2121_v37, 2  ;;  %v598_v52 = vrot.slane %v2121_v37, 3 }
 0x1b5   :  { %401 = vrot.lane.b32.xlu0 %v2111_v31, %s3512_s29  ;;  %v2137_v45 = vsel %vm194_vm7, %v513_v38, %v514_v40  ;;  %v2142_v46 = vsel %vm210_vm8, %v528_v39, %v529_v41  ;;  %v2147_v47 = vsel %vm226_vm9, %v543_v42, %v544_v43  ;;  %v2155_v49 = vsel %vm251_vm10, %v567_v48, %v568_v44 }
 0x1b6   :  { %v2167_v53 = vsel %vm267_vm11, %v582_v50, %v583_v51  ;;  %v2175_v55 = vsel %vm283_vm12, %v597_v54, %v598_v52  ;;  %v518_v41 = vsel %vm194_vm7, 0.0, %v513_v38  ;;  %v2367_v50 = vsel %vm95_vm13, %v579_v20, %v580_v21 }
 0x1b7   :  { %296 = vrot.lane.b32.xlu1 %v2121_v37, %s3510_s28  ;;  %s2235_s28 = sld [smem:[#allocation8 + $0x32]]  ;;  %3583 = vst [vmem:[#allocation33_spill] sm:$0xff] %v2367_v50  ;;  %v2371_v38 = vsel %vm95_vm13, %v594_v24, %v595_v25  ;;  %v2398_v62 = vmul.f32 %v518_v41, %v2288_v10  ;;  %v572_v18 = vsel %vm251_vm10, %v568_v44, 0.0  ;;  %v2443_v20 = vmul.f32 %v2300_v13, %v2121_v37 }
 0x1b8   :  { %3584 = vst [vmem:[#allocation34_spill] sm:$0xff] %v2371_v38  ;;  %v2447_v44 = vsel %vm95_vm13, %v426_v3, %v427_v4  ;;  %v2453_v21 = vmul.f32 %v2137_v45, %v2288_v10  ;;  %v2465_v24 = vsel %vm95_vm13, %v441_v5, %v442_v7  ;;  %v2469_v25 = vsel %vm95_vm13, %v456_v8, %v457_v9 }
 0x1b9   :  { %607 = vrot.lane.b32.xlu0 %v2111_v31, %s3508_s30  ;;  %v320_v29 = vstv %s2239_s27  ;;  %s2407_s27 = sld [smem:[#allocation8 + $0x4]]  ;;  %v2475_v45 = vmul.f32 %v2155_v49, %v2318_v17  ;;  %v602_v41 = vsel %vm283_vm12, %v598_v52, 0.0  ;;  %v2525_v4 = vmul.f32 %v2175_v55, %v2371_v38 }
 0x1ba   :  { %v2528_v5 = vmul.f32 %v602_v41, %v2371_v38  ;;  %v480_v13 = vstv %s2548_s23  ;;  %s2821_s23 = sld [smem:[#allocation8 + $0x2f]] }
 0x1bb   :  { %403 = vrot.lane.b32.xlu1 %v2121_v37, %s3512_s29  ;;  %s2237_s29 = sld [smem:[#allocation8 + $0x8]] }
 0x1bd   :  { %714 = vrot.lane.b32.xlu0 %v2111_v31, %s3506_s8  ;;  %3564 = sst [smem:[#allocation21_spill]] %s2235_s28 }
 0x1be   :  { %s2249_s28 = sld [smem:[#allocation8 + $0x4d]] }
 0x1bf   :  { %609 = vrot.lane.b32.xlu1 %v2121_v37, %s3508_s30  ;;  %s2233_s30 = sld [smem:[#allocation8 + $0x1]] }
 0x1c0   :  { %s3576_s15 = sld [smem:[#allocation21_spill]] }
 0x1c1   :  { %821 = vrot.lane.b32.xlu0 %v2111_v31, %s3504_s10  ;;  %3565 = sst [smem:[#allocation22_spill]] %s2237_s29  ;;  %v2430_v31 = vsel %vm95_vm13, %v280_v61, %v281_v0  ;;  %v616_v0 = vstv %s2415_s7 }
 0x1c2   :  { %s2253_s29 = sld [smem:[#allocation8 + $0x54]] }
 0x1c3   :  { %716 = vrot.lane.b32.xlu1 %v2121_v37, %s3506_s8  ;;  %s2231_s8 = sld [smem:[#allocation8 + $0x47]] }
 0x1c4   :  { %3569 = sst [smem:[#allocation26_spill]] %s2249_s28 }
 0x1c5   :  { %3563 = sst [smem:[#allocation20_spill]] %s2233_s30 }
 0x1c6   :  { %s2251_s30 = sld [smem:[#allocation8 + $0x23]]  ;;  %v303_v27 = vstv %s3576_s15 }
 0x1c7   :  { %823 = vrot.lane.b32.xlu1 %v2121_v37, %s3504_s10  ;;  %s2229_s10 = sld [smem:[#allocation8 + $0x16]]  ;;  %v2512_v37 = vmul.f32 %v2167_v53, %v2367_v50 }
 0x1c8   :  { %3570 = sst [smem:[#allocation27_spill]] %s2253_s29 }
 0x1c9   :  { %s2264_s28 = sld [smem:[#allocation8 + $0x2]]  ;;  %v350_v23 = vstv %s2231_s8 }
 0x1ca   :  { %s2272_s29 = sld [smem:[#allocation8 + $0x33]] }
 0x1cb   :  { %s3575_s14 = sld [smem:[#allocation20_spill]] }
 0x1cc   :  { %s3577_s16 = sld [smem:[#allocation22_spill]]  ;;  %v264_v36 = vstv %s2251_s30 }
 0x1cd   :  { %s3581_s1 = sld [smem:[#allocation26_spill]]  ;;  %v349_v22 = vstv %s2229_s10 }
 0x1ce   :  { %s3582_s3 = sld [smem:[#allocation27_spill]]  ;;  %v2361_v48 = vsel %vm95_vm13, %v349_v22, %v350_v23  ;;  %v2457_v22 = vmul.f32 %v2142_v46, %v2292_v11  ;;  %v2461_v23 = vmul.f32 %v2147_v47, %v2296_v12  ;;  %v2478_v46 = vmul.f32 %v572_v18, %v2318_v17 }
 0x1cf   :  { %v409_v1 = vstv %s2264_s28  ;;  %s2436_s28 = sld [smem:[#allocation8 + $0x3c]] }
 0x1d0   :  { %v410_v39 = vstv %s2272_s29  ;;  %s2449_s29 = sld [smem:[#allocation8 + $0x12]] }
 0x1d1   :  { %v302_v26 = vstv %s3575_s14  ;;  %v2434_v42 = vsel %vm95_vm13, %v409_v1, %v410_v39  ;;  %s2471_s30 = sld [smem:[#allocation8 + $0x43]] }
 0x1d2   :  { %v319_v28 = vstv %s3577_s16  ;;  %v2357_v43 = vsel %vm95_vm13, %v302_v26, %v303_v27  ;;  %v358_v26 = vstv %s2336_s21  ;;  %v359_v27 = vstv %s2342_s2  ;;  %s2485_s8 = sld [smem:[#allocation8 + $0x19]] }
 0x1d3   :  { %v249_v34 = vstv %s3581_s1  ;;  %v2375_v54 = vsel %vm95_vm13, %v319_v28, %v320_v29  ;;  %v373_v28 = vstv %s2350_s9  ;;  %v587_v29 = vsel %vm267_vm11, %v583_v51, 0.0  ;;  %s2518_s10 = sld [smem:[#allocation8 + $0x1e]] }
 0x1d4   :  { %v265_v40 = vstv %s3582_s3  ;;  %v2383_v58 = vsel %vm95_vm13, %v248_v33, %v249_v34  ;;  %v374_v33 = vstv %s2363_s5  ;;  %v388_v34 = vstv %s2385_s25  ;;  %s2620_s14 = sld [smem:[#allocation8 + $0x36]] }
 0x1d5   :  { %v2392_v60 = vsel %vm95_vm13, %v264_v36, %v265_v40  ;;  %v389_v36 = vstv %s2395_s26  ;;  %v615_v40 = vstv %s2407_s27  ;;  %v2508_v2 = vsel %vm95_vm13, %v358_v26, %v359_v27  ;;  %s2630_s15 = sld [smem:[#allocation8 + $0xc]] }
 0x1d6   :  { %v2516_v52 = vsel %vm95_vm13, %v373_v28, %v374_v33  ;;  %v2521_v3 = vmul.f32 %v587_v29, %v2367_v50  ;;  %v2533_v9 = vsel %vm95_vm13, %v388_v34, %v389_v36  ;;  %v2537_v18 = vsel %vm95_vm13, %v615_v40, %v616_v0  ;;  %s2635_s16 = sld [smem:[#allocation8 + $0x3d]] }
 0x1d7   :  { %3585 = vst [vmem:[#allocation35_spill] sm:$0xff] %v2537_v18  ;;  %v466_v50 = vstv %s2542_s22  ;;  %s2666_s1 = sld [smem:[#allocation8 + $0x20]] }
 0x1d8   :  { %s2671_s3 = sld [smem:[#allocation8 + $0x51]] }
 0x1d9   :  { %s2681_s21 = sld [smem:[#allocation8 + $0x58]] }
 0x1da   :  { %s2686_s2 = sld [smem:[#allocation8 + $0x2e]] }
 0x1db   :  { %s2691_s9 = sld [smem:[#allocation8 + $0x5f]] }
 0x1dc   :  { %s2697_s5 = sld [smem:[#allocation8 + $0x6]] }
 0x1dd   :  { %s2702_s25 = sld [smem:[#allocation8 + $0x37]] }
 0x1de   :  { %s2721_s26 = sld [smem:[#allocation8 + $0xd]] }
 0x1df   :  { %s2729_s27 = sld [smem:[#allocation8 + $0x3e]] }
 0x1e0   :  { %s2741_s7 = sld [smem:[#allocation8 + $0x14]] }
 0x1e1   :  { %s2778_s22 = sld [smem:[#allocation8 + $0x59]] }
 0x1e3   :  { %v830_v10 = vstv %s2702_s25 }
 0x21f   :  { %v2480_v47 = vpop.permute.xlu0 %181 }
 0x220   :  { %v195_v30 = vrot.slane %v2480_v47, 5  ;;  %v211_v49 = vrot.slane %v2480_v47, 6  ;;  %v227_v32 = vrot.slane %v2480_v47, 7  ;;  %v242_v33 = vmul.f32 %v2346_v35, %v2480_v47 }
 0x221   :  { %v252_v34 = vrot.slane %v2480_v47, 1  ;;  %v268_v0 = vrot.slane %v2480_v47, 2 }
 0x222   :  { %v200_v59 = vsel %vm194_vm7, 0.0, %v195_v30  ;;  %v216_v61 = vsel %vm210_vm8, 0.0, %v211_v49  ;;  %v232_v51 = vsel %vm226_vm9, 0.0, %v227_v32 }
 0x223   :  { %v201_v1 = vmul.f32 %v200_v59, %v2304_v14  ;;  %v217_v39 = vmul.f32 %v216_v61, %v2308_v15  ;;  %v233_v7 = vmul.f32 %v232_v51, %v2312_v16  ;;  %v2551_v36 = vpop.permute.xlu0 %294 }
 0x225   :  { %v219_v53 = vadd.f32 %v217_v39, %v201_v1  ;;  %v184_v8 = vpop.permute.xlu1 %183 }
 0x226   :  { %v196_v26 = vrot.slane %v184_v8, 5  ;;  %v212_v61 = vrot.slane %v184_v8, 6  ;;  %v228_v51 = vrot.slane %v184_v8, 7  ;;  %v253_v39 = vrot.slane %v184_v8, 1 }
 0x227   :  { %v235_v29 = vadd.f32 %v233_v7, %v219_v53  ;;  %v269_v53 = vrot.slane %v184_v8, 2  ;;  %v285_v41 = vrot.slane %v184_v8, 3 }
 0x228   :  { %v197_v40 = vsel %vm194_vm7, %v195_v30, %v196_v26  ;;  %v213_v59 = vsel %vm210_vm8, %v211_v49, %v212_v61  ;;  %v229_v55 = vsel %vm226_vm9, %v227_v32, %v228_v51  ;;  %v284_v30 = vrot.slane %v2480_v47, 3 }
 0x229   :  { %v202_v1 = vmul.f32 %v197_v40, %v2304_v14  ;;  %v244_v7 = vadd.f32 %v242_v33, %v235_v29  ;;  %v307_v26 = vrot.slane %v2551_v36, 5  ;;  %v218_v27 = vmul.f32 %v213_v59, %v2308_v15  ;;  %v2576_v49 = vpop.permute.xlu1 %296 }
 0x22a   :  { %v254_v28 = vsel %vm251_vm10, %v252_v34, %v253_v39  ;;  %v322_v40 = vrot.slane %v2551_v36, 6  ;;  %v270_v29 = vsel %vm267_vm11, %v268_v0, %v269_v53  ;;  %v337_v32 = vrot.slane %v2551_v36, 7 }
 0x22b   :  { %v258_v38 = vmul.f32 %v254_v28, %v2383_v58  ;;  %v220_v33 = vadd.f32 %v218_v27, %v202_v1  ;;  %v234_v61 = vmul.f32 %v229_v55, %v2312_v16  ;;  %v286_v47 = vsel %vm283_vm12, %v284_v30, %v285_v41 }
 0x22c   :  { %v257_v51 = vsel %vm251_vm10, %v253_v39, 0.0  ;;  %v274_v34 = vmul.f32 %v270_v29, %v2392_v60  ;;  %v312_v17 = vsel %vm194_vm7, 0.0, %v307_v26  ;;  %v243_v0 = vmul.f32 %v2346_v35, %v184_v8 }
 0x22d   :  { %v260_v59 = vadd.f32 %v258_v38, %v244_v7  ;;  %v236_v28 = vadd.f32 %v234_v61, %v220_v33  ;;  %v327_v27 = vsel %vm210_vm8, 0.0, %v322_v40  ;;  %v273_v55 = vsel %vm267_vm11, %v269_v53, 0.0 }
 0x22e   :  { %v290_v39 = vmul.f32 %v286_v47, %v2430_v31  ;;  %v342_v38 = vsel %vm226_vm9, 0.0, %v337_v32  ;;  %v259_v30 = vmul.f32 %v257_v51, %v2383_v58  ;;  %v481_v29 = vstv %s2556_s4  ;;  %s2833_s4 = sld [smem:[#allocation8 + $0x60]] }
 0x22f   :  { %v276_v1 = vadd.f32 %v274_v34, %v260_v59  ;;  %v245_v7 = vadd.f32 %v243_v0, %v236_v28  ;;  %v313_v33 = vmul.f32 %v312_v17, %v2357_v43  ;;  %v289_v8 = vsel %vm283_vm12, %v285_v41, 0.0 }
 0x230   :  { %v308_v12 = vrot.slane %v2576_v49, 5  ;;  %v328_v53 = vmul.f32 %v327_v27, %v2375_v54  ;;  %v275_v47 = vmul.f32 %v273_v55, %v2392_v60  ;;  %v323_v34 = vrot.slane %v2576_v49, 6 }
 0x231   :  { %v292_v61 = vadd.f32 %v290_v39, %v276_v1  ;;  %v261_v59 = vadd.f32 %v259_v30, %v245_v7  ;;  %v338_v0 = vrot.slane %v2576_v49, 7  ;;  %v362_v17 = vrot.slane %v2576_v49, 1 }
 0x232   :  { %v309_v51 = vsel %vm194_vm7, %v307_v26, %v308_v12  ;;  %v352_v41 = vmul.f32 %v2361_v48, %v2551_v36  ;;  %v361_v1 = vrot.slane %v2551_v36, 1  ;;  %v291_v27 = vmul.f32 %v289_v8, %v2430_v31 }
 0x233   :  { %v315_v28 = vadd.f32 %v313_v33, %v292_v61  ;;  %v277_v39 = vadd.f32 %v275_v47, %v261_v59  ;;  %v343_v7 = vmul.f32 %v342_v38, %v2379_v56  ;;  %v376_v55 = vrot.slane %v2551_v36, 2  ;;  %v2602_v33 = vpop.permute.xlu0 %401 }
 0x234   :  { %v324_v12 = vsel %vm210_vm8, %v322_v40, %v323_v34  ;;  %v314_v61 = vmul.f32 %v309_v51, %v2357_v43  ;;  %v363_v11 = vsel %vm251_vm10, %v361_v1, %v362_v17  ;;  %v377_v8 = vrot.slane %v2576_v49, 2 }
 0x235   :  { %v330_v30 = vadd.f32 %v328_v53, %v315_v28  ;;  %v293_v26 = vadd.f32 %v291_v27, %v277_v39  ;;  %v391_v38 = vrot.slane %v2551_v36, 3  ;;  %v339_v53 = vsel %vm226_vm9, %v337_v32, %v338_v0 }
 0x236   :  { %v392_v40 = vrot.slane %v2576_v49, 3  ;;  %v414_v47 = vrot.slane %v2602_v33, 5  ;;  %v329_v28 = vmul.f32 %v324_v12, %v2375_v54  ;;  %v378_v51 = vsel %vm267_vm11, %v376_v55, %v377_v8 }
 0x237   :  { %v345_v59 = vadd.f32 %v343_v7, %v330_v30  ;;  %v316_v34 = vadd.f32 %v314_v61, %v293_v26  ;;  %v367_v39 = vmul.f32 %v363_v11, %v2508_v2  ;;  %v663_v36 = vstv %s2588_s24  ;;  %v2643_v26 = vpop.permute.xlu1 %403  ;;  %s2863_s24 = sld [smem:[#allocation8 + $0x22]] }
 0x238   :  { %v3586_v27 = vstv %s2518_s10  ;;  %v429_v0 = vrot.slane %v2602_v33, 6  ;;  %v344_v30 = vmul.f32 %v339_v53, %v2379_v56  ;;  %v393_v55 = vsel %vm283_vm12, %v391_v38, %v392_v40  ;;  %s2773_s10 = sld [smem:[#allocation8 + $0x28]] }
 0x239   :  { %v354_v1 = vadd.f32 %v352_v41, %v345_v59  ;;  %v2628_v32 = vsel %vm95_vm13, %v3586_v27, %v466_v50  ;;  %v331_v7 = vadd.f32 %v329_v28, %v316_v34  ;;  %v366_v11 = vsel %vm251_vm10, %v362_v17, 0.0 }
 0x23a   :  { %3587 = vst [vmem:[#allocation36_spill] sm:$0xff] %v2628_v32  ;;  %v382_v12 = vmul.f32 %v378_v51, %v2516_v52  ;;  %v2641_v50 = vsel %vm95_vm13, %v480_v13, %v481_v29  ;;  %v419_v61 = vsel %vm194_vm7, 0.0, %v414_v47  ;;  %v444_v38 = vrot.slane %v2602_v33, 7 }
 0x23b   :  { %v369_v41 = vadd.f32 %v367_v39, %v354_v1  ;;  %3588 = vst [vmem:[#allocation37_spill] sm:$0xff] %v2641_v50  ;;  %v346_v53 = vadd.f32 %v344_v30, %v331_v7  ;;  %v353_v59 = vmul.f32 %v2361_v48, %v2576_v49  ;;  %v381_v17 = vsel %vm267_vm11, %v377_v8, 0.0 }
 0x23c   :  { %v397_v13 = vmul.f32 %v393_v55, %v2533_v9  ;;  %v495_v29 = vstv %s2605_s11  ;;  %v434_v28 = vsel %vm210_vm8, 0.0, %v429_v0  ;;  %v368_v1 = vmul.f32 %v366_v11, %v2508_v2  ;;  %s2872_s11 = sld [smem:[#allocation8 + $0x53]] }
 0x23d   :  { %v384_v34 = vadd.f32 %v382_v12, %v369_v41  ;;  %v355_v51 = vadd.f32 %v353_v59, %v346_v53  ;;  %v415_v39 = vrot.slane %v2643_v26, 5  ;;  %v420_v49 = vmul.f32 %v419_v61, %v2434_v42 }
 0x23e   :  { %v396_v27 = vsel %vm283_vm12, %v392_v40, 0.0  ;;  %v430_v7 = vrot.slane %v2643_v26, 6  ;;  %v449_v30 = vsel %vm226_vm9, 0.0, %v444_v38  ;;  %v383_v41 = vmul.f32 %v381_v17, %v2516_v52 }
 0x23f   :  { %v399_v8 = vadd.f32 %v397_v13, %v384_v34  ;;  %v370_v55 = vadd.f32 %v368_v1, %v355_v51  ;;  %v469_v11 = vrot.slane %v2643_v26, 1  ;;  %v435_v12 = vmul.f32 %v434_v28, %v2447_v44 }
 0x240   :  { %v416_v61 = vsel %vm194_vm7, %v414_v47, %v415_v39  ;;  %v445_v40 = vrot.slane %v2643_v26, 7  ;;  %v468_v59 = vrot.slane %v2602_v33, 1  ;;  %v483_v34 = vrot.slane %v2602_v33, 2 }
 0x241   :  { %v422_v53 = vadd.f32 %v420_v49, %v399_v8  ;;  %v385_v13 = vadd.f32 %v383_v41, %v370_v55  ;;  %v398_v17 = vmul.f32 %v396_v27, %v2533_v9  ;;  %v450_v51 = vmul.f32 %v449_v30, %v2465_v24 }
 0x242   :  { %v431_v1 = vsel %vm210_vm8, %v429_v0, %v430_v7  ;;  %v484_v47 = vrot.slane %v2643_v26, 2  ;;  %v421_v49 = vmul.f32 %v416_v61, %v2434_v42  ;;  %v470_v27 = vsel %vm251_vm10, %v468_v59, %v469_v11 }
 0x243   :  { %v437_v28 = vadd.f32 %v435_v12, %v422_v53  ;;  %v400_v39 = vadd.f32 %v398_v17, %v385_v13  ;;  %v499_v8 = vrot.slane %v2643_v26, 3  ;;  %v459_v0 = vmul.f32 %v2469_v25, %v2602_v33 }
 0x244   :  { %v496_v7 = vstv %s2610_s12  ;;  %v446_v30 = vsel %vm226_vm9, %v444_v38, %v445_v40  ;;  %v498_v41 = vrot.slane %v2602_v33, 3  ;;  %v436_v53 = vmul.f32 %v431_v1, %v2447_v44  ;;  %s2881_s12 = sld [smem:[#allocation8 + $0x29]] }
 0x245   :  { %v452_v55 = vadd.f32 %v450_v51, %v437_v28  ;;  %v423_v12 = vadd.f32 %v421_v49, %v400_v39  ;;  %v485_v61 = vsel %vm267_vm11, %v483_v34, %v484_v47  ;;  %v3589_v59 = vstv %s2436_s28  ;;  %s2752_s28 = sld [smem:[#allocation8 + $0x1b]] }
 0x246   :  { %v3590_v13 = vstv %s2423_s6  ;;  %v3591_v38 = vstv %s2471_s30  ;;  %v3592_v40 = vstv %s2449_s29  ;;  %v474_v28 = vmul.f32 %v470_v27, %v2628_v32  ;;  %s2747_s6 = sld [smem:[#allocation8 + $0x45]] }
 0x247   :  { %v2710_v17 = vsel %vm95_vm13, %v3590_v13, %v3589_v59  ;;  %v2718_v51 = vsel %vm95_vm13, %v3592_v40, %v3591_v38  ;;  %v461_v33 = vadd.f32 %v459_v0, %v452_v55  ;;  %v2725_v34 = vsel %vm95_vm13, %v495_v29, %v496_v7  ;;  %s2757_s29 = sld [smem:[#allocation8 + $0x4c]] }
 0x248   :  { %3593 = vst [vmem:[#allocation38_spill] sm:$0xff] %v2725_v34  ;;  %v438_v1 = vadd.f32 %v436_v53, %v423_v12  ;;  %v451_v39 = vmul.f32 %v446_v30, %v2465_v24  ;;  %v500_v49 = vsel %vm283_vm12, %v498_v41, %v499_v8  ;;  %v3594_v59 = vstv %s2485_s8  ;;  %s2762_s30 = sld [smem:[#allocation8 + $0x21]] }
 0x249   :  { %v2737_v0 = vsel %vm95_vm13, %v3594_v59, %v663_v36  ;;  %v473_v27 = vsel %vm251_vm10, %v469_v11, 0.0  ;;  %v476_v55 = vadd.f32 %v474_v28, %v461_v33  ;;  %v489_v29 = vmul.f32 %v485_v61, %v2641_v50  ;;  %s2767_s8 = sld [smem:[#allocation8 + $0x52]] }
 0x24a   :  { %3595 = vst [vmem:[#allocation39_spill] sm:$0xff] %v2737_v0  ;;  %v453_v7 = vadd.f32 %v451_v39, %v438_v1  ;;  %v460_v30 = vmul.f32 %v2469_v25, %v2643_v26  ;;  %v722_v41 = vstv %s2615_s13  ;;  %v723_v12 = vstv %s2620_s14  ;;  %s2896_s13 = sld [smem:[#allocation8 + $0x5a]] }
 0x24b   :  { %v488_v36 = vsel %vm267_vm11, %v484_v47, 0.0  ;;  %v491_v11 = vadd.f32 %v489_v29, %v476_v55  ;;  %v504_v53 = vmul.f32 %v500_v49, %v2725_v34  ;;  %v739_v61 = vstv %s2630_s15  ;;  %s2946_s14 = sld [smem:[#allocation8 + $0x30]] }
 0x24c   :  { %v462_v13 = vadd.f32 %v460_v30, %v453_v7  ;;  %v475_v26 = vmul.f32 %v473_v27, %v2628_v32  ;;  %v740_v38 = vstv %s2635_s16  ;;  %v754_v40 = vstv %s2645_s17  ;;  %s2979_s15 = sld [smem:[#allocation8 + $0x61]] }
 0x24d   :  { %v503_v47 = vsel %vm283_vm12, %v499_v8, 0.0  ;;  %v506_v33 = vadd.f32 %v504_v53, %v491_v11  ;;  %v755_v28 = vstv %s2651_s18  ;;  %v769_v1 = vstv %s2656_s19 }
 0x24e   :  { %v477_v39 = vadd.f32 %v475_v26, %v462_v13  ;;  %v490_v49 = vmul.f32 %v488_v36, %v2641_v50  ;;  %v770_v59 = vstv %s2661_s0  ;;  %v671_v27 = vstv %s2666_s1  ;;  %v2780_v36 = vpop.permute.xlu0 %607 }
 0x24f   :  { %v521_v55 = vadd.f32 %v2398_v62, %v506_v33  ;;  %v672_v29 = vstv %s2671_s3  ;;  %v686_v8 = vstv %s2676_s20  ;;  %v687_v7 = vstv %s2681_s21 }
 0x250   :  { %v492_v30 = vadd.f32 %v490_v49, %v477_v39  ;;  %v505_v11 = vmul.f32 %v503_v47, %v2725_v34  ;;  %v701_v53 = vstv %s2686_s2  ;;  %v702_v13 = vstv %s2691_s9 }
 0x251   :  { %v536_v26 = vadd.f32 %v2418_v6, %v521_v55  ;;  %v2785_v62 = vsel %vm95_vm13, %v722_v41, %v723_v12  ;;  %v829_v33 = vstv %s2697_s5  ;;  %v2791_v47 = vsel %vm95_vm13, %v739_v61, %v740_v38 }
 0x252   :  { %3596 = vst [vmem:[#allocation40_spill] sm:$0xff] %v2785_v62  ;;  %v507_v39 = vadd.f32 %v505_v11, %v492_v30  ;;  %v2795_v49 = vsel %vm95_vm13, %v754_v40, %v755_v28  ;;  %v2799_v6 = vsel %vm95_vm13, %v769_v1, %v770_v59  ;;  %v2804_v12 = vsel %vm95_vm13, %v671_v27, %v672_v29 }
 0x253   :  { %v551_v41 = vadd.f32 %v2439_v19, %v536_v26  ;;  %v2808_v61 = vsel %vm95_vm13, %v686_v8, %v687_v7  ;;  %v2812_v38 = vsel %vm95_vm13, %v701_v53, %v702_v13  ;;  %v620_v40 = vrot.slane %v2780_v36, 5 }
 0x254   :  { %3597 = vst [vmem:[#allocation41_spill] sm:$0xff] %v2812_v38  ;;  %v522_v28 = vadd.f32 %v2453_v21, %v507_v39  ;;  %v2818_v19 = vsel %vm95_vm13, %v829_v33, %v830_v10  ;;  %v846_v1 = vstv %s2721_s26  ;;  %v847_v27 = vstv %s2729_s27  ;;  %v2829_v21 = vpop.permute.xlu1 %609 }
 0x255   :  { %v560_v59 = vadd.f32 %v2402_v63, %v551_v41  ;;  %v861_v55 = vstv %s2741_s7  ;;  %v862_v29 = vstv %s2747_s6  ;;  %v635_v8 = vrot.slane %v2780_v36, 6  ;;  %s3069_s7 = sld [smem:[#allocation9]] }
 0x256   :  { %v537_v7 = vadd.f32 %v2457_v22, %v522_v28  ;;  %v876_v30 = vstv %s2752_s28  ;;  %v877_v11 = vstv %s2757_s29  ;;  %v778_v53 = vstv %s2762_s30  ;;  %s3071_s6 = sld [smem:[#allocation9 + $0x1]] }
 0x257   :  { %v575_v10 = vadd.f32 %v2475_v45, %v560_v59  ;;  %v779_v13 = vstv %s2767_s8  ;;  %v793_v26 = vstv %s2773_s10  ;;  %v625_v63 = vsel %vm194_vm7, 0.0, %v620_v40  ;;  %s3074_s29 = sld [smem:[#allocation11]] }
 0x258   :  { %v650_v33 = vrot.slane %v2780_v36, 7  ;;  %v552_v39 = vadd.f32 %v2461_v23, %v537_v7  ;;  %v794_v41 = vstv %s2778_s22  ;;  %v621_v28 = vrot.slane %v2829_v21, 5  ;;  %s3076_s30 = sld [smem:[#allocation11 + $0x1]] }
 0x259   :  { %v590_v22 = vadd.f32 %v2512_v37, %v575_v10  ;;  %v2847_v34 = vsel %vm95_vm13, %v846_v1, %v847_v27  ;;  %v2851_v45 = vsel %vm95_vm13, %v861_v55, %v862_v29  ;;  %v640_v59 = vsel %vm210_vm8, 0.0, %v635_v8 }
 0x25a   :  { %v561_v50 = vadd.f32 %v2443_v20, %v552_v39  ;;  %v2857_v23 = vsel %vm95_vm13, %v876_v30, %v877_v11  ;;  %v2861_v37 = vsel %vm95_vm13, %v778_v53, %v779_v13  ;;  %v626_v1 = vmul.f32 %v625_v63, %v2537_v18 }
 0x25b   :  { %v605_v27 = vadd.f32 %v2525_v4, %v590_v22  ;;  %v636_v55 = vrot.slane %v2829_v21, 6  ;;  %v2870_v20 = vsel %vm95_vm13, %v793_v26, %v794_v41  ;;  %v655_v29 = vsel %vm226_vm9, 0.0, %v650_v33  ;;  %v2889_v22 = vpop.permute.xlu0 %714 }
 0x25c   :  { %v576_v7 = vadd.f32 %v2478_v46, %v561_v50  ;;  %v675_v30 = vrot.slane %v2829_v21, 1  ;;  %v641_v10 = vmul.f32 %v640_v59, %v2710_v17  ;;  %v622_v4 = vsel %vm194_vm7, %v620_v40, %v621_v28 }
 0x25d   :  { %v628_v53 = vadd.f32 %v626_v1, %v605_v27  ;;  %v651_v13 = vrot.slane %v2829_v21, 7  ;;  %v674_v26 = vrot.slane %v2780_v36, 1  ;;  %v690_v39 = vrot.slane %v2829_v21, 2 }
 0x25e   :  { %v591_v63 = vadd.f32 %v2521_v3, %v576_v7  ;;  %v656_v46 = vmul.f32 %v655_v29, %v2718_v51  ;;  %v689_v50 = vrot.slane %v2780_v36, 2  ;;  %v637_v40 = vsel %vm210_vm8, %v635_v8, %v636_v55 }
 0x25f   :  { %v643_v28 = vadd.f32 %v641_v10, %v628_v53  ;;  %v627_v1 = vmul.f32 %v622_v4, %v2537_v18  ;;  %v676_v3 = vsel %vm251_vm10, %v674_v26, %v675_v30  ;;  %v705_v27 = vrot.slane %v2829_v21, 3 }
 0x260   :  { %v606_v59 = vadd.f32 %v2528_v5, %v591_v63  ;;  %v665_v29 = vmul.f32 %v2737_v0, %v2780_v36  ;;  %v704_v7 = vrot.slane %v2780_v36, 3  ;;  %v652_v8 = vsel %vm226_vm9, %v650_v33, %v651_v13  ;;  %v2911_v13 = vpop.permute.xlu1 %716 }
 0x261   :  { %v658_v55 = vadd.f32 %v656_v46, %v643_v28  ;;  %v727_v10 = vrot.slane %v2889_v22, 5  ;;  %v642_v4 = vmul.f32 %v637_v40, %v2710_v17  ;;  %v691_v53 = vsel %vm267_vm11, %v689_v50, %v690_v39 }
 0x262   :  { %v629_v5 = vadd.f32 %v627_v1, %v606_v59  ;;  %v680_v63 = vmul.f32 %v676_v3, %v2804_v12  ;;  %v885_v11 = vstv %s2863_s24  ;;  %v886_v41 = vstv %s2872_s11  ;;  %s3604_s11 = smov 3  }
 0x263   :  { %v667_v26 = vadd.f32 %v665_v29, %v658_v55  ;;  %v742_v18 = vrot.slane %v2889_v22, 6  ;;  %v657_v36 = vmul.f32 %v652_v8, %v2718_v51  ;;  %v706_v33 = vsel %vm283_vm12, %v704_v7, %v705_v27 }
 0x264   :  { %v644_v32 = vadd.f32 %v642_v4, %v629_v5  ;;  %v679_v46 = vsel %vm251_vm10, %v675_v30, 0.0  ;;  %v695_v50 = vmul.f32 %v691_v53, %v2808_v61  ;;  %v900_v28 = vstv %s2881_s12  ;;  %s3605_s12 = smov 1  }
 0x265   :  { %v682_v40 = vadd.f32 %v680_v63, %v667_v26  ;;  %v732_v59 = vsel %vm194_vm7, 0.0, %v727_v10  ;;  %v757_v1 = vrot.slane %v2889_v22, 7  ;;  %v666_v29 = vmul.f32 %v2737_v0, %v2829_v21 }
 0x266   :  { %v659_v3 = vadd.f32 %v657_v36, %v644_v32  ;;  %v694_v8 = vsel %vm267_vm11, %v690_v39, 0.0  ;;  %v710_v55 = vmul.f32 %v706_v33, %v2812_v38  ;;  %v728_v5 = vrot.slane %v2911_v13, 5 }
 0x267   :  { %v697_v7 = vadd.f32 %v695_v50, %v682_v40  ;;  %v747_v30 = vsel %vm210_vm8, 0.0, %v742_v18  ;;  %v681_v53 = vmul.f32 %v679_v46, %v2804_v12  ;;  %v901_v26 = vstv %s2896_s13  ;;  %s3606_s13 = smov 2  }
 0x268   :  { %v668_v4 = vadd.f32 %v666_v29, %v659_v3  ;;  %v733_v63 = vmul.f32 %v732_v59, %v2785_v62  ;;  %v709_v32 = vsel %vm283_vm12, %v705_v27, 0.0  ;;  %v743_v21 = vrot.slane %v2911_v13, 6 }
 0x269   :  { %v712_v36 = vadd.f32 %v710_v55, %v697_v7  ;;  %v762_v39 = vsel %vm226_vm9, 0.0, %v757_v1  ;;  %v696_v33 = vmul.f32 %v694_v8, %v2808_v61  ;;  %v782_v50 = vrot.slane %v2911_v13, 1 }
 0x26a   :  { %v683_v40 = vadd.f32 %v681_v53, %v668_v4  ;;  %v748_v0 = vmul.f32 %v747_v30, %v2791_v47  ;;  %v729_v46 = vsel %vm194_vm7, %v727_v10, %v728_v5  ;;  %v758_v29 = vrot.slane %v2911_v13, 7  ;;  %v2940_v30 = vpop.permute.xlu0 %821 }
 0x26b   :  { %v735_v3 = vadd.f32 %v733_v63, %v712_v36  ;;  %v781_v59 = vrot.slane %v2889_v22, 1  ;;  %v711_v7 = vmul.f32 %v709_v32, %v2812_v38  ;;  %v797_v55 = vrot.slane %v2911_v13, 2 }
 0x26c   :  { %v698_v27 = vadd.f32 %v696_v33, %v683_v40  ;;  %v763_v4 = vmul.f32 %v762_v39, %v2795_v49  ;;  %v796_v8 = vrot.slane %v2889_v22, 2  ;;  %v744_v10 = vsel %vm210_vm8, %v742_v18, %v743_v21 }
 0x26d   :  { %v750_v53 = vadd.f32 %v748_v0, %v735_v3  ;;  %v734_v63 = vmul.f32 %v729_v46, %v2785_v62  ;;  %v783_v36 = vsel %vm251_vm10, %v781_v59, %v782_v50  ;;  %v812_v32 = vrot.slane %v2911_v13, 3 }
 0x26e   :  { %v713_v5 = vadd.f32 %v711_v7, %v698_v27  ;;  %v772_v39 = vmul.f32 %v2799_v6, %v2889_v22  ;;  %v811_v0 = vrot.slane %v2889_v22, 3  ;;  %v759_v40 = vsel %vm226_vm9, %v757_v1, %v758_v29 }
 0x26f   :  { %v765_v33 = vadd.f32 %v763_v4, %v750_v53  ;;  %v834_v3 = vrot.slane %v2940_v30, 5  ;;  %v749_v21 = vmul.f32 %v744_v10, %v2791_v47  ;;  %v798_v46 = vsel %vm267_vm11, %v796_v8, %v797_v55  ;;  %v2971_v53 = vpop.permute.xlu1 %823 }
 0x270   :  { %v736_v18 = vadd.f32 %v734_v63, %v713_v5  ;;  %v3598_v59 = vstv %s2833_s4  ;;  %v3599_v27 = vstv %s2821_s23  ;;  %v787_v38 = vmul.f32 %v783_v36, %v2861_v37 }
 0x271   :  { %v2961_v7 = vsel %vm95_vm13, %v3599_v27, %v3598_v59  ;;  %v774_v62 = vadd.f32 %v772_v39, %v765_v33  ;;  %v2966_v22 = vsel %vm95_vm13, %v885_v11, %v886_v41  ;;  %v849_v1 = vrot.slane %v2940_v30, 6 }
 0x272   :  { %v751_v29 = vadd.f32 %v749_v21, %v736_v18  ;;  %v764_v4 = vmul.f32 %v759_v40, %v2795_v49  ;;  %v813_v8 = vsel %vm283_vm12, %v811_v0, %v812_v32  ;;  %v786_v10 = vsel %vm251_vm10, %v782_v50, 0.0 }
 0x273   :  { %v789_v5 = vadd.f32 %v787_v38, %v774_v62  ;;  %v802_v63 = vmul.f32 %v798_v46, %v2870_v20  ;;  %v2977_v36 = vsel %vm95_vm13, %v900_v28, %v901_v26  ;;  %v839_v11 = vsel %vm194_vm7, 0.0, %v834_v3 }
 0x274   :  { %3600 = vst [vmem:[#allocation42_spill] sm:$0xff] %v2977_v36  ;;  %v864_v41 = vrot.slane %v2940_v30, 7  ;;  %v766_v39 = vadd.f32 %v764_v4, %v751_v29  ;;  %v773_v0 = vmul.f32 %v2799_v6, %v2911_v13  ;;  %v801_v50 = vsel %vm267_vm11, %v797_v55, 0.0 }
 0x275   :  { %v804_v40 = vadd.f32 %v802_v63, %v789_v5  ;;  %v817_v62 = vmul.f32 %v813_v8, %v2961_v7  ;;  %v835_v38 = vrot.slane %v2971_v53, 5  ;;  %v854_v28 = vsel %vm210_vm8, 0.0, %v849_v1 }
 0x276   :  { %v775_v26 = vadd.f32 %v773_v0, %v766_v39  ;;  %v788_v33 = vmul.f32 %v786_v10, %v2861_v37  ;;  %v915_v18 = vstv %s2946_s14  ;;  %v840_v21 = vmul.f32 %v839_v11, %v2818_v19  ;;  %s3607_s14 = smov 127  }
 0x277   :  { %v816_v46 = vsel %vm283_vm12, %v812_v32, 0.0  ;;  %v819_v59 = vadd.f32 %v817_v62, %v804_v40  ;;  %v850_v13 = vrot.slane %v2971_v53, 6  ;;  %v869_v55 = vsel %vm226_vm9, 0.0, %v864_v41 }
 0x278   :  { %v790_v27 = vadd.f32 %v788_v33, %v775_v26  ;;  %v803_v29 = vmul.f32 %v801_v50, %v2870_v20  ;;  %v889_v4 = vrot.slane %v2971_v53, 1  ;;  %v855_v8 = vmul.f32 %v854_v28, %v2847_v34 }
 0x279   :  { %v836_v10 = vsel %vm194_vm7, %v834_v3, %v835_v38  ;;  %v865_v5 = vrot.slane %v2971_v53, 7  ;;  %v842_v63 = vadd.f32 %v840_v21, %v819_v59  ;;  %v888_v32 = vrot.slane %v2940_v30, 1 }
 0x27a   :  { %v805_v11 = vadd.f32 %v803_v29, %v790_v27  ;;  %v818_v39 = vmul.f32 %v816_v46, %v2961_v7  ;;  %v904_v0 = vrot.slane %v2971_v53, 2  ;;  %v870_v40 = vmul.f32 %v869_v55, %v2851_v45 }
 0x27b   :  { %v851_v50 = vsel %vm210_vm8, %v849_v1, %v850_v13  ;;  %v857_v62 = vadd.f32 %v855_v8, %v842_v63  ;;  %v916_v26 = vstv %s2979_s15  ;;  %v903_v28 = vrot.slane %v2940_v30, 2  ;;  %s3608_s15 = smov 126  }
 0x27c   :  { %v820_v33 = vadd.f32 %v818_v39, %v805_v11  ;;  %v841_v3 = vmul.f32 %v836_v10, %v2818_v19  ;;  %v890_v38 = vsel %vm251_vm10, %v888_v32, %v889_v4  ;;  %v879_v21 = vmul.f32 %v2857_v23, %v2940_v30 }
 0x27d   :  { %v866_v46 = vsel %vm226_vm9, %v864_v41, %v865_v5  ;;  %v919_v59 = vrot.slane %v2971_v53, 3  ;;  %v872_v27 = vadd.f32 %v870_v40, %v857_v62  ;;  %v856_v1 = vmul.f32 %v851_v50, %v2847_v34 }
 0x27e   :  { %v843_v55 = vadd.f32 %v841_v3, %v820_v33  ;;  %v96_v13 = vand.u32 31, %v2245_v57  ;;  %v905_v29 = vsel %vm267_vm11, %v903_v28, %v904_v0  ;;  %v918_v8 = vrot.slane %v2940_v30, 3 }
 0x27f   :  { %v881_v10 = vadd.f32 %v879_v21, %v872_v27  ;;  %v894_v63 = vmul.f32 %v890_v38, %v2966_v22  ;;  %v871_v32 = vmul.f32 %v866_v46, %v2851_v45  ;;  %v3021_v41 = vsel %vm95_vm13, %v915_v18, %v916_v26 }
 0x280   :  { %v858_v11 = vadd.f32 %v856_v1, %v843_v55  ;;  %3601 = vst [vmem:[#allocation43_spill] sm:$0xff] %v3021_v41  ;;  %v893_v5 = vsel %vm251_vm10, %v889_v4, 0.0  ;;  %v909_v40 = vmul.f32 %v905_v29, %v2977_v36  ;;  %v920_v50 = vsel %vm283_vm12, %v918_v8, %v919_v59 }
 0x281   :  { %v896_v39 = vadd.f32 %v894_v63, %v881_v10  ;;  %v880_v30 = vmul.f32 %v2857_v23, %v2971_v53  ;;  %vm97_vm14 = vcmp.lt.s32.totalorder %v96_v13, 16  ;;  %v908_v28 = vsel %vm267_vm11, %v904_v0, 0.0 }
 0x282   :  { %v873_v62 = vadd.f32 %v871_v32, %v858_v11  ;;  %v895_v38 = vmul.f32 %v893_v5, %v2966_v22  ;;  %v924_v18 = vmul.f32 %v920_v50, %v3021_v41  ;;  %v2034_v26 = vmov 0.0  }
 0x283   :  { %v911_v33 = vadd.f32 %v909_v40, %v896_v39  ;;  %v3031_v4 = vsel %vm97_vm14, 1.0, %v2034_v26  ;;  %v99_v21 = vsel %vm95_vm13, 1.0, %v2034_v26  ;;  %v923_v46 = vsel %vm283_vm12, %v919_v59, 0.0 }
 0x284   :  { %v882_v3 = vadd.f32 %v880_v30, %v873_v62  ;;  %v910_v53 = vmul.f32 %v908_v28, %v2977_v36  ;;  %v3040_v0 = vmul.f32 %v99_v21, %v3031_v4  ;;  %v925_v13 = vmul.f32 %v923_v46, %v3021_v41 }
 0x285   :  { %v3037_v55 = vadd.f32 %v924_v18, %v911_v33 }
 0x286   :  { %v897_v27 = vadd.f32 %v895_v38, %v882_v3  ;;  %3602 = vst [vmem:[#allocation44_spill] sm:$0xff] %v3040_v0  ;;  %v3055_v32 = vsub.f32 %v3031_v4, %v3040_v0 }
 0x287   :  { %v940_v8 = vmul.f32 %v3037_v55, %v3037_v55  ;;  %v928_v10 = vmul.f32 %v3037_v55, %v3040_v0 }
 0x288   :  { %v912_v1 = vadd.f32 %v910_v53, %v897_v27  ;;  %3603 = vst [vmem:[#allocation45_spill] sm:$0xff] %v3055_v32  ;;  %v962_v30 = vmul.f32 %v3037_v55, %v3055_v32 }
 0x289   :  { %v942_v5 = vmul.f32 %v940_v8, %v3040_v0  ;;  %v974_v33 = vmul.f32 %v940_v8, %v3055_v32 }
 0x28a   :  { %v3043_v29 = vadd.f32 %v925_v13, %v912_v1 }
 0x28c   :  { %v929_v59 = vmul.f32 %v3043_v29, %v3040_v0  ;;  %v941_v63 = vmul.f32 %v3043_v29, %v3043_v29  ;;  %v963_v40 = vmul.f32 %v3043_v29, %v3055_v32 }
 0x28e   :  { %v930_v11 = vadd.f32 %v929_v59, %v928_v10  ;;  %v943_v39 = vmul.f32 %v941_v63, %v3040_v0  ;;  %v964_v62 = vadd.f32 %v963_v40, %v962_v30  ;;  %v975_v28 = vmul.f32 %v941_v63, %v3055_v32 }
 0x290   :  { %931 = vadd.xlane.f32.xlu0 %v930_v11  ;;  %v944_v50 = vadd.f32 %v943_v39, %v942_v5  ;;  %v976_v3 = vadd.f32 %v975_v28, %v974_v33 }
 0x292   :  { %945 = vadd.xlane.f32.xlu1 %v944_v50 }
 0x294   :  { %965 = vadd.xlane.f32.xlu0 %v964_v62 }
 0x298   :  { %977 = vadd.xlane.f32.xlu0 %v976_v3 }
 0x319   :  { %v932_v38 = vpop.xlane.xlu0 %931 }
 0x31a   :  { %v933_v18 = vrot.slane %v932_v38, 4 }
 0x31b   :  { %v946_v26 = vpop.xlane.xlu1 %945 }
 0x31c   :  { %v934_v21 = vadd.f32 %v933_v18, %v932_v38  ;;  %v947_v46 = vrot.slane %v946_v26, 4 }
 0x31d   :  { %v966_v39 = vpop.xlane.xlu0 %965 }
 0x31e   :  { %v935_v27 = vrot.slane %v934_v21, 2  ;;  %v948_v53 = vadd.f32 %v947_v46, %v946_v26  ;;  %v967_v40 = vrot.slane %v966_v39, 4 }
 0x320   :  { %v949_v1 = vrot.slane %v948_v53, 2  ;;  %v936_v13 = vadd.f32 %v935_v27, %v934_v21  ;;  %v968_v30 = vadd.f32 %v967_v40, %v966_v39 }
 0x321   :  { %v978_v8 = vpop.xlane.xlu0 %977 }
 0x322   :  { %v937_v10 = vrot.slane %v936_v13, 1  ;;  %v950_v59 = vadd.f32 %v949_v1, %v948_v53  ;;  %v979_v50 = vrot.slane %v978_v8, 4  ;;  %v969_v33 = vrot.slane %v968_v30, 2 }
 0x324   :  { %v938_v11 = vadd.f32 %v937_v10, %v936_v13  ;;  %v951_v5 = vrot.slane %v950_v59, 1  ;;  %v980_v62 = vadd.f32 %v979_v50, %v978_v8  ;;  %v970_v38 = vadd.f32 %v969_v33, %v968_v30 }
 0x326   :  { %1847 = vpush %v938_v11  ;;  %v952_v63 = vadd.f32 %v951_v5, %v950_v59  ;;  %v981_v3 = vrot.slane %v980_v62, 2  ;;  %v971_v26 = vrot.slane %v970_v38, 1 }
 0x328   :  { %1849 = vpush %v952_v63  ;;  %v982_v18 = vadd.f32 %v981_v3, %v980_v62  ;;  %v972_v27 = vadd.f32 %v971_v26, %v970_v38 }
 0x32a   :  { %v983_v21 = vrot.slane %v982_v18, 1 }
 0x32c   :  { %v984_v53 = vadd.f32 %v983_v21, %v982_v18 }
 0x357   :  { %s1848_s16 = spop %1847 }
 0x358   :  { %s3065_s17 = smul.f32 0.001953125, %s1848_s16  ;;  %s3609_s16 = smov 125  }
 0x359   :  { %s1850_s18 = spop %1849 }
 0x35a   :  { %s956_s19 = smul.f32 %s3065_s17, %s3065_s17 }
 0x35b   :  { %s955_s0 = smul.f32 0.001953125, %s1850_s18 }
 0x35d   :  { %s957_s1 = ssub.f32 %s955_s0, %s956_s19 }
 0x35f   :  { %s958_s3 = sadd.f32 1e-05, %s957_s1 }
 0x361   :  { %v959_v28 = vstv %s958_s3 }
 0x362   :  { %1899 = vrsqrt.f32 %v959_v28 }
 0x36f   :  { %v1900_v46 = vpop.eup %1899 }
 0x370   :  { %1851 = vpush %v1900_v46 }
 0x371   :  { %1853 = vpush %v972_v27 }
 0x372   :  { %1855 = vpush %v984_v53 }
 0x3a1   :  { %s1852_s20 = spop %1851 }
 0x3a2   :  { %s1854_s21 = spop %1853  ;;  %s995_s28 = smul.f32 %s1852_s20, %s3069_s7 }
 0x3a3   :  { %s986_s2 = smul.f32 0.001953125, %s1854_s21  ;;  %s1856_s9 = spop %1855 }
 0x3a4   :  { %s987_s25 = smul.f32 0.001953125, %s1856_s9  ;;  %v1004_v10 = vstv %s995_s28 }
 0x3a5   :  { %s988_s5 = smul.f32 %s986_s2, %s986_s2 }
 0x3a6   :  { %s999_s8 = smul.f32 %s995_s28, %s3065_s17 }
 0x3a7   :  { %s989_s26 = ssub.f32 %s987_s25, %s988_s5 }
 0x3a8   :  { %s1000_s23 = ssub.f32 %s3074_s29, %s999_s8 }
 0x3a9   :  { %s990_s27 = sadd.f32 1e-05, %s989_s26 }
 0x3aa   :  { %v1007_v5 = vstv %s1000_s23 }
 0x3ab   :  { %v991_v1 = vstv %s990_s27 }
 0x3ac   :  { %1901 = vrsqrt.f32 %v991_v1 }
 0x3b9   :  { %v1902_v13 = vpop.eup %1901 }
 0x3ba   :  { %1857 = vpush %v1902_v13 }
 0x3eb   :  { %s1858_s10 = spop %1857 }
 0x3ec   :  { %s997_s22 = smul.f32 %s1858_s10, %s3071_s6 }
 0x3ee   :  { %s1002_s4 = smul.f32 %s997_s22, %s986_s2  ;;  %v1005_v59 = vstv %s997_s22 }
 0x3ef   :  { %v1006_v11 = vsel %vm95_vm13, %v1004_v10, %v1005_v59 }
 0x3f0   :  { %s1003_s24 = ssub.f32 %s3076_s30, %s1002_s4  ;;  %v1010_v39 = vmul.f32 %v1006_v11, %v3037_v55  ;;  %v1011_v8 = vmul.f32 %v1006_v11, %v3043_v29 }
 0x3f2   :  { %v1008_v63 = vstv %s1003_s24 }
 0x3f3   :  { %v1009_v40 = vsel %vm95_vm13, %v1007_v5, %v1008_v63 }
 0x3f4   :  { %v1012_v50 = vadd.f32 %v1010_v39, %v1009_v40  ;;  %v1013_v30 = vadd.f32 %v1011_v8, %v1009_v40 }
 0x3f6   :  { %v1014_v62 = vmax.f32 %v1012_v50, 0.0  ;;  %v1015_v28 = vmax.f32 %v1013_v30, 0.0 }
 0x3f8   :  { %v3089_v33 = vmul.f32 %v1014_v62, %v3031_v4  ;;  %v3092_v3 = vmul.f32 %v1015_v28, %v3031_v4 }
 0x3fa   :  { %1022 = vrot.lane.b32.xlu0 %v3092_v3, %s3604_s11  ;;  %1020 = vrot.lane.b32.xlu1 %v3089_v33, %s3604_s11  ;;  %v1237_v55 = vrot.slane %v3092_v3, 5  ;;  %v1247_v29 = vrot.slane %v3092_v3, 6  ;;  %v1257_v38 = vrot.slane %v3092_v3, 7  ;;  %v3546_v18 = vrot.slane %v3092_v3, 1 }
 0x3fb   :  { %v3549_v26 = vrot.slane %v3089_v33, 5  ;;  %v3548_v21 = vrot.slane %v3089_v33, 6  ;;  %v3547_v4 = vrot.slane %v3089_v33, 7  ;;  %v1270_v46 = vrot.slane %v3089_v33, 1 }
 0x3fc   :  { %v3545_v10 = vrot.slane %v3092_v3, 2  ;;  %v3544_v59 = vrot.slane %v3092_v3, 3  ;;  %v1280_v11 = vrot.slane %v3089_v33, 2  ;;  %v1290_v5 = vrot.slane %v3089_v33, 3 }
 0x3fd   :  { %v3109_v27 = vsel %vm194_vm7, %v3549_v26, %v1237_v55  ;;  %v3114_v53 = vsel %vm210_vm8, %v3548_v21, %v1247_v29  ;;  %v3123_v1 = vsel %vm226_vm9, %v3547_v4, %v1257_v38  ;;  %v3128_v13 = vsel %vm251_vm10, %v1270_v46, %v3546_v18 }
 0x3fe   :  { %1164 = vrot.lane.b32.xlu0 %v3089_v33, %s3605_s12  ;;  %1092 = vrot.lane.b32.xlu1 %v3089_v33, %s3606_s13  ;;  %v3141_v63 = vsel %vm267_vm11, %v1280_v11, %v3545_v10  ;;  %v3146_v39 = vsel %vm283_vm12, %v1290_v5, %v3544_v59 }
 0x402   :  { %1300 = vrot.lane.b32.xlu0 %v3089_v33, %s3607_s14  ;;  %1094 = vrot.lane.b32.xlu1 %v3092_v3, %s3606_s13 }
 0x406   :  { %1372 = vrot.lane.b32.xlu0 %v3089_v33, %s3608_s15  ;;  %1166 = vrot.lane.b32.xlu1 %v3092_v3, %s3605_s12 }
 0x40a   :  { %1444 = vrot.lane.b32.xlu0 %v3089_v33, %s3609_s16  ;;  %1302 = vrot.lane.b32.xlu1 %v3092_v3, %s3607_s14 }
 0x40e   :  { %1374 = vrot.lane.b32.xlu1 %v3092_v3, %s3608_s15 }
 0x412   :  { %1446 = vrot.lane.b32.xlu1 %v3092_v3, %s3609_s16 }
 0x46c   :  { %v1023_v8 = vpop.permute.xlu0 %1022  ;;  %v1021_v40 = vpop.permute.xlu1 %1020 }
 0x46d   :  { %v1029_v50 = vrot.slane %v1023_v8, 5  ;;  %v1039_v30 = vrot.slane %v1023_v8, 6  ;;  %v1028_v62 = vrot.slane %v1021_v40, 5  ;;  %v1049_v28 = vrot.slane %v1023_v8, 7 }
 0x46e   :  { %v1038_v55 = vrot.slane %v1021_v40, 6  ;;  %v1048_v29 = vrot.slane %v1021_v40, 7  ;;  %v1063_v46 = vrot.slane %v1023_v8, 1  ;;  %v1062_v5 = vrot.slane %v1021_v40, 1 }
 0x46f   :  { %v1030_v38 = vsel %vm194_vm7, %v1028_v62, %v1029_v50  ;;  %v1033_v11 = vsel %vm194_vm7, 0.0, %v1028_v62  ;;  %v1073_v32 = vrot.slane %v1023_v8, 2  ;;  %v1072_v0 = vrot.slane %v1021_v40, 2 }
 0x470   :  { %v1034_v59 = vmul.f32 %v1033_v11, %v2304_v14  ;;  %v1035_v10 = vmul.f32 %v1030_v38, %v2304_v14  ;;  %v1040_v18 = vsel %vm210_vm8, %v1038_v55, %v1039_v30  ;;  %v1043_v4 = vsel %vm210_vm8, 0.0, %v1038_v55 }
 0x471   :  { %v1044_v21 = vmul.f32 %v1043_v4, %v2308_v15  ;;  %v1045_v26 = vmul.f32 %v1040_v18, %v2308_v15  ;;  %v1050_v57 = vsel %vm226_vm9, %v1048_v29, %v1049_v28  ;;  %v1053_v50 = vsel %vm226_vm9, 0.0, %v1048_v29  ;;  %v3176_v29 = vpop.permute.xlu1 %1092 }
 0x472   :  { %v1054_v11 = vmul.f32 %v1053_v50, %v2312_v16  ;;  %v1055_v14 = vmul.f32 %v1050_v57, %v2312_v16  ;;  %v1083_v38 = vrot.slane %v1023_v8, 3  ;;  %v1064_v30 = vsel %vm251_vm10, %v1062_v5, %v1063_v46 }
 0x473   :  { %v1046_v62 = vadd.f32 %v1044_v21, %v1034_v59  ;;  %v1047_v41 = vadd.f32 %v1045_v26, %v1035_v10  ;;  %v1082_v55 = vrot.slane %v1021_v40, 3  ;;  %v1058_v15 = vmul.f32 %v1021_v40, %v2346_v35 }
 0x474   :  { %v1059_v18 = vmul.f32 %v1023_v8, %v2346_v35  ;;  %v1074_v28 = vsel %vm267_vm11, %v1072_v0, %v1073_v32  ;;  %v1067_v26 = vsel %vm251_vm10, %v1063_v46, 0.0  ;;  %v1068_v10 = vmul.f32 %v1064_v30, %v2383_v58 }
 0x475   :  { %v1056_v36 = vadd.f32 %v1054_v11, %v1046_v62  ;;  %v1057_v4 = vadd.f32 %v1055_v14, %v1047_v41  ;;  %v1084_v16 = vsel %vm283_vm12, %v1082_v55, %v1083_v38  ;;  %v1078_v5 = vmul.f32 %v1074_v28, %v2392_v60 }
 0x476   :  { %v1100_v41 = vrot.slane %v3176_v29, 5  ;;  %v1069_v40 = vmul.f32 %v1067_v26, %v2383_v58  ;;  %v1110_v35 = vrot.slane %v3176_v29, 6  ;;  %v1120_v0 = vrot.slane %v3176_v29, 7 }
 0x477   :  { %v1060_v21 = vadd.f32 %v1058_v15, %v1056_v36  ;;  %v1061_v57 = vadd.f32 %v1059_v18, %v1057_v4  ;;  %v1077_v8 = vsel %vm267_vm11, %v1073_v32, 0.0  ;;  %v1088_v36 = vmul.f32 %v1084_v16, %v2430_v31  ;;  %v1095_v15 = vpop.permute.xlu1 %1094 }
 0x478   :  { %v1105_v50 = vsel %vm194_vm7, 0.0, %v1100_v41  ;;  %v1115_v11 = vsel %vm210_vm8, 0.0, %v1110_v35  ;;  %v1087_v14 = vsel %vm283_vm12, %v1083_v38, 0.0  ;;  %v1079_v58 = vmul.f32 %v1077_v8, %v2392_v60 }
 0x479   :  { %v1070_v59 = vadd.f32 %v1068_v10, %v1060_v21  ;;  %v1071_v62 = vadd.f32 %v1069_v40, %v1061_v57  ;;  %v1106_v55 = vmul.f32 %v1105_v50, %v2357_v43  ;;  %v1125_v4 = vsel %vm226_vm9, 0.0, %v1120_v0  ;;  %v3198_v10 = vpop.permute.xlu0 %1164 }
 0x47a   :  { %v1116_v32 = vmul.f32 %v1115_v11, %v2375_v54  ;;  %v1089_v28 = vmul.f32 %v1087_v14, %v2430_v31  ;;  %v1130_v26 = vmul.f32 %v3176_v29, %v2361_v48  ;;  %v1126_v57 = vmul.f32 %v1125_v4, %v2379_v56 }
 0x47b   :  { %v1080_v46 = vadd.f32 %v1078_v5, %v1070_v59  ;;  %v1081_v21 = vadd.f32 %v1079_v58, %v1071_v62  ;;  %v1101_v16 = vrot.slane %v1095_v15, 5  ;;  %v1111_v59 = vrot.slane %v1095_v15, 6 }
 0x47c   :  { %v1134_v60 = vrot.slane %v3176_v29, 1  ;;  %v1121_v40 = vrot.slane %v1095_v15, 7  ;;  %v1135_v8 = vrot.slane %v1095_v15, 1  ;;  %v1145_v50 = vrot.slane %v1095_v15, 2 }
 0x47d   :  { %v1090_v30 = vadd.f32 %v1088_v36, %v1080_v46  ;;  %v1091_v5 = vadd.f32 %v1089_v28, %v1081_v21  ;;  %v1102_v36 = vsel %vm194_vm7, %v1100_v41, %v1101_v16  ;;  %v1112_v31 = vsel %vm210_vm8, %v1110_v35, %v1111_v59 }
 0x47e   :  { %v1172_v62 = vrot.slane %v3198_v10, 5  ;;  %v1144_v11 = vrot.slane %v3176_v29, 2  ;;  %v1107_v14 = vmul.f32 %v1102_v36, %v2357_v43  ;;  %v1122_v4 = vsel %vm226_vm9, %v1120_v0, %v1121_v40  ;;  %v1167_v36 = vpop.permute.xlu1 %1166 }
 0x47f   :  { %v1108_v18 = vadd.f32 %v1106_v55, %v1090_v30  ;;  %v1136_v30 = vsel %vm251_vm10, %v1134_v60, %v1135_v8  ;;  %v1182_v55 = vrot.slane %v3198_v10, 6  ;;  %v1192_v41 = vrot.slane %v3198_v10, 7 }
 0x480   :  { %v1117_v35 = vmul.f32 %v1112_v31, %v2375_v54  ;;  %v1146_v28 = vsel %vm267_vm11, %v1144_v11, %v1145_v50  ;;  %v1154_v21 = vrot.slane %v3176_v29, 3  ;;  %v1177_v0 = vsel %vm194_vm7, 0.0, %v1172_v62 }
 0x481   :  { %v1118_v38 = vadd.f32 %v1116_v32, %v1108_v18  ;;  %v1140_v18 = vmul.f32 %v1136_v30, %v2508_v2  ;;  %v1109_v32 = vadd.f32 %v1107_v14, %v1091_v5  ;;  %v1150_v43 = vmul.f32 %v1146_v28, %v2516_v52 }
 0x482   :  { %v1139_v59 = vsel %vm251_vm10, %v1135_v8, 0.0  ;;  %v1187_v54 = vsel %vm210_vm8, 0.0, %v1182_v55  ;;  %v1197_v31 = vsel %vm226_vm9, 0.0, %v1192_v41  ;;  %v1149_v11 = vsel %vm267_vm11, %v1145_v50, 0.0 }
 0x483   :  { %v1128_v46 = vadd.f32 %v1126_v57, %v1118_v38  ;;  %v1155_v57 = vrot.slane %v1095_v15, 3  ;;  %v1119_v16 = vadd.f32 %v1117_v35, %v1109_v32  ;;  %v1141_v8 = vmul.f32 %v1139_v59, %v2508_v2 }
 0x484   :  { %v1183_v32 = vrot.slane %v1167_v36, 6  ;;  %v1151_v35 = vmul.f32 %v1149_v11, %v2516_v52  ;;  %v1198_v2 = vmul.f32 %v1197_v31, %v2465_v24  ;;  %v1202_v52 = vmul.f32 %v3198_v10, %v2469_v25 }
 0x485   :  { %v1132_v58 = vadd.f32 %v1130_v26, %v1128_v46  ;;  %v1127_v26 = vmul.f32 %v1122_v4, %v2379_v56  ;;  %v1156_v5 = vsel %vm283_vm12, %v1154_v21, %v1155_v57  ;;  %v1131_v46 = vmul.f32 %v1095_v15, %v2361_v48 }
 0x486   :  { %v1160_v29 = vmul.f32 %v1156_v5, %v2533_v9  ;;  %v1178_v56 = vmul.f32 %v1177_v0, %v2434_v42  ;;  %v1159_v4 = vsel %vm283_vm12, %v1155_v57, 0.0  ;;  %v1206_v48 = vrot.slane %v3198_v10, 1 }
 0x487   :  { %v1142_v38 = vadd.f32 %v1140_v18, %v1132_v58  ;;  %v1129_v40 = vadd.f32 %v1127_v26, %v1119_v16  ;;  %v1188_v58 = vmul.f32 %v1187_v54, %v2447_v44  ;;  %v1173_v18 = vrot.slane %v1167_v36, 5 }
 0x488   :  { %v1193_v21 = vrot.slane %v1167_v36, 7  ;;  %v1161_v26 = vmul.f32 %v1159_v4, %v2533_v9  ;;  %v1216_v57 = vrot.slane %v3198_v10, 2  ;;  %v1184_v59 = vsel %vm210_vm8, %v1182_v55, %v1183_v32 }
 0x489   :  { %v1152_v60 = vadd.f32 %v1150_v43, %v1142_v38  ;;  %v1133_v14 = vadd.f32 %v1131_v46, %v1129_v40  ;;  %v1174_v50 = vsel %vm194_vm7, %v1172_v62, %v1173_v18  ;;  %v1207_v38 = vrot.slane %v1167_v36, 1 }
 0x48a   :  { %v1217_v43 = vrot.slane %v1167_v36, 2  ;;  %v1179_v54 = vmul.f32 %v1174_v50, %v2434_v42  ;;  %v1226_v40 = vrot.slane %v3198_v10, 3  ;;  %v1194_v46 = vsel %vm226_vm9, %v1192_v41, %v1193_v21  ;;  %v3611_v42 = vld [vmem:[#allocation37_spill] sm:$0xff] }
 0x48b   :  { %v1162_v30 = vadd.f32 %v1160_v29, %v1152_v60  ;;  %v1143_v15 = vadd.f32 %v1141_v8, %v1133_v14  ;;  %v1208_v60 = vsel %vm251_vm10, %v1206_v48, %v1207_v38  ;;  %v1227_v29 = vrot.slane %v1167_v36, 3 }
 0x48c   :  { %v1218_v9 = vsel %vm267_vm11, %v1216_v57, %v1217_v43  ;;  %v1189_v55 = vmul.f32 %v1184_v59, %v2447_v44  ;;  %v1211_v10 = vsel %vm251_vm10, %v1207_v38, 0.0  ;;  %v3612_v41 = vrot.slane %v3089_v33, 5 }
 0x48d   :  { %v1180_v28 = vadd.f32 %v1178_v56, %v1162_v30  ;;  %v1153_v16 = vadd.f32 %v1151_v35, %v1143_v15  ;;  %v3610_v56 = vld [vmem:[#allocation36_spill] sm:$0xff]  ;;  %v1228_v8 = vsel %vm283_vm12, %v1226_v40, %v1227_v29  ;;  %v1222_v18 = vmul.f32 %v1218_v9, %v3611_v42  ;;  %v3613_v35 = vld [vmem:[#allocation38_spill] sm:$0xff] }
 0x48e   :  { %v1212_v14 = vmul.f32 %v1208_v60, %v3610_v56  ;;  %v1241_v32 = vsel %vm194_vm7, 0.0, %v3612_v41  ;;  %v1203_v15 = vmul.f32 %v1167_v36, %v2469_v25  ;;  %v1221_v50 = vsel %vm267_vm11, %v1217_v43, 0.0  ;;  %v3618_v9 = vld [vmem:[#allocation30_spill] sm:$0xff] }
 0x48f   :  { %v1190_v0 = vadd.f32 %v1188_v58, %v1180_v28  ;;  %v1163_v5 = vadd.f32 %v1161_v26, %v1153_v16  ;;  %v1199_v58 = vmul.f32 %v1194_v46, %v2465_v24  ;;  %v1232_v28 = vmul.f32 %v1228_v8, %v3613_v35  ;;  %v3615_v26 = vld [vmem:[#allocation28_spill] sm:$0xff] }
 0x490   :  { %v3614_v21 = vrot.slane %v3089_v33, 6  ;;  %v1213_v16 = vmul.f32 %v1211_v10, %v3610_v56  ;;  %v1231_v57 = vsel %vm283_vm12, %v1227_v29, 0.0  ;;  %v3616_v59 = vrot.slane %v3089_v33, 7  ;;  %v3619_v56 = vld [vmem:[#allocation31_spill] sm:$0xff] }
 0x491   :  { %v1200_v62 = vadd.f32 %v1198_v2, %v1190_v0  ;;  %v1181_v11 = vadd.f32 %v1179_v54, %v1163_v5  ;;  %v1242_v0 = vmul.f32 %v1241_v32, %v3615_v26  ;;  %v1223_v60 = vmul.f32 %v1221_v50, %v3611_v42  ;;  %v3620_v42 = vld [vmem:[#allocation32_spill] sm:$0xff] }
 0x492   :  { %v1251_v24 = vsel %vm210_vm8, 0.0, %v3614_v21  ;;  %v1261_v25 = vsel %vm226_vm9, 0.0, %v3616_v59  ;;  %v1233_v40 = vmul.f32 %v1231_v57, %v3613_v35  ;;  %v1243_v29 = vmul.f32 %v3109_v27, %v3615_v26  ;;  %v3625_v26 = vld [vmem:[#allocation35_spill] sm:$0xff] }
 0x493   :  { %v1204_v31 = vadd.f32 %v1202_v52, %v1200_v62  ;;  %v1191_v30 = vadd.f32 %v1189_v55, %v1181_v11  ;;  %v3617_v52 = vld [vmem:[#allocation29_spill] sm:$0xff]  ;;  %v3266_v62 = vpop.permute.xlu0 %1300  ;;  %v1263_v27 = vmul.f32 %v3123_v1, %v3618_v9  ;;  %v3622_v35 = vrot.slane %v3092_v3, 1  ;;  %v3623_v1 = vld [vmem:[#allocation34_spill] sm:$0xff] }
 0x494   :  { %v1252_v5 = vmul.f32 %v1251_v24, %v3617_v52  ;;  %v1308_v8 = vrot.slane %v3266_v62, 5  ;;  %v1318_v10 = vrot.slane %v3266_v62, 6  ;;  %v1296_v24 = vmul.f32 %v3146_v39, %v3623_v1 }
 0x495   :  { %v1214_v4 = vadd.f32 %v1212_v14, %v1204_v31  ;;  %v1201_v48 = vadd.f32 %v1199_v58, %v1191_v30  ;;  %v1262_v31 = vmul.f32 %v1261_v25, %v3618_v9  ;;  %v1266_v14 = vmul.f32 %v3089_v33, %v3619_v56  ;;  %v3621_v33 = vld [vmem:[#allocation33_spill] sm:$0xff] }
 0x496   :  { %v1253_v58 = vmul.f32 %v3114_v53, %v3617_v52  ;;  %v1328_v53 = vrot.slane %v3266_v62, 7  ;;  %v1342_v9 = vrot.slane %v3266_v62, 1 }
 0x497   :  { %v1224_v44 = vadd.f32 %v1222_v18, %v1214_v4  ;;  %v1205_v2 = vadd.f32 %v1203_v15, %v1201_v48  ;;  %v1276_v18 = vmul.f32 %v3128_v13, %v3620_v42  ;;  %v3282_v48 = vpop.permute.xlu1 %1302  ;;  %v1286_v15 = vmul.f32 %v3141_v63, %v3621_v33 }
 0x498   :  { %v1275_v13 = vsel %vm251_vm10, %v3622_v35, 0.0  ;;  %v3624_v63 = vrot.slane %v3092_v3, 2  ;;  %v1343_v52 = vrot.slane %v3282_v48, 1 }
 0x499   :  { %v1234_v38 = vadd.f32 %v1232_v28, %v1224_v44  ;;  %v1215_v36 = vadd.f32 %v1213_v16, %v1205_v2  ;;  %v1313_v44 = vsel %vm194_vm7, 0.0, %v1308_v8  ;;  %v1267_v28 = vmul.f32 %v3092_v3, %v3619_v56 }
 0x49a   :  { %v1323_v2 = vsel %vm210_vm8, 0.0, %v1318_v10  ;;  %v1285_v16 = vsel %vm267_vm11, %v3624_v63, 0.0  ;;  %v1277_v59 = vmul.f32 %v1275_v13, %v3620_v42  ;;  %v1344_v42 = vsel %vm251_vm10, %v1342_v9, %v1343_v52 }
 0x49b   :  { %v1244_v43 = vadd.f32 %v1242_v0, %v1234_v38  ;;  %v1225_v54 = vadd.f32 %v1223_v60, %v1215_v36  ;;  %v1309_v38 = vrot.slane %v3282_v48, 5  ;;  %v1314_v0 = vmul.f32 %v1313_v44, %v3625_v26 }
 0x49c   :  { %v1333_v36 = vsel %vm226_vm9, 0.0, %v1328_v53  ;;  %v3626_v60 = vrot.slane %v3092_v3, 3  ;;  %v1353_v3 = vrot.slane %v3282_v48, 2 }
 0x49d   :  { %v1254_v46 = vadd.f32 %v1252_v5, %v1244_v43  ;;  %v1235_v11 = vadd.f32 %v1233_v40, %v1225_v54  ;;  %v1319_v43 = vrot.slane %v3282_v48, 6  ;;  %v1324_v5 = vmul.f32 %v1323_v2, %v2710_v17 }
 0x49e   :  { %v1295_v39 = vsel %vm283_vm12, %v3626_v60, 0.0  ;;  %v1287_v54 = vmul.f32 %v1285_v16, %v3621_v33  ;;  %v1357_v60 = vsel %vm267_vm11, %v1353_v3, 0.0 }
 0x49f   :  { %v1264_v55 = vadd.f32 %v1262_v31, %v1254_v46  ;;  %v1245_v30 = vadd.f32 %v1243_v29, %v1235_v11  ;;  %v1310_v31 = vsel %vm194_vm7, %v1308_v8, %v1309_v38  ;;  %v1329_v11 = vrot.slane %v3282_v48, 7  ;;  %v3335_v38 = vpop.permute.xlu1 %1374 }
 0x4a0   :  { %v1334_v29 = vmul.f32 %v1333_v36, %v2718_v51  ;;  %v1297_v56 = vmul.f32 %v1295_v39, %v3623_v1  ;;  %v1363_v8 = vrot.slane %v3282_v48, 3  ;;  %v1381_v39 = vrot.slane %v3335_v38, 5 }
 0x4a1   :  { %v1268_v4 = vadd.f32 %v1266_v14, %v1264_v55  ;;  %v1255_v41 = vadd.f32 %v1253_v58, %v1245_v30  ;;  %v3315_v55 = vpop.permute.xlu0 %1372  ;;  %v1352_v58 = vrot.slane %v3266_v62, 2  ;;  %v1330_v35 = vsel %vm226_vm9, %v1328_v53, %v1329_v11 }
 0x4a2   :  { %v1380_v44 = vrot.slane %v3315_v55, 5  ;;  %v1390_v1 = vrot.slane %v3315_v55, 6  ;;  %v1335_v63 = vmul.f32 %v1330_v35, %v2718_v51  ;;  %v1367_v9 = vsel %vm283_vm12, %v1363_v8, 0.0 }
 0x4a3   :  { %v1278_v32 = vadd.f32 %v1276_v18, %v1268_v4  ;;  %v1265_v50 = vadd.f32 %v1263_v27, %v1255_v41  ;;  %v1320_v4 = vsel %vm210_vm8, %v1318_v10, %v1319_v43  ;;  %v3627_v18 = vld [vmem:[#allocation39_spill] sm:$0xff]  ;;  %v1354_v13 = vsel %vm267_vm11, %v1352_v58, %v1353_v3  ;;  %v3629_v43 = vld [vmem:[#allocation40_spill] sm:$0xff] }
 0x4a4   :  { %v1338_v41 = vmul.f32 %v3266_v62, %v3627_v18  ;;  %v1358_v16 = vmul.f32 %v1354_v13, %v2808_v61  ;;  %v1385_v53 = vsel %vm194_vm7, 0.0, %v1380_v44  ;;  %v1395_v51 = vsel %vm210_vm8, 0.0, %v1390_v1 }
 0x4a5   :  { %v1288_v21 = vadd.f32 %v1286_v15, %v1278_v32  ;;  %v1269_v57 = vadd.f32 %v1267_v28, %v1265_v50  ;;  %v1315_v32 = vmul.f32 %v1310_v31, %v3625_v26  ;;  %v1362_v15 = vrot.slane %v3266_v62, 3 }
 0x4a6   :  { %v1325_v28 = vmul.f32 %v1320_v4, %v2710_v17  ;;  %v1400_v26 = vrot.slane %v3315_v55, 7  ;;  %v1347_v17 = vsel %vm251_vm10, %v1343_v52, 0.0  ;;  %v1415_v31 = vrot.slane %v3335_v38, 1 }
 0x4a7   :  { %v1298_v25 = vadd.f32 %v1296_v24, %v1288_v21  ;;  %v1279_v40 = vadd.f32 %v1277_v59, %v1269_v57  ;;  %v1348_v21 = vmul.f32 %v1344_v42, %v2804_v12  ;;  %v1364_v24 = vsel %vm283_vm12, %v1362_v15, %v1363_v8  ;;  %v3359_v42 = vpop.permute.xlu0 %1444 }
 0x4a8   :  { %v1339_v57 = vmul.f32 %v3282_v48, %v3627_v18  ;;  %v1405_v52 = vsel %vm226_vm9, 0.0, %v1400_v26  ;;  %v1391_v48 = vrot.slane %v3335_v38, 6  ;;  %v1396_v11 = vmul.f32 %v1395_v51, %v2791_v47 }
 0x4a9   :  { %v1316_v46 = vadd.f32 %v1314_v0, %v1298_v25  ;;  %v1289_v14 = vadd.f32 %v1287_v54, %v1279_v40  ;;  %v3628_v25 = vld [vmem:[#allocation41_spill] sm:$0xff]  ;;  %v1349_v40 = vmul.f32 %v1347_v17, %v2804_v12  ;;  %v1359_v3 = vmul.f32 %v1357_v60, %v2808_v61 }
 0x4aa   :  { %v1368_v36 = vmul.f32 %v1364_v24, %v3628_v25  ;;  %v1401_v12 = vrot.slane %v3335_v38, 7  ;;  %v1425_v58 = vrot.slane %v3335_v38, 2  ;;  %v1406_v4 = vmul.f32 %v1405_v52, %v2795_v49 }
 0x4ab   :  { %v1326_v30 = vadd.f32 %v1324_v5, %v1316_v46  ;;  %v1299_v27 = vadd.f32 %v1297_v56, %v1289_v14  ;;  %v1386_v5 = vmul.f32 %v1385_v53, %v3629_v43  ;;  %v1414_v14 = vrot.slane %v3315_v55, 1 }
 0x4ac   :  { %v1369_v18 = vmul.f32 %v1367_v9, %v3628_v25  ;;  %v1392_v61 = vsel %vm210_vm8, %v1390_v1, %v1391_v48  ;;  %v1410_v15 = vmul.f32 %v3315_v55, %v2799_v6 }
 0x4ad   :  { %v1336_v33 = vadd.f32 %v1334_v29, %v1326_v30  ;;  %v1317_v10 = vadd.f32 %v1315_v32, %v1299_v27  ;;  %v1382_v30 = vsel %vm194_vm7, %v1380_v44, %v1381_v39  ;;  %v1424_v27 = vrot.slane %v3315_v55, 2 }
 0x4ae   :  { %v1416_v32 = vsel %vm251_vm10, %v1414_v14, %v1415_v31  ;;  %v1387_v35 = vmul.f32 %v1382_v30, %v3629_v43  ;;  %v1397_v24 = vmul.f32 %v1392_v61, %v2791_v47  ;;  %v1419_v47 = vsel %vm251_vm10, %v1415_v31, 0.0 }
 0x4af   :  { %v1340_v50 = vadd.f32 %v1338_v41, %v1336_v33  ;;  %v1327_v2 = vadd.f32 %v1325_v28, %v1317_v10  ;;  %v1435_v33 = vrot.slane %v3335_v38, 3  ;;  %v1434_v10 = vrot.slane %v3315_v55, 3 }
 0x4b0   :  { %v1452_v28 = vrot.slane %v3359_v42, 5 }
 0x4b1   :  { %v1350_v62 = vadd.f32 %v1348_v21, %v1340_v50  ;;  %v1337_v0 = vadd.f32 %v1335_v63, %v1327_v2  ;;  %v1402_v50 = vsel %vm226_vm9, %v1400_v26, %v1401_v12  ;;  %v1426_v21 = vsel %vm267_vm11, %v1424_v27, %v1425_v58 }
 0x4b2   :  { %v1420_v63 = vmul.f32 %v1416_v32, %v2861_v37  ;;  %v1407_v17 = vmul.f32 %v1402_v50, %v2795_v49  ;;  %v1457_v26 = vsel %vm194_vm7, 0.0, %v1452_v28  ;;  %v1429_v49 = vsel %vm267_vm11, %v1425_v58, 0.0 }
 0x4b3   :  { %v1360_v59 = vadd.f32 %v1358_v16, %v1350_v62  ;;  %v1341_v54 = vadd.f32 %v1339_v57, %v1337_v0  ;;  %v1462_v62 = vrot.slane %v3359_v42, 6  ;;  %v1436_v16 = vsel %vm283_vm12, %v1434_v10, %v1435_v33  ;;  %v1447_v57 = vpop.permute.xlu1 %1446 }
 0x4b4   :  { %v1430_v0 = vmul.f32 %v1426_v21, %v2870_v20  ;;  %v1440_v60 = vmul.f32 %v1436_v16, %v2961_v7  ;;  %v1453_v43 = vrot.slane %v1447_v57, 5  ;;  %v1439_v9 = vsel %vm283_vm12, %v1435_v33, 0.0 }
 0x4b5   :  { %v1370_v46 = vadd.f32 %v1368_v36, %v1360_v59  ;;  %v1351_v29 = vadd.f32 %v1349_v40, %v1341_v54  ;;  %v1472_v59 = vrot.slane %v3359_v42, 7  ;;  %v1411_v36 = vmul.f32 %v3335_v38, %v2799_v6 }
 0x4b6   :  { %v1467_v39 = vsel %vm210_vm8, 0.0, %v1462_v62  ;;  %v1421_v40 = vmul.f32 %v1419_v47, %v2861_v37  ;;  %v1463_v48 = vrot.slane %v1447_v57, 6  ;;  %v1487_v6 = vrot.slane %v1447_v57, 1 }
 0x4b7   :  { %v1388_v56 = vadd.f32 %v1386_v5, %v1370_v46  ;;  %v1361_v8 = vadd.f32 %v1359_v3, %v1351_v29  ;;  %v1458_v5 = vmul.f32 %v1457_v26, %v2818_v19  ;;  %v1477_v52 = vsel %vm226_vm9, 0.0, %v1472_v59 }
 0x4b8   :  { %v1468_v38 = vmul.f32 %v1467_v39, %v2847_v34  ;;  %v1486_v3 = vrot.slane %v3359_v42, 1  ;;  %v1473_v14 = vrot.slane %v1447_v57, 7  ;;  %v1497_v30 = vrot.slane %v1447_v57, 2 }
 0x4b9   :  { %v1398_v41 = vadd.f32 %v1396_v11, %v1388_v56  ;;  %v1371_v44 = vadd.f32 %v1369_v18, %v1361_v8  ;;  %v1431_v11 = vmul.f32 %v1429_v49, %v2870_v20  ;;  %v1454_v56 = vsel %vm194_vm7, %v1452_v28, %v1453_v43 }
 0x4ba   :  { %v1478_v37 = vmul.f32 %v1477_v52, %v2851_v45  ;;  %v1441_v58 = vmul.f32 %v1439_v9, %v2961_v7  ;;  %v1496_v8 = vrot.slane %v3359_v42, 2  ;;  %v1464_v18 = vsel %vm210_vm8, %v1462_v62, %v1463_v48 }
 0x4bb   :  { %v1408_v13 = vadd.f32 %v1406_v4, %v1398_v41  ;;  %v1389_v1 = vadd.f32 %v1387_v35, %v1371_v44  ;;  %v1507_v41 = vrot.slane %v1447_v57, 3  ;;  %v1488_v20 = vsel %vm251_vm10, %v1486_v3, %v1487_v6 }
 0x4bc   :  { %v1482_v27 = vmul.f32 %v3359_v42, %v2857_v23  ;;  %v1459_v32 = vmul.f32 %v1454_v56, %v2818_v19  ;;  %v1474_v44 = vsel %vm226_vm9, %v1472_v59, %v1473_v14  ;;  %v1498_v7 = vsel %vm267_vm11, %v1496_v8, %v1497_v30  ;;  %v3630_v19 = vld [vmem:[#allocation42_spill] sm:$0xff] }
 0x4bd   :  { %v1412_v2 = vadd.f32 %v1410_v15, %v1408_v13  ;;  %v1399_v53 = vadd.f32 %v1397_v24, %v1389_v1  ;;  %v1506_v15 = vrot.slane %v3359_v42, 3  ;;  %v1469_v13 = vmul.f32 %v1464_v18, %v2847_v34 }
 0x4be   :  { %v1492_v28 = vmul.f32 %v1488_v20, %v2966_v22  ;;  %v1479_v21 = vmul.f32 %v1474_v44, %v2851_v45  ;;  %v1491_v42 = vsel %vm251_vm10, %v1487_v6, 0.0  ;;  %v1501_v34 = vsel %vm267_vm11, %v1497_v30, 0.0 }
 0x4bf   :  { %v1422_v55 = vadd.f32 %v1420_v63, %v1412_v2  ;;  %v1409_v25 = vadd.f32 %v1407_v17, %v1399_v53  ;;  %v1508_v50 = vsel %vm283_vm12, %v1506_v15, %v1507_v41  ;;  %v1502_v2 = vmul.f32 %v1498_v7, %v3630_v19  ;;  %v3631_v53 = vld [vmem:[#allocation43_spill] sm:$0xff] }
 0x4c0   :  { %v1483_v63 = vmul.f32 %v1447_v57, %v2857_v23  ;;  %v1512_v17 = vmul.f32 %v1508_v50, %v3631_v53  ;;  %v1511_v45 = vsel %vm283_vm12, %v1507_v41, 0.0  ;;  %v1503_v47 = vmul.f32 %v1501_v34, %v3630_v19 }
 0x4c1   :  { %v1432_v51 = vadd.f32 %v1430_v0, %v1422_v55  ;;  %v1413_v54 = vadd.f32 %v1411_v36, %v1409_v25  ;;  %v1493_v0 = vmul.f32 %v1491_v42, %v2966_v22  ;;  %v1513_v36 = vmul.f32 %v1511_v45, %v3631_v53 }
 0x4c3   :  { %v1442_v46 = vadd.f32 %v1440_v60, %v1432_v51  ;;  %v1423_v31 = vadd.f32 %v1421_v40, %v1413_v54  ;;  %v3632_v51 = vld [vmem:[#allocation44_spill] sm:$0xff]  ;;  %v3633_v54 = vld [vmem:[#allocation45_spill] sm:$0xff] }
 0x4c5   :  { %v1460_v29 = vadd.f32 %v1458_v5, %v1442_v46  ;;  %v1433_v12 = vadd.f32 %v1431_v11, %v1423_v31 }
 0x4c7   :  { %v1470_v4 = vadd.f32 %v1468_v38, %v1460_v29  ;;  %v1443_v61 = vadd.f32 %v1441_v58, %v1433_v12 }
 0x4c9   :  { %v1480_v33 = vadd.f32 %v1478_v37, %v1470_v4  ;;  %v1461_v35 = vadd.f32 %v1459_v32, %v1443_v61 }
 0x4cb   :  { %v1484_v10 = vadd.f32 %v1482_v27, %v1480_v33  ;;  %v1471_v1 = vadd.f32 %v1469_v13, %v1461_v35 }
 0x4cd   :  { %v1494_v24 = vadd.f32 %v1492_v28, %v1484_v10  ;;  %v1481_v62 = vadd.f32 %v1479_v21, %v1471_v1 }
 0x4cf   :  { %v1504_v16 = vadd.f32 %v1502_v2, %v1494_v24  ;;  %v1485_v55 = vadd.f32 %v1483_v63, %v1481_v62 }
 0x4d1   :  { %v3416_v26 = vadd.f32 %v1512_v17, %v1504_v16  ;;  %v1495_v59 = vadd.f32 %v1493_v0, %v1485_v55 }
 0x4d3   :  { %v1505_v25 = vadd.f32 %v1503_v47, %v1495_v59  ;;  %v1528_v23 = vmul.f32 %v3416_v26, %v3416_v26  ;;  %v1516_v60 = vmul.f32 %v3416_v26, %v3632_v51  ;;  %v1550_v40 = vmul.f32 %v3416_v26, %v3633_v54 }
 0x4d5   :  { %v3423_v57 = vadd.f32 %v1513_v36, %v1505_v25  ;;  %v1530_v49 = vmul.f32 %v1528_v23, %v3632_v51  ;;  %v1562_v48 = vmul.f32 %v1528_v23, %v3633_v54 }
 0x4d7   :  { %v1517_v22 = vmul.f32 %v3423_v57, %v3632_v51  ;;  %v1529_v39 = vmul.f32 %v3423_v57, %v3423_v57  ;;  %v1551_v46 = vmul.f32 %v3423_v57, %v3633_v54 }
 0x4d9   :  { %v1518_v43 = vadd.f32 %v1517_v22, %v1516_v60  ;;  %v1531_v5 = vmul.f32 %v1529_v39, %v3632_v51  ;;  %v1552_v9 = vadd.f32 %v1551_v46, %v1550_v40  ;;  %v1563_v6 = vmul.f32 %v1529_v39, %v3633_v54 }
 0x4db   :  { %1519 = vadd.xlane.f32.xlu0 %v1518_v43  ;;  %v1532_v52 = vadd.f32 %v1531_v5, %v1530_v49  ;;  %v1564_v38 = vadd.f32 %v1563_v6, %v1562_v48 }
 0x4dd   :  { %1533 = vadd.xlane.f32.xlu1 %v1532_v52 }
 0x4df   :  { %1553 = vadd.xlane.f32.xlu0 %v1552_v9 }
 0x4e3   :  { %1565 = vadd.xlane.f32.xlu0 %v1564_v38 }
 0x564   :  { %v1520_v31 = vpop.xlane.xlu0 %1519 }
 0x565   :  { %v1521_v11 = vrot.slane %v1520_v31, 4 }
 0x566   :  { %v1534_v29 = vpop.xlane.xlu1 %1533 }
 0x567   :  { %v1522_v3 = vadd.f32 %v1521_v11, %v1520_v31  ;;  %v1535_v56 = vrot.slane %v1534_v29, 4 }
 0x568   :  { %v1554_v20 = vpop.xlane.xlu0 %1553 }
 0x569   :  { %v1523_v14 = vrot.slane %v1522_v3, 2  ;;  %v1536_v30 = vadd.f32 %v1535_v56, %v1534_v29  ;;  %v1555_v61 = vrot.slane %v1554_v20, 4 }
 0x56b   :  { %v1537_v37 = vrot.slane %v1536_v30, 2  ;;  %v1524_v12 = vadd.f32 %v1523_v14, %v1522_v3  ;;  %v1556_v33 = vadd.f32 %v1555_v61, %v1554_v20 }
 0x56c   :  { %v1566_v27 = vpop.xlane.xlu0 %1565 }
 0x56d   :  { %v1525_v58 = vrot.slane %v1524_v12, 1  ;;  %v1538_v4 = vadd.f32 %v1537_v37, %v1536_v30  ;;  %v1567_v32 = vrot.slane %v1566_v27, 4  ;;  %v1557_v7 = vrot.slane %v1556_v33, 2 }
 0x56f   :  { %v1526_v8 = vadd.f32 %v1525_v58, %v1524_v12  ;;  %v1539_v18 = vrot.slane %v1538_v4, 1  ;;  %v1568_v15 = vadd.f32 %v1567_v32, %v1566_v27  ;;  %v1558_v13 = vadd.f32 %v1557_v7, %v1556_v33 }
 0x571   :  { %1859 = vpush %v1526_v8  ;;  %v1540_v41 = vadd.f32 %v1539_v18, %v1538_v4  ;;  %v1569_v35 = vrot.slane %v1568_v15, 2  ;;  %v1559_v28 = vrot.slane %v1558_v13, 1 }
 0x573   :  { %1861 = vpush %v1540_v41  ;;  %v1570_v10 = vadd.f32 %v1569_v35, %v1568_v15  ;;  %v1560_v1 = vadd.f32 %v1559_v28, %v1558_v13 }
 0x575   :  { %v1571_v50 = vrot.slane %v1570_v10, 1 }
 0x577   :  { %v1572_v24 = vadd.f32 %v1571_v50, %v1570_v10 }
 0x5a2   :  { %s1860_s17 = spop %1859 }
 0x5a3   :  { %s3439_s18 = smul.f32 0.001953125, %s1860_s17 }
 0x5a4   :  { %s1862_s19 = spop %1861 }
 0x5a5   :  { %s1544_s0 = smul.f32 %s3439_s18, %s3439_s18 }
 0x5a6   :  { %s1543_s1 = smul.f32 0.001953125, %s1862_s19 }
 0x5a8   :  { %s1545_s3 = ssub.f32 %s1543_s1, %s1544_s0 }
 0x5a9   :  { %s3636_s1 = sld [smem:[#allocation46_spill]] }
 0x5aa   :  { %s1546_s20 = sadd.f32 1e-05, %s1545_s3 }
 0x5ac   :  { %v1547_v44 = vstv %s1546_s20 }
 0x5ad   :  { %1903 = vrsqrt.f32 %v1547_v44 }
 0x5ba   :  { %v1904_v21 = vpop.eup %1903 }
 0x5bb   :  { %1863 = vpush %v1904_v21 }
 0x5bc   :  { %1865 = vpush %v1560_v1 }
 0x5bd   :  { %1867 = vpush %v1572_v24 }
 0x5ec   :  { %s1864_s21 = spop %1863 }
 0x5ed   :  { %s1866_s2 = spop %1865  ;;  %s1582_s8 = smul.f32 %s1864_s21, %s3069_s7 }
 0x5ee   :  { %s1574_s9 = smul.f32 0.001953125, %s1866_s2  ;;  %s1868_s5 = spop %1867 }
 0x5ef   :  { %s1575_s26 = smul.f32 0.001953125, %s1868_s5  ;;  %v1588_v42 = vstv %s1582_s8  ;;  %s3635_s7 = smov 64  }
 0x5f0   :  { %s1576_s25 = smul.f32 %s1574_s9, %s1574_s9 }
 0x5f1   :  { %s1584_s10 = smul.f32 %s1582_s8, %s3439_s18  ;;  %s2038_s8 = smov [#allocation14]  }
 0x5f2   :  { %s1577_s27 = ssub.f32 %s1575_s26, %s1576_s25  ;;  %s2035_s25 = smov 16  }
 0x5f3   :  { %s1585_s4 = ssub.f32 %s3074_s29, %s1584_s10  ;;  %s3638_s26 = smov 32  }
 0x5f4   :  { %s1578_s28 = sadd.f32 1e-05, %s1577_s27  ;;  %s2036_s27 = smov 48  }
 0x5f5   :  { %v1591_v53 = vstv %s1585_s4  ;;  %s1844_s29 = sld [smem:[#allocation12 + $0x1]]  ;;  %s1730_s10 = sshll.u32 %s2038_s8, 4  ;;  %s1731_s10 = int_to_ptr.vmem [resolvable:$true] %s1730_s10 }
 0x5f6   :  { %v1579_v19 = vstv %s1578_s28  ;;  %s2037_s28 = smov 80   ;;  %p1992_p12 = scmp.lt.s32.totalorder %s1731_s10, %s1731_s10 }
 0x5f7   :  { %1905 = vrsqrt.f32 %v1579_v19 }
 0x5fb   :  { %v1613_v23 = vstv %s1844_s29 }
 0x604   :  { %v1906_v2 = vpop.eup %1905 }
 0x605   :  { %1869 = vpush %v1906_v2 }
 0x636   :  { %s1870_s22 = spop %1869 }
 0x637   :  { %s1583_s23 = smul.f32 %s1870_s22, %s3071_s6  ;;  %s1600_s6 = sld [smem:[#allocation12]] }
 0x638   :  { %s1987_s22 = scalar_lea.vmem %s1731_s10, 256 }
 0x639   :  { %s1586_s24 = smul.f32 %s1583_s23, %s1574_s9  ;;  %v1589_v63 = vstv %s1583_s23  ;;  %s3637_s9 = sld [smem:[#allocation47_spill]] }
 0x63a   :  { %v1590_v16 = vsel %vm95_vm13, %v1588_v42, %v1589_v63  ;;  %p1988_p11 = scmp.ne.s32.totalorder %s1731_s10, %s1987_s22  ;;  %p1993_p13 = scmp.lt.s32.totalorder %s1987_s22, %s1987_s22 }
 0x63b   :  { %s1587_s11 = ssub.f32 %s3076_s30, %s1586_s24  ;;  %v1594_v34 = vmul.f32 %v1590_v16, %v3416_v26  ;;  %v1595_v55 = vmul.f32 %v1590_v16, %v3423_v57 }
 0x63c   :  { %p1994_p0 = por %p1993_p13, %p1992_p12 }
 0x63d   :  { %v1592_v17 = vstv %s1587_s11  ;;  %v1601_v36 = vstv %s1600_s6 }
 0x63e   :  { %v1593_v0 = vsel %vm95_vm13, %v1591_v53, %v1592_v17  ;;  %p1995_p1 = pnand %p1994_p0, %p1988_p11 }
 0x63f   :  { %v1597_v45 = vadd.f32 %v1595_v55, %v1593_v0  ;;  %v1596_v59 = vadd.f32 %v1594_v34, %v1593_v0 }
 0x641   :  { %v1599_v47 = vmax.f32 %v1597_v45, 0.0  ;;  %v1598_v25 = vmax.f32 %v1596_v59, 0.0 }
 0x643   :  { %1609 = vrot.lane.b32.xlu0 %v1599_v47, %s3635_s7  ;;  %1607 = vrot.lane.b32.xlu1 %v1598_v25, %s3635_s7  ;;  %v1603_v26 = vmul.f32 %v1601_v36, %v1599_v47  ;;  %v1602_v57 = vmul.f32 %v1601_v36, %v1598_v25 }
 0x6b5   :  { %v1610_v60 = vpop.permute.xlu0 %1609  ;;  %v1608_v22 = vpop.permute.xlu1 %1607 }
 0x6b6   :  { %v1615_v39 = vmul.f32 %v1613_v23, %v1610_v60  ;;  %v1614_v49 = vmul.f32 %v1613_v23, %v1608_v22  ;;  %v1917_v22 = vld [vmem:[#allocation4] sm:$0xff] }
 0x6b8   :  { %v1617_v43 = vadd.f32 %v1615_v39, %v1603_v26  ;;  %v1616_v5 = vadd.f32 %v1614_v49, %v1602_v57 }
 0x6ba   :  { %v1618_v54 = vmul.f32 %v1616_v5, %v3632_v51  ;;  %v1619_v40 = vmul.f32 %v1617_v43, %v3632_v51  ;;  %v1630_v46 = vmul.f32 %v1616_v5, %v1616_v5  ;;  %v1631_v52 = vmul.f32 %v1617_v43, %v1617_v43 }
 0x6bc   :  { %v1620_v9 = vadd.f32 %v1619_v40, %v1618_v54  ;;  %v1632_v48 = vmul.f32 %v1630_v46, %v3632_v51  ;;  %v1633_v6 = vmul.f32 %v1631_v52, %v3632_v51  ;;  %v1918_v54 = vld [vmem:[#allocation4 + $0x8] sm:$0xff] }
 0x6be   :  { %1621 = vadd.xlane.f32.xlu1 %v1620_v9  ;;  %v1634_v38 = vadd.f32 %v1633_v6, %v1632_v48 }
 0x6c0   :  { %1635 = vadd.xlane.f32.xlu0 %v1634_v38 }
 0x747   :  { %v1622_v31 = vpop.xlane.xlu1 %1621 }
 0x748   :  { %v1623_v11 = vrot.slane %v1622_v31, 4 }
 0x749   :  { %v1636_v29 = vpop.xlane.xlu0 %1635 }
 0x74a   :  { %v1624_v3 = vadd.f32 %v1623_v11, %v1622_v31  ;;  %v1637_v56 = vrot.slane %v1636_v29, 4 }
 0x74c   :  { %v1625_v14 = vrot.slane %v1624_v3, 2  ;;  %v1638_v30 = vadd.f32 %v1637_v56, %v1636_v29 }
 0x74e   :  { %v1639_v37 = vrot.slane %v1638_v30, 2  ;;  %v1626_v12 = vadd.f32 %v1625_v14, %v1624_v3 }
 0x750   :  { %v1627_v58 = vrot.slane %v1626_v12, 1  ;;  %v1640_v4 = vadd.f32 %v1639_v37, %v1638_v30 }
 0x752   :  { %v1628_v8 = vadd.f32 %v1627_v58, %v1626_v12  ;;  %v1641_v18 = vrot.slane %v1640_v4, 1 }
 0x754   :  { %1871 = vpush %v1628_v8  ;;  %v1642_v41 = vadd.f32 %v1641_v18, %v1640_v4 }
 0x756   :  { %1873 = vpush %v1642_v41 }
 0x785   :  { %s1872_s30 = spop %1871 }
 0x786   :  { %s1644_s12 = smul.f32 0.001953125, %s1872_s30 }
 0x787   :  { %s1874_s13 = spop %1873 }
 0x788   :  { %s1646_s14 = smul.f32 %s1644_s12, %s1644_s12 }
 0x789   :  { %s1645_s15 = smul.f32 0.001953125, %s1874_s13 }
 0x78b   :  { %s1647_s16 = ssub.f32 %s1645_s15, %s1646_s14 }
 0x78d   :  { %s1648_s17 = sadd.f32 1e-05, %s1647_s16 }
 0x78f   :  { %v1649_v51 = vstv %s1648_s17 }
 0x790   :  { %1907 = vrsqrt.f32 %v1649_v51 }
 0x79d   :  { %v1908_v20 = vpop.eup %1907 }
 0x79e   :  { %1875 = vpush %v1908_v20 }
 0x7cf   :  { %s1876_s18 = spop %1875 }
 0x7d0   :  { %s1653_s3 = smul.f32 %s1876_s18, %s3636_s1 }
 0x7d2   :  { %s1655_s20 = smul.f32 %s1653_s3, %s1644_s12  ;;  %v1657_v27 = vstv %s1653_s3 }
 0x7d3   :  { %v1658_v61 = vmul.f32 %v1657_v27, %v1616_v5  ;;  %v1659_v32 = vmul.f32 %v1657_v27, %v1617_v43 }
 0x7d4   :  { %s1656_s5 = ssub.f32 %s3637_s9, %s1655_s20 }
 0x7d6   :  { %v1660_v33 = vstv %s1656_s5 }
 0x7d7   :  { %v1661_v15 = vadd.f32 %v1660_v33, %v1658_v61  ;;  %v1662_v44 = vadd.f32 %v1660_v33, %v1659_v32 }
 0x7d9   :  { %v1845_v7 = vmul.f32 -1.442695, %v1661_v15  ;;  %v1846_v35 = vmul.f32 -1.442695, %v1662_v44 }
 0x7db   :  { %1909 = vpow2.f32 %v1845_v7 }
 0x7dc   :  { %1911 = vpow2.f32 %v1846_v35 }
 0x7e8   :  { %v1910_v13 = vpop.eup %1909 }
 0x7e9   :  { %v1912_v10 = vpop.eup %1911  ;;  %v1669_v28 = vadd.f32 1.0, %v1910_v13 }
 0x7ea   :  { %v1670_v50 = vadd.f32 1.0, %v1912_v10 }
 0x7eb   :  { %1913 = vrcp.f32 %v1669_v28 }
 0x7ec   :  { %1915 = vrcp.f32 %v1670_v50 }
 0x7f8   :  { %v1914_v21 = vpop.eup %1913 }
 0x7f9   :  { %v1916_v1 = vpop.eup %1915  ;;  %1677 = vrot.lane.b32.xlu1 %v1914_v21, %s2035_s25 }
 0x7fa   :  { %1679 = vrot.lane.b32.xlu0 %v1916_v1, %s2035_s25 }
 0x7fd   :  { %1683 = vrot.lane.b32.xlu1 %v1914_v21, %s3638_s26 }
 0x7fe   :  { %1689 = vrot.lane.b32.xlu0 %v1914_v21, %s2036_s27 }
 0x801   :  { %1685 = vrot.lane.b32.xlu1 %v1916_v1, %s3638_s26 }
 0x802   :  { %1695 = vrot.lane.b32.xlu0 %v1914_v21, %s3635_s7 }
 0x805   :  { %1691 = vrot.lane.b32.xlu1 %v1916_v1, %s2036_s27 }
 0x806   :  { %1701 = vrot.lane.b32.xlu0 %v1914_v21, %s2037_s28 }
 0x809   :  { %1697 = vrot.lane.b32.xlu1 %v1916_v1, %s3635_s7 }
 0x80d   :  { %1703 = vrot.lane.b32.xlu1 %v1916_v1, %s2037_s28 }
 0x86b   :  { %v1678_v24 = vpop.permute.xlu1 %1677 }
 0x86c   :  { %v1680_v19 = vpop.permute.xlu0 %1679  ;;  %v1707_v2 = vsel %vm158_vm0, %v1914_v21, %v1678_v24 }
 0x86d   :  { %v1708_v0 = vsel %vm158_vm0, %v1916_v1, %v1680_v19 }
 0x86f   :  { %v1684_v42 = vpop.permute.xlu1 %1683 }
 0x870   :  { %v1690_v63 = vpop.permute.xlu0 %1689  ;;  %v1709_v62 = vsel %vm161_vm1, %v1707_v2, %v1684_v42 }
 0x871   :  { %v1711_v16 = vsel %vm164_vm2, %v1709_v62, %v1690_v63 }
 0x872   :  { %v1713_v53 = vsel %vm167_vm3, %v1711_v16, %v1684_v42 }
 0x873   :  { %v1686_v17 = vpop.permute.xlu1 %1685  ;;  %v1715_v55 = vsel %vm170_vm4, %v1713_v53, %v1690_v63 }
 0x874   :  { %v1696_v34 = vpop.permute.xlu0 %1695  ;;  %v1710_v45 = vsel %vm161_vm1, %v1708_v0, %v1686_v17 }
 0x875   :  { %v1717_v47 = vsel %vm173_vm5, %v1715_v55, %v1696_v34 }
 0x877   :  { %v1692_v59 = vpop.permute.xlu1 %1691 }
 0x878   :  { %v1702_v25 = vpop.permute.xlu0 %1701  ;;  %v1712_v36 = vsel %vm164_vm2, %v1710_v45, %v1692_v59 }
 0x879   :  { %v1719_v23 = vsel %vm176_vm6, %v1717_v47, %v1702_v25  ;;  %v1714_v60 = vsel %vm167_vm3, %v1712_v36, %v1686_v17 }
 0x87a   :  { %v1721_v26 = vmul.f32 %v1917_v22, %v1719_v23  ;;  %v1716_v57 = vsel %vm170_vm4, %v1714_v60, %v1692_v59 }
 0x87b   :  { %v1698_v39 = vpop.permute.xlu1 %1697 }
 0x87c   :  { %1723 = vst [vmem:[#allocation14] sm:$0xff] %v1721_v26  ;;  %v1718_v49 = vsel %vm173_vm5, %v1716_v57, %v1698_v39 }
 0x87f   :  { %v1704_v43 = vpop.permute.xlu1 %1703 }
 0x880   :  { %v1720_v5 = vsel %vm176_vm6, %v1718_v49, %v1704_v43 }
 0x881   :  { %v1722_v40 = vmul.f32 %v1918_v54, %v1720_v5 }
 0x883   :  { %1724 = vst [vmem:[#allocation14 + $0x8] sm:$0xff] %v1722_v40 }
 0x884   :  { %1998 = shalt.err (!%p1995_p1)
}
 0x885   :  { %s3639_s23 = smov 8   ;;  %s3640_s4 = smov 128  }
 0x886   :  { %s3641_s7 = sld [smem:[#allocation48_spill]] }
 0x88c   :  { %1736 = dma.vmem_to_hbm [thread:$0]  %s1731_s10, 256, %s3641_s7, [#allocation6], %s3640_s4, %s3640_s4, %s3639_s23  }
 0x88d   :  { %2015 = dma.done.wait [#allocation6], 256  }
 0x88e   :  { %2016 = vsyncadd [#allocation6], 4294967040 }
 0x88f   :  { %1740 = vsyncpa [#allocation5], 1 }
 0x890   :  { %1741 = vsyncpa [#allocation6], 1 }
 0x891   :  { %1742 = vsyncpa [#allocation7], 1 }
 0x892   :  { %1743 = vsyncpa [#allocation10], 1 }
 0x893   :  { %1744 = vsyncpa [#allocation13], 1 }

</bundles_post_ra>
